<compile_context>
chip_gen: v7x
topology: tpu7x:2x2x1
jax: 0.10.0
libtpu: 0.0.40
codegen_flags: <defaults>
</compile_context>

<pallas_src>
import jax
import jax.numpy as jnp
from jax.experimental import pallas as pl
from jax.experimental.pallas import tpu as pltpu

INPUT_SIZE = 912
HIDDEN = 100            # logical hidden size (PyTorch)
HP = 128                # padded, lane-dense hidden size
G3 = 3 * HP             # fused r|z|n gate width (padded)
NUM_CLASSES = 5
NCP = 128               # padded fc output width (lane-dense store)
NUM_LAYERS = 2


# ----------------------------------------------------------------------------
# Tiling helpers (static Python, trace-time only).
# ----------------------------------------------------------------------------
def _pick_row_tile(rows, cap=512):
    """Largest sublane-aligned divisor of `rows` <= cap (whole array if small)."""
    if rows <= cap:
        return rows
    for pref in (128, 16, 8):
        start = cap - (cap % pref)
        for tm in range(start, 0, -pref):
            if rows % tm == 0:
                return tm
    return rows  # fallback: single block (full-dim exemption)


def _pick_time_chunk(t_len, cap=128):
    """Largest divisor of T <= cap; chunks the GRU's time axis for pipelining."""
    if t_len <= cap:
        return t_len
    for tc in range(cap, 0, -1):
        if t_len % tc == 0:
            return tc
    return t_len


# ----------------------------------------------------------------------------
# Hoisted input projection: gi = X @ [W_i(fwd) | W_i(bwd)] + bias for the whole
# sequence and both directions at once.  Row-tiled grid, bf16 operands on the
# MXU, f32 accumulation, bf16 output (gi is the single biggest tensor).
# ----------------------------------------------------------------------------
def _proj_kernel(x_ref, w_ref, b_ref, o_ref):
    x = x_ref[...].astype(jnp.bfloat16)       # in-kernel cast: x read once from HBM
    acc = jnp.dot(x, w_ref[...], preferred_element_type=jnp.float32)
    o_ref[...] = (acc + b_ref[...]).astype(o_ref.dtype)


def input_projection(x2d, w, b):
    """(rows, Din) x (Din, 2*3*HP) -> (rows, 2*3*HP) bf16, row-tiled."""
    rows, din = x2d.shape
    ncols = w.shape[1]
    tm = _pick_row_tile(rows)
    return pl.pallas_call(
        _proj_kernel,
        out_shape=jax.ShapeDtypeStruct((rows, ncols), jnp.bfloat16),
        grid=(rows // tm,),
        in_specs=[
            pl.BlockSpec((tm, din), lambda i: (i, 0)),
            pl.BlockSpec((din, ncols), lambda i: (0, 0)),   # weights resident
            pl.BlockSpec((1, ncols), lambda i: (0, 0)),
        ],
        out_specs=pl.BlockSpec((tm, ncols), lambda i: (i, 0)),
        compiler_params=pltpu.CompilerParams(
            dimension_semantics=("parallel",),
            vmem_limit_bytes=48 * 1024 * 1024,
        ),
    )(x2d, w, b)


# ----------------------------------------------------------------------------
# Recurrent kernel.  Grid = (direction, time-chunk).  PyTorch GRU equations
# with the input-side terms (x W_i* + b_i* (+ b_hr/b_hz)) precomputed into gi:
#   r = sigmoid(gi_r + h W_hr)
#   z = sigmoid(gi_z + h W_hz)
#   n = tanh   (gi_n + r * (h W_hn + b_hn))
#   h = (1 - z) * n + z * h
# Direction 1 walks chunks (and in-chunk time) in reverse; output at physical
# time t is h after processing x[T-1..t], matching PyTorch bidirectional GRU.
# ----------------------------------------------------------------------------
def _gru_seq_kernel(gi_ref, wh_ref, bhn_ref, out_ref, h_state):
    # gi_ref : (Tc, B, G3)  bf16  this direction's gate pre-activations (chunk)
    # wh_ref : (HP, G3)     f32   fused [W_hr | W_hz | W_hn] (padded)
    # bhn_ref: (1, HP)      f32   b_hn (stays inside the r*(...) term)
    # out_ref: (Tc, B, HP)  bf16  this direction's lane block of the output
    # h_state: (B, HP)      f32   VMEM scratch, carried across time chunks
    Tc, B, _ = gi_ref.shape
    d = pl.program_id(0)

    @pl.when(pl.program_id(1) == 0)           # first chunk of this direction
    def _init():
        h_state[...] = jnp.zeros_like(h_state)

    # Hoisted once per chunk: avoids re-emitting broadcast_in_dim every step.
    bhn = jnp.broadcast_to(bhn_ref[...], (B, HP))

    def step(tt):
        h_prev = h_state[...]
        gi = gi_ref[tt].astype(jnp.float32)                       # (B, G3)
        gh = jnp.dot(h_prev, wh_ref[...],                         # default MXU prec
                     preferred_element_type=jnp.float32)          # (B, G3)
        r = jax.nn.sigmoid(gi[:, 0 * HP:1 * HP] + gh[:, 0 * HP:1 * HP])
        z = jax.nn.sigmoid(gi[:, 1 * HP:2 * HP] + gh[:, 1 * HP:2 * HP])
        n = jnp.tanh(gi[:, 2 * HP:3 * HP] + r * (gh[:, 2 * HP:3 * HP] + bhn))
        h_new = (1.0 - z) * n + z * h_prev
        h_state[...] = h_new
        out_ref[tt] = h_new.astype(out_ref.dtype)

    def run(reverse):
        if Tc <= 16:                          # short chunk: fully unrolled, static idx
            for t in range(Tc):
                step(Tc - 1 - t if reverse else t)
        else:
            def body(t, carry):
                step(Tc - 1 - t if reverse else t)
                return carry
            jax.lax.fori_loop(0, Tc, body, 0, unroll=2)

    @pl.when(d == 0)
    def _fwd():
        run(False)

    @pl.when(d == 1)
    def _bwd():
        run(True)


def gru_bidir_layer(gi, wh, bhn):
    """gi: (T, B, 2*G3) bf16 -> (T, B, 2*HP) bf16 ([fwd | bwd] lane blocks)."""
    T, B, _ = gi.shape
    Tc = _pick_time_chunk(T)
    nchunks = T // Tc

    def io_map(d, c):
        # Forward walks chunks 0..n-1, backward walks n-1..0 (so the scratch-
        # carried hidden state sees time reversed); d selects the direction's
        # lane block (gi: column block d of width G3, out: block d of width HP).
        c_eff = c + d * (nchunks - 1 - 2 * c)
        return (c_eff, 0, d)

    return pl.pallas_call(
        _gru_seq_kernel,
        out_shape=jax.ShapeDtypeStruct((T, B, 2 * HP), jnp.bfloat16),
        grid=(2, nchunks),
        in_specs=[
            pl.BlockSpec((Tc, B, G3), io_map),
            pl.BlockSpec((None, HP, G3), lambda d, c: (d, 0, 0)),
            pl.BlockSpec((None, 1, HP), lambda d, c: (d, 0, 0)),
        ],
        out_specs=pl.BlockSpec((Tc, B, HP), io_map),
        scratch_shapes=[pltpu.VMEM((B, HP), jnp.float32)],
        compiler_params=pltpu.CompilerParams(
            # Directions are independent -> the two v7x TensorCores (harmless on
            # single-TC v5e/v6e); the chunk axis carries h and stays sequential.
            dimension_semantics=("parallel", "arbitrary"),
            vmem_limit_bytes=48 * 1024 * 1024,
        ),
    )(gi, wh, bhn)
    # TODO(synk): on single-TC v5e/v6e, fusing both directions into one loop body
    # (two h states per step) would further hide the dot->EUP->VPU latency chain.


# ----------------------------------------------------------------------------
# Final Linear(200 -> 5), padded to a lane-dense (256 -> 128) matmul, row-tiled.
# ----------------------------------------------------------------------------
def _linear_kernel(x_ref, w_ref, b_ref, o_ref):
    x = x_ref[...].astype(jnp.bfloat16)
    o_ref[...] = (jnp.dot(x, w_ref[...], preferred_element_type=jnp.float32)
                  + b_ref[...])


def linear_padded(x2d, w, b):
    rows = x2d.shape[0]
    tm = _pick_row_tile(rows)
    return pl.pallas_call(
        _linear_kernel,
        out_shape=jax.ShapeDtypeStruct((rows, NCP), jnp.float32),
        grid=(rows // tm,),
        in_specs=[
            pl.BlockSpec((tm, 2 * HP), lambda i: (i, 0)),
            pl.BlockSpec((2 * HP, NCP), lambda i: (0, 0)),
            pl.BlockSpec((1, NCP), lambda i: (0, 0)),
        ],
        out_specs=pl.BlockSpec((tm, NCP), lambda i: (i, 0)),
        compiler_params=pltpu.CompilerParams(
            dimension_semantics=("parallel",),
            vmem_limit_bytes=48 * 1024 * 1024,
        ),
    )(x2d, w, b)


# ----------------------------------------------------------------------------
# Parameter construction (PyTorch-style uniform(-1/sqrt(H), 1/sqrt(H))) in the
# natural unfused/unpadded layout; pack_params builds the fused, 128-padded
# (bf16 where beneficial) kernel operands.
# ----------------------------------------------------------------------------
def _init_dir(key, in_size):
    bound = 1.0 / float(HIDDEN) ** 0.5
    ks = jax.random.split(key, 12)
    u = lambda kk, shape: jax.random.uniform(kk, shape, jnp.float32, -bound, bound)
    return dict(
        wir=u(ks[0], (in_size, HIDDEN)), wiz=u(ks[1], (in_size, HIDDEN)),
        win=u(ks[2], (in_size, HIDDEN)),
        whr=u(ks[3], (HIDDEN, HIDDEN)), whz=u(ks[4], (HIDDEN, HIDDEN)),
        whn=u(ks[5], (HIDDEN, HIDDEN)),
        bir=u(ks[6], (HIDDEN,)), biz=u(ks[7], (HIDDEN,)), bin=u(ks[8], (HIDDEN,)),
        bhr=u(ks[9], (HIDDEN,)), bhz=u(ks[10], (HIDDEN,)), bhn=u(ks[11], (HIDDEN,)),
    )


def init_params(key):
    k_gru, k_fc = jax.random.split(key)
    gks = jax.random.split(k_gru, NUM_LAYERS * 2)
    layers = []
    for l in range(NUM_LAYERS):
        in_size = INPUT_SIZE if l == 0 else 2 * HIDDEN
        layers.append(dict(fwd=_init_dir(gks[2 * l + 0], in_size),
                           bwd=_init_dir(gks[2 * l + 1], in_size)))
    fb = 1.0 / float(2 * HIDDEN) ** 0.5
    kw, kb = jax.random.split(k_fc)
    return dict(
        layers=layers,
        fc_w=jax.random.uniform(kw, (2 * HIDDEN, NUM_CLASSES), jnp.float32, -fb, fb),
        fc_b=jax.random.uniform(kb, (NUM_CLASSES,), jnp.float32, -fb, fb))


def _place_rows(w, in_pad, row_blocks):
    """Scatter rows of (in_orig, H) into a zero-padded (in_pad, HP) matrix."""
    out = jnp.zeros((in_pad, HP), jnp.float32)
    for s, d, L in row_blocks:
        out = out.at[d:d + L, :w.shape[1]].set(w[s:s + L])
    return out


def _pack_direction(p, in_pad, row_blocks):
    wi = jnp.concatenate(
        [_place_rows(p[k], in_pad, row_blocks) for k in ("wir", "wiz", "win")],
        axis=1)                                                        # (in_pad, 3*HP)

    def padvec(v):
        return jnp.zeros((HP,), jnp.float32).at[:HIDDEN].set(v)

    # Fold hidden-side r/z biases into the input-side bias (plain adds);
    # only b_hn must stay inside the recurrence (inside the r*() term).
    bi = jnp.concatenate([padvec(p["bir"] + p["bhr"]),
                          padvec(p["biz"] + p["bhz"]),
                          padvec(p["bin"])])                           # (3*HP,)

    def padmat(m):
        return jnp.zeros((HP, HP), jnp.float32).at[:HIDDEN, :HIDDEN].set(m)

    wh = jnp.concatenate([padmat(p["whr"]), padmat(p["whz"]), padmat(p["whn"])],
                         axis=1)                                       # (HP, 3*HP)
    bhn = padvec(p["bhn"]).reshape(1, HP)
    return wi, bi, wh, bhn


def pack_params(params):
    kp = {"layers": []}
    for layer_idx, layer in enumerate(params["layers"]):
        if layer_idx == 0:
            in_pad, row_blocks = INPUT_SIZE, [(0, 0, INPUT_SIZE)]
        else:
            # Layer>0 input = GRU output (T, B, 2*HP): fwd h in lanes 0..99,
            # bwd h in lanes 128..227 (padded lanes are exactly zero).
            in_pad, row_blocks = 2 * HP, [(0, 0, HIDDEN), (HIDDEN, HP, HIDDEN)]
        wi_f, bi_f, wh_f, bhn_f = _pack_direction(layer["fwd"], in_pad, row_blocks)
        wi_b, bi_b, wh_b, bhn_b = _pack_direction(layer["bwd"], in_pad, row_blocks)
        kp["layers"].append(dict(
            wi=jnp.concatenate([wi_f, wi_b], axis=1).astype(jnp.bfloat16),  # (in_pad, 2*3*HP)
            bi=jnp.concatenate([bi_f, bi_b]).reshape(1, -1),                # (1, 2*3*HP) f32
            wh=jnp.stack([wh_f, wh_b], axis=0),                             # (2, HP, 3*HP) f32
            bhn=jnp.stack([bhn_f, bhn_b], axis=0),                          # (2, 1, HP) f32
        ))
    fc_w = jnp.zeros((2 * HP, NCP), jnp.float32)
    fc_w = fc_w.at[0:HIDDEN, :NUM_CLASSES].set(params["fc_w"][0:HIDDEN])
    fc_w = fc_w.at[HP:HP + HIDDEN, :NUM_CLASSES].set(params["fc_w"][HIDDEN:2 * HIDDEN])
    kp["fc_w"] = fc_w.astype(jnp.bfloat16)
    kp["fc_b"] = jnp.zeros((1, NCP), jnp.float32).at[0, :NUM_CLASSES].set(params["fc_b"])
    return kp


# ----------------------------------------------------------------------------
# Full forward pass (mirrors RNN2.forward; self.crf is unused in forward).
# ----------------------------------------------------------------------------
def rnn2_forward(x, kp):
    """x: (B, T, 912) float32  ->  (B*T, 1, 5) float32."""
    B, T, _ = x.shape
    h = jnp.transpose(x, (1, 0, 2))                          # (T, B, Din), time-major
    for lw in kp["layers"]:
        x2d = h.reshape(T * B, h.shape[-1])
        gi = input_projection(x2d, lw["wi"], lw["bi"])       # (T*B, 2*3*HP) bf16
        gi = gi.reshape(T, B, 2 * G3)                        # free (contiguous) reshape
        h = gru_bidir_layer(gi, lw["wh"], lw["bhn"])         # (T, B, 2*HP) bf16
        # TODO(synk): nn.GRU inter-layer dropout(p=0.3) is training-mode
        # stochastic behaviour; this is the eval-mode forward (identity).
    r_out = jnp.transpose(h, (1, 0, 2)).reshape(B * T, 2 * HP)
    out_p = linear_padded(r_out, kp["fc_w"], kp["fc_b"])     # (B*T, 128), lane-dense
    return out_p[:, :NUM_CLASSES].reshape(-1, 1, NUM_CLASSES)  # == out.view(-1, 1, 5)


# ----------------------------------------------------------------------------
# Pure-JAX f32 reference (unfused, unpadded, HIGHEST precision) for validation.
# ----------------------------------------------------------------------------
def _gru_dir_ref(x_tbd, p, reverse):
    T, B, _ = x_tbd.shape
    hi = jax.lax.Precision.HIGHEST
    h = jnp.zeros((B, HIDDEN), jnp.float32)
    outs = [None] * T
    order = range(T - 1, -1, -1) if reverse else range(T)
    for t in order:
        x_t = x_tbd[t]
        gi_r = jnp.dot(x_t, p["wir"], precision=hi) + p["bir"]
        gi_z = jnp.dot(x_t, p["wiz"], precision=hi) + p["biz"]
        gi_n = jnp.dot(x_t, p["win"], precision=hi) + p["bin"]
        gh_r = jnp.dot(h, p["whr"], precision=hi) + p["bhr"]
        gh_z = jnp.dot(h, p["whz"], precision=hi) + p["bhz"]
        gh_n = jnp.dot(h, p["whn"], precision=hi) + p["bhn"]
        r = jax.nn.sigmoid(gi_r + gh_r)
        z = jax.nn.sigmoid(gi_z + gh_z)
        n = jnp.tanh(gi_n + r * gh_n)
        h = (1.0 - z) * n + z * h
        outs[t] = h
    return jnp.stack(outs, axis=0)


def rnn2_reference(x, params):
    B, T, _ = x.shape
    hi = jax.lax.Precision.HIGHEST
    h = jnp.transpose(x, (1, 0, 2))
    for layer in params["layers"]:
        fwd = _gru_dir_ref(h, layer["fwd"], reverse=False)
        bwd = _gru_dir_ref(h, layer["bwd"], reverse=True)
        h = jnp.concatenate([fwd, bwd], axis=-1)
    r_out = jnp.transpose(h, (1, 0, 2)).reshape(B * T, 2 * HIDDEN)
    out = jnp.dot(r_out, params["fc_w"], precision=hi) + params["fc_b"]
    return out.reshape(-1, 1, NUM_CLASSES)


if __name__ == "__main__":
    key = jax.random.PRNGKey(0)
    k_params, k_x = jax.random.split(key)
    params = init_params(k_params)
    kparams = pack_params(params)

    B, T = 2, 8
    x = jax.random.normal(k_x, (B, T, INPUT_SIZE), jnp.float32)

    forward = jax.jit(rnn2_forward)
    out = jax.block_until_ready(forward(x, kparams))
    assert out.shape == (B * T, 1, NUM_CLASSES), out.shape

    ref = rnn2_reference(x, params)
    err = float(jnp.max(jnp.abs(out - ref)))
    # Tolerance sized for the bf16-operand MXU path on the K=912 contraction plus
    # bf16 storage of gi / inter-layer activations, compared against a full-f32
    # HIGHEST-precision reference.  Expected error is a few 1e-3; structural bugs
    # (wrong gate, wrong direction/time order, bad packing) produce O(0.1+).
    assert err < 2e-2, err
    print("KERNEL_OK")
</pallas_src>

<mosaic_0001>
module attributes {stable_mosaic.version = 11 : i64} {
  func.func @_proj_kernel(%arg0: i32, %arg1: memref<16x912xf32, #tpu.memory_space<vmem>>, %arg2: memref<912x768xbf16, #tpu.memory_space<vmem>>, %arg3: memref<1x768xf32, #tpu.memory_space<vmem>>, %arg4: memref<16x768xbf16, #tpu.memory_space<vmem>>) attributes {dimension_semantics = [#tpu.dimension_semantics<parallel>], iteration_bounds = array<i64: 1>, scalar_prefetch = 0 : i64, scratch_operands = 0 : i64, tpu.core_type = #tpu.core_type<tc>, window_params = [{transform_indices = @transform_0, window_bounds = array<i64: 16, 912>}, {pipeline_mode = #tpu.pipeline_mode<synchronous>, transform_indices = @transform_1, window_bounds = array<i64: 912, 768>}, {pipeline_mode = #tpu.pipeline_mode<synchronous>, transform_indices = @transform_2, window_bounds = array<i64: 1, 768>}, {transform_indices = @transform_3, window_bounds = array<i64: 16, 768>}]} {
    %c0 = arith.constant 0 : index
    %c0_0 = arith.constant 0 : index
    %0 = vector.load %arg1[%c0, %c0_0] : memref<16x912xf32, #tpu.memory_space<vmem>>, vector<16x912xf32>
    %1 = arith.truncf %0 : vector<16x912xf32> to vector<16x912xbf16>
    %c0_1 = arith.constant 0 : index
    %c0_2 = arith.constant 0 : index
    %2 = vector.load %arg2[%c0_1, %c0_2] : memref<912x768xbf16, #tpu.memory_space<vmem>>, vector<912x768xbf16>
    %cst = arith.constant dense<0.000000e+00> : vector<16x768xf32>
    %3 = tpu.matmul %1, %2, %cst {dimension_numbers = #tpu.dot_dimension_numbers<[1], [0], [0], [1], [0, 0, 1, 1], [], []>} : vector<16x912xbf16>, vector<912x768xbf16>, vector<16x768xf32> -> vector<16x768xf32>
    %c0_3 = arith.constant 0 : index
    %c0_4 = arith.constant 0 : index
    %4 = vector.load %arg3[%c0_3, %c0_4] : memref<1x768xf32, #tpu.memory_space<vmem>>, vector<1x768xf32>
    %5 = vector.broadcast %4 : vector<1x768xf32> to vector<16x768xf32>
    %6 = arith.addf %3, %5 : vector<16x768xf32>
    %7 = arith.truncf %6 : vector<16x768xf32> to vector<16x768xbf16>
    %c0_5 = arith.constant 0 : index
    %c0_6 = arith.constant 0 : index
    %8 = vector.load %arg4[%c0_5, %c0_6] : memref<16x768xbf16, #tpu.memory_space<vmem>>, vector<16x768xbf16>
    tpu.vector_store %arg4[%c0_5, %c0_6], %7 {strides = array<i32>} : memref<16x768xbf16, #tpu.memory_space<vmem>>, vector<16x768xbf16>,
    return
  }
  func.func @transform_0(%arg0: i32) -> (i32, i32) {
    %c0_i32 = arith.constant 0 : i32
    %c0_i32_0 = arith.constant 0 : i32
    return %arg0, %c0_i32 : i32, i32
  }
  func.func @transform_1(%arg0: i32) -> (i32, i32) {
    %c0_i32 = arith.constant 0 : i32
    %c0_i32_0 = arith.constant 0 : i32
    %c0_i32_1 = arith.constant 0 : i32
    return %c0_i32, %c0_i32_0 : i32, i32
  }
  func.func @transform_2(%arg0: i32) -> (i32, i32) {
    %c0_i32 = arith.constant 0 : i32
    %c0_i32_0 = arith.constant 0 : i32
    %c0_i32_1 = arith.constant 0 : i32
    return %c0_i32, %c0_i32_0 : i32, i32
  }
  func.func @transform_3(%arg0: i32) -> (i32, i32) {
    %c0_i32 = arith.constant 0 : i32
    %c0_i32_0 = arith.constant 0 : i32
    return %arg0, %c0_i32 : i32, i32
  }
}

module attributes {stable_mosaic.version = 11 : i64} {
  func.func @_linear_kernel(%arg0: i32, %arg1: memref<16x256xbf16, #tpu.memory_space<vmem>>, %arg2: memref<256x128xbf16, #tpu.memory_space<vmem>>, %arg3: memref<1x128xf32, #tpu.memory_space<vmem>>, %arg4: memref<16x128xf32, #tpu.memory_space<vmem>>) attributes {dimension_semantics = [#tpu.dimension_semantics<parallel>], iteration_bounds = array<i64: 1>, scalar_prefetch = 0 : i64, scratch_operands = 0 : i64, tpu.core_type = #tpu.core_type<tc>, window_params = [{transform_indices = @transform_0, window_bounds = array<i64: 16, 256>}, {pipeline_mode = #tpu.pipeline_mode<synchronous>, transform_indices = @transform_1, window_bounds = array<i64: 256, 128>}, {pipeline_mode = #tpu.pipeline_mode<synchronous>, transform_indices = @transform_2, window_bounds = array<i64: 1, 128>}, {transform_indices = @transform_3, window_bounds = array<i64: 16, 128>}]} {
    %c0 = arith.constant 0 : index
    %c0_0 = arith.constant 0 : index
    %0 = vector.load %arg1[%c0, %c0_0] : memref<16x256xbf16, #tpu.memory_space<vmem>>, vector<16x256xbf16>
    %c0_1 = arith.constant 0 : index
    %c0_2 = arith.constant 0 : index
    %1 = vector.load %arg2[%c0_1, %c0_2] : memref<256x128xbf16, #tpu.memory_space<vmem>>, vector<256x128xbf16>
    %cst = arith.constant dense<0.000000e+00> : vector<16x128xf32>
    %2 = tpu.matmul %0, %1, %cst {dimension_numbers = #tpu.dot_dimension_numbers<[1], [0], [0], [1], [0, 0, 1, 1], [], []>} : vector<16x256xbf16>, vector<256x128xbf16>, vector<16x128xf32> -> vector<16x128xf32>
    %c0_3 = arith.constant 0 : index
    %c0_4 = arith.constant 0 : index
    %3 = vector.load %arg3[%c0_3, %c0_4] : memref<1x128xf32, #tpu.memory_space<vmem>>, vector<1x128xf32>
    %4 = vector.broadcast %3 : vector<1x128xf32> to vector<16x128xf32>
    %5 = arith.addf %2, %4 : vector<16x128xf32>
    %c0_5 = arith.constant 0 : index
    %c0_6 = arith.constant 0 : index
    %6 = vector.load %arg4[%c0_5, %c0_6] : memref<16x128xf32, #tpu.memory_space<vmem>>, vector<16x128xf32>
    tpu.vector_store %arg4[%c0_5, %c0_6], %5 {strides = array<i32>} : memref<16x128xf32, #tpu.memory_space<vmem>>, vector<16x128xf32>,
    return
  }
  func.func @transform_0(%arg0: i32) -> (i32, i32) {
    %c0_i32 = arith.constant 0 : i32
    %c0_i32_0 = arith.constant 0 : i32
    return %arg0, %c0_i32 : i32, i32
  }
  func.func @transform_1(%arg0: i32) -> (i32, i32) {
    %c0_i32 = arith.constant 0 : i32
    %c0_i32_0 = arith.constant 0 : i32
    %c0_i32_1 = arith.constant 0 : i32
    return %c0_i32, %c0_i32_0 : i32, i32
  }
  func.func @transform_2(%arg0: i32) -> (i32, i32) {
    %c0_i32 = arith.constant 0 : i32
    %c0_i32_0 = arith.constant 0 : i32
    %c0_i32_1 = arith.constant 0 : i32
    return %c0_i32, %c0_i32_0 : i32, i32
  }
  func.func @transform_3(%arg0: i32) -> (i32, i32) {
    %c0_i32 = arith.constant 0 : i32
    %c0_i32_0 = arith.constant 0 : i32
    return %arg0, %c0_i32 : i32, i32
  }
}

module attributes {stable_mosaic.version = 11 : i64} {
  func.func @_gru_seq_kernel(%arg0: i32, %arg1: i32, %arg2: memref<8x2x384xbf16, #tpu.memory_space<vmem>>, %arg3: memref<1x128x384xf32, #tpu.memory_space<vmem>>, %arg4: memref<1x1x128xf32, #tpu.memory_space<vmem>>, %arg5: memref<8x2x128xbf16, #tpu.memory_space<vmem>>, %arg6: memref<2x128xf32, #tpu.memory_space<vmem>>) attributes {dimension_semantics = [#tpu.dimension_semantics<parallel>, #tpu.dimension_semantics<arbitrary>], iteration_bounds = array<i64: 2, 1>, scalar_prefetch = 0 : i64, scratch_operands = 1 : i64, tpu.core_type = #tpu.core_type<tc>, window_params = [{transform_indices = @transform_0, window_bounds = array<i64: 8, 2, 384>}, {transform_indices = @transform_1, window_bounds = array<i64: 1, 128, 384>}, {transform_indices = @transform_2, window_bounds = array<i64: 1, 1, 128>}, {transform_indices = @transform_3, window_bounds = array<i64: 8, 2, 128>}]} {
    %c0_i32 = arith.constant 0 : i32
    %0 = arith.cmpi eq, %arg1, %c0_i32 : i32
    %1 = arith.extui %0 : i1 to i32
    %c0_i32_0 = arith.constant 0 : i32
    %2 = arith.cmpi ne, %1, %c0_i32_0 : i32
    scf.if %2 {
      %cst = arith.constant 0.000000e+00 : f32
      %13 = vector.broadcast %cst : f32 to vector<2x128xf32>
      %c0_6 = arith.constant 0 : index
      %c0_7 = arith.constant 0 : index
      %14 = vector.load %arg6[%c0_6, %c0_7] : memref<2x128xf32, #tpu.memory_space<vmem>>, vector<2x128xf32>
      tpu.vector_store %arg6[%c0_6, %c0_7], %13 {strides = array<i32>} : memref<2x128xf32, #tpu.memory_space<vmem>>, vector<2x128xf32>,
    } else {
    }
    %c0 = arith.constant 0 : index
    %c0_1 = arith.constant 0 : index
    %c0_2 = arith.constant 0 : index
    %3 = vector.load %arg4[%c0, %c0_1, %c0_2] : memref<1x1x128xf32, #tpu.memory_space<vmem>>, vector<1x1x128xf32>
    %4 = vector.shape_cast %3 : vector<1x1x128xf32> to vector<1x128xf32>
    %5 = vector.shape_cast %4 : vector<1x128xf32> to vector<1x128xf32>
    %6 = vector.broadcast %5 : vector<1x128xf32> to vector<2x128xf32>
    %c0_i32_3 = arith.constant 0 : i32
    %7 = arith.cmpi eq, %arg0, %c0_i32_3 : i32
    %8 = arith.extui %7 : i1 to i32
    %c0_i32_4 = arith.constant 0 : i32
    %9 = arith.cmpi ne, %8, %c0_i32_4 : i32
    scf.if %9 {
      %c0_6 = arith.constant 0 : index
      %c0_7 = arith.constant 0 : index
      %13 = vector.load %arg6[%c0_6, %c0_7] : memref<2x128xf32, #tpu.memory_space<vmem>>, vector<2x128xf32>
      %c0_8 = arith.constant 0 : index
      %c0_9 = arith.constant 0 : index
      %c0_10 = arith.constant 0 : index
      %14 = vector.load %arg2[%c0_8, %c0_9, %c0_10] : memref<8x2x384xbf16, #tpu.memory_space<vmem>>, vector<1x2x384xbf16>
      %15 = vector.shape_cast %14 : vector<1x2x384xbf16> to vector<2x384xbf16>
      %16 = arith.extf %15 : vector<2x384xbf16> to vector<2x384xf32>
      %c0_11 = arith.constant 0 : index
      %c0_12 = arith.constant 0 : index
      %c0_13 = arith.constant 0 : index
      %17 = vector.load %arg3[%c0_11, %c0_12, %c0_13] : memref<1x128x384xf32, #tpu.memory_space<vmem>>, vector<1x128x384xf32>
      %18 = vector.shape_cast %17 : vector<1x128x384xf32> to vector<128x384xf32>
      %cst = arith.constant dense<0.000000e+00> : vector<2x384xf32>
      %19 = tpu.matmul %13, %18, %cst {dimension_numbers = #tpu.dot_dimension_numbers<[1], [0], [0], [1], [0, 0, 1, 1], [], []>} : vector<2x128xf32>, vector<128x384xf32>, vector<2x384xf32> -> vector<2x384xf32>
      %20 = vector.extract_strided_slice %16 {offsets = [0, 0], sizes = [2, 128], strides = [1, 1]} : vector<2x384xf32> to vector<2x128xf32>
      %21 = vector.extract_strided_slice %19 {offsets = [0, 0], sizes = [2, 128], strides = [1, 1]} : vector<2x384xf32> to vector<2x128xf32>
      %22 = arith.addf %20, %21 : vector<2x128xf32>
      %23 = arith.negf %22 : vector<2x128xf32>
      %24 = math.exp %23 : vector<2x128xf32>
      %cst_14 = arith.constant 1.000000e+00 : f32
      %25 = vector.broadcast %cst_14 : f32 to vector<2x128xf32>
      %26 = arith.addf %25, %24 : vector<2x128xf32>
      %27 = arith.divf %25, %26 : vector<2x128xf32>
      %28 = vector.extract_strided_slice %16 {offsets = [0, 128], sizes = [2, 128], strides = [1, 1]} : vector<2x384xf32> to vector<2x128xf32>
      %29 = vector.extract_strided_slice %19 {offsets = [0, 128], sizes = [2, 128], strides = [1, 1]} : vector<2x384xf32> to vector<2x128xf32>
      %30 = arith.addf %28, %29 : vector<2x128xf32>
      %31 = arith.negf %30 : vector<2x128xf32>
      %32 = math.exp %31 : vector<2x128xf32>
      %cst_15 = arith.constant 1.000000e+00 : f32
      %33 = vector.broadcast %cst_15 : f32 to vector<2x128xf32>
      %34 = arith.addf %33, %32 : vector<2x128xf32>
      %35 = arith.divf %33, %34 : vector<2x128xf32>
      %36 = vector.extract_strided_slice %16 {offsets = [0, 256], sizes = [2, 128], strides = [1, 1]} : vector<2x384xf32> to vector<2x128xf32>
      %37 = vector.extract_strided_slice %19 {offsets = [0, 256], sizes = [2, 128], strides = [1, 1]} : vector<2x384xf32> to vector<2x128xf32>
      %38 = arith.addf %37, %6 : vector<2x128xf32>
      %39 = arith.mulf %27, %38 : vector<2x128xf32>
      %40 = arith.addf %36, %39 : vector<2x128xf32>
      %41 = math.tanh %40 : vector<2x128xf32>
      %cst_16 = arith.constant 1.000000e+00 : f32
      %42 = vector.broadcast %cst_16 : f32 to vector<2x128xf32>
      %43 = arith.subf %42, %35 : vector<2x128xf32>
      %44 = arith.mulf %43, %41 : vector<2x128xf32>
      %45 = arith.mulf %35, %13 : vector<2x128xf32>
      %46 = arith.addf %44, %45 : vector<2x128xf32>
      %c0_17 = arith.constant 0 : index
      %c0_18 = arith.constant 0 : index
      %47 = vector.load %arg6[%c0_17, %c0_18] : memref<2x128xf32, #tpu.memory_space<vmem>>, vector<2x128xf32>
      tpu.vector_store %arg6[%c0_17, %c0_18], %46 {strides = array<i32>} : memref<2x128xf32, #tpu.memory_space<vmem>>, vector<2x128xf32>,
      %48 = arith.truncf %46 : vector<2x128xf32> to vector<2x128xbf16>
      %c0_19 = arith.constant 0 : index
      %c0_20 = arith.constant 0 : index
      %c0_21 = arith.constant 0 : index
      %49 = vector.load %arg5[%c0_19, %c0_20, %c0_21] : memref<8x2x128xbf16, #tpu.memory_space<vmem>>, vector<1x2x128xbf16>
      %50 = vector.shape_cast %49 : vector<1x2x128xbf16> to vector<2x128xbf16>
      %51 = vector.shape_cast %48 : vector<2x128xbf16> to vector<1x2x128xbf16>
      tpu.vector_store %arg5[%c0_19, %c0_20, %c0_21], %51 {strides = array<i32>} : memref<8x2x128xbf16, #tpu.memory_space<vmem>>, vector<1x2x128xbf16>,
      %c0_22 = arith.constant 0 : index
      %c0_23 = arith.constant 0 : index
      %52 = vector.load %arg6[%c0_22, %c0_23] : memref<2x128xf32, #tpu.memory_space<vmem>>, vector<2x128xf32>
      %c1 = arith.constant 1 : index
      %c0_24 = arith.constant 0 : index
      %c0_25 = arith.constant 0 : index
      %53 = vector.load %arg2[%c1, %c0_24, %c0_25] : memref<8x2x384xbf16, #tpu.memory_space<vmem>>, vector<1x2x384xbf16>
      %54 = vector.shape_cast %53 : vector<1x2x384xbf16> to vector<2x384xbf16>
      %55 = arith.extf %54 : vector<2x384xbf16> to vector<2x384xf32>
      %c0_26 = arith.constant 0 : index
      %c0_27 = arith.constant 0 : index
      %c0_28 = arith.constant 0 : index
      %56 = vector.load %arg3[%c0_26, %c0_27, %c0_28] : memref<1x128x384xf32, #tpu.memory_space<vmem>>, vector<1x128x384xf32>
      %57 = vector.shape_cast %56 : vector<1x128x384xf32> to vector<128x384xf32>
      %cst_29 = arith.constant dense<0.000000e+00> : vector<2x384xf32>
      %58 = tpu.matmul %52, %57, %cst_29 {dimension_numbers = #tpu.dot_dimension_numbers<[1], [0], [0], [1], [0, 0, 1, 1], [], []>} : vector<2x128xf32>, vector<128x384xf32>, vector<2x384xf32> -> vector<2x384xf32>
      %59 = vector.extract_strided_slice %55 {offsets = [0, 0], sizes = [2, 128], strides = [1, 1]} : vector<2x384xf32> to vector<2x128xf32>
      %60 = vector.extract_strided_slice %58 {offsets = [0, 0], sizes = [2, 128], strides = [1, 1]} : vector<2x384xf32> to vector<2x128xf32>
      %61 = arith.addf %59, %60 : vector<2x128xf32>
      %62 = arith.negf %61 : vector<2x128xf32>
      %63 = math.exp %62 : vector<2x128xf32>
      %cst_30 = arith.constant 1.000000e+00 : f32
      %64 = vector.broadcast %cst_30 : f32 to vector<2x128xf32>
      %65 = arith.addf %64, %63 : vector<2x128xf32>
      %66 = arith.divf %64, %65 : vector<2x128xf32>
      %67 = vector.extract_strided_slice %55 {offsets = [0, 128], sizes = [2, 128], strides = [1, 1]} : vector<2x384xf32> to vector<2x128xf32>
      %68 = vector.extract_strided_slice %58 {offsets = [0, 128], sizes = [2, 128], strides = [1, 1]} : vector<2x384xf32> to vector<2x128xf32>
      %69 = arith.addf %67, %68 : vector<2x128xf32>
      %70 = arith.negf %69 : vector<2x128xf32>
      %71 = math.exp %70 : vector<2x128xf32>
      %cst_31 = arith.constant 1.000000e+00 : f32
      %72 = vector.broadcast %cst_31 : f32 to vector<2x128xf32>
      %73 = arith.addf %72, %71 : vector<2x128xf32>
      %74 = arith.divf %72, %73 : vector<2x128xf32>
      %75 = vector.extract_strided_slice %55 {offsets = [0, 256], sizes = [2, 128], strides = [1, 1]} : vector<2x384xf32> to vector<2x128xf32>
      %76 = vector.extract_strided_slice %58 {offsets = [0, 256], sizes = [2, 128], strides = [1, 1]} : vector<2x384xf32> to vector<2x128xf32>
      %77 = arith.addf %76, %6 : vector<2x128xf32>
      %78 = arith.mulf %66, %77 : vector<2x128xf32>
      %79 = arith.addf %75, %78 : vector<2x128xf32>
      %80 = math.tanh %79 : vector<2x128xf32>
      %cst_32 = arith.constant 1.000000e+00 : f32
      %81 = vector.broadcast %cst_32 : f32 to vector<2x128xf32>
      %82 = arith.subf %81, %74 : vector<2x128xf32>
      %83 = arith.mulf %82, %80 : vector<2x128xf32>
      %84 = arith.mulf %74, %52 : vector<2x128xf32>
      %85 = arith.addf %83, %84 : vector<2x128xf32>
      %c0_33 = arith.constant 0 : index
      %c0_34 = arith.constant 0 : index
      %86 = vector.load %arg6[%c0_33, %c0_34] : memref<2x128xf32, #tpu.memory_space<vmem>>, vector<2x128xf32>
      tpu.vector_store %arg6[%c0_33, %c0_34], %85 {strides = array<i32>} : memref<2x128xf32, #tpu.memory_space<vmem>>, vector<2x128xf32>,
      %87 = arith.truncf %85 : vector<2x128xf32> to vector<2x128xbf16>
      %c1_35 = arith.constant 1 : index
      %c0_36 = arith.constant 0 : index
      %c0_37 = arith.constant 0 : index
      %88 = vector.load %arg5[%c1_35, %c0_36, %c0_37] : memref<8x2x128xbf16, #tpu.memory_space<vmem>>, vector<1x2x128xbf16>
      %89 = vector.shape_cast %88 : vector<1x2x128xbf16> to vector<2x128xbf16>
      %90 = vector.shape_cast %87 : vector<2x128xbf16> to vector<1x2x128xbf16>
      tpu.vector_store %arg5[%c1_35, %c0_36, %c0_37], %90 {strides = array<i32>} : memref<8x2x128xbf16, #tpu.memory_space<vmem>>, vector<1x2x128xbf16>,
      %c0_38 = arith.constant 0 : index
      %c0_39 = arith.constant 0 : index
      %91 = vector.load %arg6[%c0_38, %c0_39] : memref<2x128xf32, #tpu.memory_space<vmem>>, vector<2x128xf32>
      %c2 = arith.constant 2 : index
      %c0_40 = arith.constant 0 : index
      %c0_41 = arith.constant 0 : index
      %92 = vector.load %arg2[%c2, %c0_40, %c0_41] : memref<8x2x384xbf16, #tpu.memory_space<vmem>>, vector<1x2x384xbf16>
      %93 = vector.shape_cast %92 : vector<1x2x384xbf16> to vector<2x384xbf16>
      %94 = arith.extf %93 : vector<2x384xbf16> to vector<2x384xf32>
      %c0_42 = arith.constant 0 : index
      %c0_43 = arith.constant 0 : index
      %c0_44 = arith.constant 0 : index
      %95 = vector.load %arg3[%c0_42, %c0_43, %c0_44] : memref<1x128x384xf32, #tpu.memory_space<vmem>>, vector<1x128x384xf32>
      %96 = vector.shape_cast %95 : vector<1x128x384xf32> to vector<128x384xf32>
      %cst_45 = arith.constant dense<0.000000e+00> : vector<2x384xf32>
      %97 = tpu.matmul %91, %96, %cst_45 {dimension_numbers = #tpu.dot_dimension_numbers<[1], [0], [0], [1], [0, 0, 1, 1], [], []>} : vector<2x128xf32>, vector<128x384xf32>, vector<2x384xf32> -> vector<2x384xf32>
      %98 = vector.extract_strided_slice %94 {offsets = [0, 0], sizes = [2, 128], strides = [1, 1]} : vector<2x384xf32> to vector<2x128xf32>
      %99 = vector.extract_strided_slice %97 {offsets = [0, 0], sizes = [2, 128], strides = [1, 1]} : vector<2x384xf32> to vector<2x128xf32>
      %100 = arith.addf %98, %99 : vector<2x128xf32>
      %101 = arith.negf %100 : vector<2x128xf32>
      %102 = math.exp %101 : vector<2x128xf32>
      %cst_46 = arith.constant 1.000000e+00 : f32
      %103 = vector.broadcast %cst_46 : f32 to vector<2x128xf32>
      %104 = arith.addf %103, %102 : vector<2x128xf32>
      %105 = arith.divf %103, %104 : vector<2x128xf32>
      %106 = vector.extract_strided_slice %94 {offsets = [0, 128], sizes = [2, 128], strides = [1, 1]} : vector<2x384xf32> to vector<2x128xf32>
      %107 = vector.extract_strided_slice %97 {offsets = [0, 128], sizes = [2, 128], strides = [1, 1]} : vector<2x384xf32> to vector<2x128xf32>
      %108 = arith.addf %106, %107 : vector<2x128xf32>
      %109 = arith.negf %108 : vector<2x128xf32>
      %110 = math.exp %109 : vector<2x128xf32>
      %cst_47 = arith.constant 1.000000e+00 : f32
      %111 = vector.broadcast %cst_47 : f32 to vector<2x128xf32>
      %112 = arith.addf %111, %110 : vector<2x128xf32>
      %113 = arith.divf %111, %112 : vector<2x128xf32>
      %114 = vector.extract_strided_slice %94 {offsets = [0, 256], sizes = [2, 128], strides = [1, 1]} : vector<2x384xf32> to vector<2x128xf32>
      %115 = vector.extract_strided_slice %97 {offsets = [0, 256], sizes = [2, 128], strides = [1, 1]} : vector<2x384xf32> to vector<2x128xf32>
      %116 = arith.addf %115, %6 : vector<2x128xf32>
      %117 = arith.mulf %105, %116 : vector<2x128xf32>
      %118 = arith.addf %114, %117 : vector<2x128xf32>
      %119 = math.tanh %118 : vector<2x128xf32>
      %cst_48 = arith.constant 1.000000e+00 : f32
      %120 = vector.broadcast %cst_48 : f32 to vector<2x128xf32>
      %121 = arith.subf %120, %113 : vector<2x128xf32>
      %122 = arith.mulf %121, %119 : vector<2x128xf32>
      %123 = arith.mulf %113, %91 : vector<2x128xf32>
      %124 = arith.addf %122, %123 : vector<2x128xf32>
      %c0_49 = arith.constant 0 : index
      %c0_50 = arith.constant 0 : index
      %125 = vector.load %arg6[%c0_49, %c0_50] : memref<2x128xf32, #tpu.memory_space<vmem>>, vector<2x128xf32>
      tpu.vector_store %arg6[%c0_49, %c0_50], %124 {strides = array<i32>} : memref<2x128xf32, #tpu.memory_space<vmem>>, vector<2x128xf32>,
      %126 = arith.truncf %124 : vector<2x128xf32> to vector<2x128xbf16>
      %c2_51 = arith.constant 2 : index
      %c0_52 = arith.constant 0 : index
      %c0_53 = arith.constant 0 : index
      %127 = vector.load %arg5[%c2_51, %c0_52, %c0_53] : memref<8x2x128xbf16, #tpu.memory_space<vmem>>, vector<1x2x128xbf16>
      %128 = vector.shape_cast %127 : vector<1x2x128xbf16> to vector<2x128xbf16>
      %129 = vector.shape_cast %126 : vector<2x128xbf16> to vector<1x2x128xbf16>
      tpu.vector_store %arg5[%c2_51, %c0_52, %c0_53], %129 {strides = array<i32>} : memref<8x2x128xbf16, #tpu.memory_space<vmem>>, vector<1x2x128xbf16>,
      %c0_54 = arith.constant 0 : index
      %c0_55 = arith.constant 0 : index
      %130 = vector.load %arg6[%c0_54, %c0_55] : memref<2x128xf32, #tpu.memory_space<vmem>>, vector<2x128xf32>
      %c3 = arith.constant 3 : index
      %c0_56 = arith.constant 0 : index
      %c0_57 = arith.constant 0 : index
      %131 = vector.load %arg2[%c3, %c0_56, %c0_57] : memref<8x2x384xbf16, #tpu.memory_space<vmem>>, vector<1x2x384xbf16>
      %132 = vector.shape_cast %131 : vector<1x2x384xbf16> to vector<2x384xbf16>
      %133 = arith.extf %132 : vector<2x384xbf16> to vector<2x384xf32>
      %c0_58 = arith.constant 0 : index
      %c0_59 = arith.constant 0 : index
      %c0_60 = arith.constant 0 : index
      %134 = vector.load %arg3[%c0_58, %c0_59, %c0_60] : memref<1x128x384xf32, #tpu.memory_space<vmem>>, vector<1x128x384xf32>
      %135 = vector.shape_cast %134 : vector<1x128x384xf32> to vector<128x384xf32>
      %cst_61 = arith.constant dense<0.000000e+00> : vector<2x384xf32>
      %136 = tpu.matmul %130, %135, %cst_61 {dimension_numbers = #tpu.dot_dimension_numbers<[1], [0], [0], [1], [0, 0, 1, 1], [], []>} : vector<2x128xf32>, vector<128x384xf32>, vector<2x384xf32> -> vector<2x384xf32>
      %137 = vector.extract_strided_slice %133 {offsets = [0, 0], sizes = [2, 128], strides = [1, 1]} : vector<2x384xf32> to vector<2x128xf32>
      %138 = vector.extract_strided_slice %136 {offsets = [0, 0], sizes = [2, 128], strides = [1, 1]} : vector<2x384xf32> to vector<2x128xf32>
      %139 = arith.addf %137, %138 : vector<2x128xf32>
      %140 = arith.negf %139 : vector<2x128xf32>
      %141 = math.exp %140 : vector<2x128xf32>
      %cst_62 = arith.constant 1.000000e+00 : f32
      %142 = vector.broadcast %cst_62 : f32 to vector<2x128xf32>
      %143 = arith.addf %142, %141 : vector<2x128xf32>
      %144 = arith.divf %142, %143 : vector<2x128xf32>
      %145 = vector.extract_strided_slice %133 {offsets = [0, 128], sizes = [2, 128], strides = [1, 1]} : vector<2x384xf32> to vector<2x128xf32>
      %146 = vector.extract_strided_slice %136 {offsets = [0, 128], sizes = [2, 128], strides = [1, 1]} : vector<2x384xf32> to vector<2x128xf32>
      %147 = arith.addf %145, %146 : vector<2x128xf32>
      %148 = arith.negf %147 : vector<2x128xf32>
      %149 = math.exp %148 : vector<2x128xf32>
      %cst_63 = arith.constant 1.000000e+00 : f32
      %150 = vector.broadcast %cst_63 : f32 to vector<2x128xf32>
      %151 = arith.addf %150, %149 : vector<2x128xf32>
      %152 = arith.divf %150, %151 : vector<2x128xf32>
      %153 = vector.extract_strided_slice %133 {offsets = [0, 256], sizes = [2, 128], strides = [1, 1]} : vector<2x384xf32> to vector<2x128xf32>
      %154 = vector.extract_strided_slice %136 {offsets = [0, 256], sizes = [2, 128], strides = [1, 1]} : vector<2x384xf32> to vector<2x128xf32>
      %155 = arith.addf %154, %6 : vector<2x128xf32>
      %156 = arith.mulf %144, %155 : vector<2x128xf32>
      %157 = arith.addf %153, %156 : vector<2x128xf32>
      %158 = math.tanh %157 : vector<2x128xf32>
      %cst_64 = arith.constant 1.000000e+00 : f32
      %159 = vector.broadcast %cst_64 : f32 to vector<2x128xf32>
      %160 = arith.subf %159, %152 : vector<2x128xf32>
      %161 = arith.mulf %160, %158 : vector<2x128xf32>
      %162 = arith.mulf %152, %130 : vector<2x128xf32>
      %163 = arith.addf %161, %162 : vector<2x128xf32>
      %c0_65 = arith.constant 0 : index
      %c0_66 = arith.constant 0 : index
      %164 = vector.load %arg6[%c0_65, %c0_66] : memref<2x128xf32, #tpu.memory_space<vmem>>, vector<2x128xf32>
      tpu.vector_store %arg6[%c0_65, %c0_66], %163 {strides = array<i32>} : memref<2x128xf32, #tpu.memory_space<vmem>>, vector<2x128xf32>,
      %165 = arith.truncf %163 : vector<2x128xf32> to vector<2x128xbf16>
      %c3_67 = arith.constant 3 : index
      %c0_68 = arith.constant 0 : index
      %c0_69 = arith.constant 0 : index
      %166 = vector.load %arg5[%c3_67, %c0_68, %c0_69] : memref<8x2x128xbf16, #tpu.memory_space<vmem>>, vector<1x2x128xbf16>
      %167 = vector.shape_cast %166 : vector<1x2x128xbf16> to vector<2x128xbf16>
      %168 = vector.shape_cast %165 : vector<2x128xbf16> to vector<1x2x128xbf16>
      tpu.vector_store %arg5[%c3_67, %c0_68, %c0_69], %168 {strides = array<i32>} : memref<8x2x128xbf16, #tpu.memory_space<vmem>>, vector<1x2x128xbf16>,
      %c0_70 = arith.constant 0 : index
      %c0_71 = arith.constant 0 : index
      %169 = vector.load %arg6[%c0_70, %c0_71] : memref<2x128xf32, #tpu.memory_space<vmem>>, vector<2x128xf32>
      %c4 = arith.constant 4 : index
      %c0_72 = arith.constant 0 : index
      %c0_73 = arith.constant 0 : index
      %170 = vector.load %arg2[%c4, %c0_72, %c0_73] : memref<8x2x384xbf16, #tpu.memory_space<vmem>>, vector<1x2x384xbf16>
      %171 = vector.shape_cast %170 : vector<1x2x384xbf16> to vector<2x384xbf16>
      %172 = arith.extf %171 : vector<2x384xbf16> to vector<2x384xf32>
      %c0_74 = arith.constant 0 : index
      %c0_75 = arith.constant 0 : index
      %c0_76 = arith.constant 0 : index
      %173 = vector.load %arg3[%c0_74, %c0_75, %c0_76] : memref<1x128x384xf32, #tpu.memory_space<vmem>>, vector<1x128x384xf32>
      %174 = vector.shape_cast %173 : vector<1x128x384xf32> to vector<128x384xf32>
      %cst_77 = arith.constant dense<0.000000e+00> : vector<2x384xf32>
      %175 = tpu.matmul %169, %174, %cst_77 {dimension_numbers = #tpu.dot_dimension_numbers<[1], [0], [0], [1], [0, 0, 1, 1], [], []>} : vector<2x128xf32>, vector<128x384xf32>, vector<2x384xf32> -> vector<2x384xf32>
      %176 = vector.extract_strided_slice %172 {offsets = [0, 0], sizes = [2, 128], strides = [1, 1]} : vector<2x384xf32> to vector<2x128xf32>
      %177 = vector.extract_strided_slice %175 {offsets = [0, 0], sizes = [2, 128], strides = [1, 1]} : vector<2x384xf32> to vector<2x128xf32>
      %178 = arith.addf %176, %177 : vector<2x128xf32>
      %179 = arith.negf %178 : vector<2x128xf32>
      %180 = math.exp %179 : vector<2x128xf32>
      %cst_78 = arith.constant 1.000000e+00 : f32
      %181 = vector.broadcast %cst_78 : f32 to vector<2x128xf32>
      %182 = arith.addf %181, %180 : vector<2x128xf32>
      %183 = arith.divf %181, %182 : vector<2x128xf32>
      %184 = vector.extract_strided_slice %172 {offsets = [0, 128], sizes = [2, 128], strides = [1, 1]} : vector<2x384xf32> to vector<2x128xf32>
      %185 = vector.extract_strided_slice %175 {offsets = [0, 128], sizes = [2, 128], strides = [1, 1]} : vector<2x384xf32> to vector<2x128xf32>
      %186 = arith.addf %184, %185 : vector<2x128xf32>
      %187 = arith.negf %186 : vector<2x128xf32>
      %188 = math.exp %187 : vector<2x128xf32>
      %cst_79 = arith.constant 1.000000e+00 : f32
      %189 = vector.broadcast %cst_79 : f32 to vector<2x128xf32>
      %190 = arith.addf %189, %188 : vector<2x128xf32>
      %191 = arith.divf %189, %190 : vector<2x128xf32>
      %192 = vector.extract_strided_slice %172 {offsets = [0, 256], sizes = [2, 128], strides = [1, 1]} : vector<2x384xf32> to vector<2x128xf32>
      %193 = vector.extract_strided_slice %175 {offsets = [0, 256], sizes = [2, 128], strides = [1, 1]} : vector<2x384xf32> to vector<2x128xf32>
      %194 = arith.addf %193, %6 : vector<2x128xf32>
      %195 = arith.mulf %183, %194 : vector<2x128xf32>
      %196 = arith.addf %192, %195 : vector<2x128xf32>
      %197 = math.tanh %196 : vector<2x128xf32>
      %cst_80 = arith.constant 1.000000e+00 : f32
      %198 = vector.broadcast %cst_80 : f32 to vector<2x128xf32>
      %199 = arith.subf %198, %191 : vector<2x128xf32>
      %200 = arith.mulf %199, %197 : vector<2x128xf32>
      %201 = arith.mulf %191, %169 : vector<2x128xf32>
      %202 = arith.addf %200, %201 : vector<2x128xf32>
      %c0_81 = arith.constant 0 : index
      %c0_82 = arith.constant 0 : index
      %203 = vector.load %arg6[%c0_81, %c0_82] : memref<2x128xf32, #tpu.memory_space<vmem>>, vector<2x128xf32>
      tpu.vector_store %arg6[%c0_81, %c0_82], %202 {strides = array<i32>} : memref<2x128xf32, #tpu.memory_space<vmem>>, vector<2x128xf32>,
      %204 = arith.truncf %202 : vector<2x128xf32> to vector<2x128xbf16>
      %c4_83 = arith.constant 4 : index
      %c0_84 = arith.constant 0 : index
      %c0_85 = arith.constant 0 : index
      %205 = vector.load %arg5[%c4_83, %c0_84, %c0_85] : memref<8x2x128xbf16, #tpu.memory_space<vmem>>, vector<1x2x128xbf16>
      %206 = vector.shape_cast %205 : vector<1x2x128xbf16> to vector<2x128xbf16>
      %207 = vector.shape_cast %204 : vector<2x128xbf16> to vector<1x2x128xbf16>
      tpu.vector_store %arg5[%c4_83, %c0_84, %c0_85], %207 {strides = array<i32>} : memref<8x2x128xbf16, #tpu.memory_space<vmem>>, vector<1x2x128xbf16>,
      %c0_86 = arith.constant 0 : index
      %c0_87 = arith.constant 0 : index
      %208 = vector.load %arg6[%c0_86, %c0_87] : memref<2x128xf32, #tpu.memory_space<vmem>>, vector<2x128xf32>
      %c5 = arith.constant 5 : index
      %c0_88 = arith.constant 0 : index
      %c0_89 = arith.constant 0 : index
      %209 = vector.load %arg2[%c5, %c0_88, %c0_89] : memref<8x2x384xbf16, #tpu.memory_space<vmem>>, vector<1x2x384xbf16>
      %210 = vector.shape_cast %209 : vector<1x2x384xbf16> to vector<2x384xbf16>
      %211 = arith.extf %210 : vector<2x384xbf16> to vector<2x384xf32>
      %c0_90 = arith.constant 0 : index
      %c0_91 = arith.constant 0 : index
      %c0_92 = arith.constant 0 : index
      %212 = vector.load %arg3[%c0_90, %c0_91, %c0_92] : memref<1x128x384xf32, #tpu.memory_space<vmem>>, vector<1x128x384xf32>
      %213 = vector.shape_cast %212 : vector<1x128x384xf32> to vector<128x384xf32>
      %cst_93 = arith.constant dense<0.000000e+00> : vector<2x384xf32>
      %214 = tpu.matmul %208, %213, %cst_93 {dimension_numbers = #tpu.dot_dimension_numbers<[1], [0], [0], [1], [0, 0, 1, 1], [], []>} : vector<2x128xf32>, vector<128x384xf32>, vector<2x384xf32> -> vector<2x384xf32>
      %215 = vector.extract_strided_slice %211 {offsets = [0, 0], sizes = [2, 128], strides = [1, 1]} : vector<2x384xf32> to vector<2x128xf32>
      %216 = vector.extract_strided_slice %214 {offsets = [0, 0], sizes = [2, 128], strides = [1, 1]} : vector<2x384xf32> to vector<2x128xf32>
      %217 = arith.addf %215, %216 : vector<2x128xf32>
      %218 = arith.negf %217 : vector<2x128xf32>
      %219 = math.exp %218 : vector<2x128xf32>
      %cst_94 = arith.constant 1.000000e+00 : f32
      %220 = vector.broadcast %cst_94 : f32 to vector<2x128xf32>
      %221 = arith.addf %220, %219 : vector<2x128xf32>
      %222 = arith.divf %220, %221 : vector<2x128xf32>
      %223 = vector.extract_strided_slice %211 {offsets = [0, 128], sizes = [2, 128], strides = [1, 1]} : vector<2x384xf32> to vector<2x128xf32>
      %224 = vector.extract_strided_slice %214 {offsets = [0, 128], sizes = [2, 128], strides = [1, 1]} : vector<2x384xf32> to vector<2x128xf32>
      %225 = arith.addf %223, %224 : vector<2x128xf32>
      %226 = arith.negf %225 : vector<2x128xf32>
      %227 = math.exp %226 : vector<2x128xf32>
      %cst_95 = arith.constant 1.000000e+00 : f32
      %228 = vector.broadcast %cst_95 : f32 to vector<2x128xf32>
      %229 = arith.addf %228, %227 : vector<2x128xf32>
      %230 = arith.divf %228, %229 : vector<2x128xf32>
      %231 = vector.extract_strided_slice %211 {offsets = [0, 256], sizes = [2, 128], strides = [1, 1]} : vector<2x384xf32> to vector<2x128xf32>
      %232 = vector.extract_strided_slice %214 {offsets = [0, 256], sizes = [2, 128], strides = [1, 1]} : vector<2x384xf32> to vector<2x128xf32>
      %233 = arith.addf %232, %6 : vector<2x128xf32>
      %234 = arith.mulf %222, %233 : vector<2x128xf32>
      %235 = arith.addf %231, %234 : vector<2x128xf32>
      %236 = math.tanh %235 : vector<2x128xf32>
      %cst_96 = arith.constant 1.000000e+00 : f32
      %237 = vector.broadcast %cst_96 : f32 to vector<2x128xf32>
      %238 = arith.subf %237, %230 : vector<2x128xf32>
      %239 = arith.mulf %238, %236 : vector<2x128xf32>
      %240 = arith.mulf %230, %208 : vector<2x128xf32>
      %241 = arith.addf %239, %240 : vector<2x128xf32>
      %c0_97 = arith.constant 0 : index
      %c0_98 = arith.constant 0 : index
      %242 = vector.load %arg6[%c0_97, %c0_98] : memref<2x128xf32, #tpu.memory_space<vmem>>, vector<2x128xf32>
      tpu.vector_store %arg6[%c0_97, %c0_98], %241 {strides = array<i32>} : memref<2x128xf32, #tpu.memory_space<vmem>>, vector<2x128xf32>,
      %243 = arith.truncf %241 : vector<2x128xf32> to vector<2x128xbf16>
      %c5_99 = arith.constant 5 : index
      %c0_100 = arith.constant 0 : index
      %c0_101 = arith.constant 0 : index
      %244 = vector.load %arg5[%c5_99, %c0_100, %c0_101] : memref<8x2x128xbf16, #tpu.memory_space<vmem>>, vector<1x2x128xbf16>
      %245 = vector.shape_cast %244 : vector<1x2x128xbf16> to vector<2x128xbf16>
      %246 = vector.shape_cast %243 : vector<2x128xbf16> to vector<1x2x128xbf16>
      tpu.vector_store %arg5[%c5_99, %c0_100, %c0_101], %246 {strides = array<i32>} : memref<8x2x128xbf16, #tpu.memory_space<vmem>>, vector<1x2x128xbf16>,
      %c0_102 = arith.constant 0 : index
      %c0_103 = arith.constant 0 : index
      %247 = vector.load %arg6[%c0_102, %c0_103] : memref<2x128xf32, #tpu.memory_space<vmem>>, vector<2x128xf32>
      %c6 = arith.constant 6 : index
      %c0_104 = arith.constant 0 : index
      %c0_105 = arith.constant 0 : index
      %248 = vector.load %arg2[%c6, %c0_104, %c0_105] : memref<8x2x384xbf16, #tpu.memory_space<vmem>>, vector<1x2x384xbf16>
      %249 = vector.shape_cast %248 : vector<1x2x384xbf16> to vector<2x384xbf16>
      %250 = arith.extf %249 : vector<2x384xbf16> to vector<2x384xf32>
      %c0_106 = arith.constant 0 : index
      %c0_107 = arith.constant 0 : index
      %c0_108 = arith.constant 0 : index
      %251 = vector.load %arg3[%c0_106, %c0_107, %c0_108] : memref<1x128x384xf32, #tpu.memory_space<vmem>>, vector<1x128x384xf32>
      %252 = vector.shape_cast %251 : vector<1x128x384xf32> to vector<128x384xf32>
      %cst_109 = arith.constant dense<0.000000e+00> : vector<2x384xf32>
      %253 = tpu.matmul %247, %252, %cst_109 {dimension_numbers = #tpu.dot_dimension_numbers<[1], [0], [0], [1], [0, 0, 1, 1], [], []>} : vector<2x128xf32>, vector<128x384xf32>, vector<2x384xf32> -> vector<2x384xf32>
      %254 = vector.extract_strided_slice %250 {offsets = [0, 0], sizes = [2, 128], strides = [1, 1]} : vector<2x384xf32> to vector<2x128xf32>
      %255 = vector.extract_strided_slice %253 {offsets = [0, 0], sizes = [2, 128], strides = [1, 1]} : vector<2x384xf32> to vector<2x128xf32>
      %256 = arith.addf %254, %255 : vector<2x128xf32>
      %257 = arith.negf %256 : vector<2x128xf32>
      %258 = math.exp %257 : vector<2x128xf32>
      %cst_110 = arith.constant 1.000000e+00 : f32
      %259 = vector.broadcast %cst_110 : f32 to vector<2x128xf32>
      %260 = arith.addf %259, %258 : vector<2x128xf32>
      %261 = arith.divf %259, %260 : vector<2x128xf32>
      %262 = vector.extract_strided_slice %250 {offsets = [0, 128], sizes = [2, 128], strides = [1, 1]} : vector<2x384xf32> to vector<2x128xf32>
      %263 = vector.extract_strided_slice %253 {offsets = [0, 128], sizes = [2, 128], strides = [1, 1]} : vector<2x384xf32> to vector<2x128xf32>
      %264 = arith.addf %262, %263 : vector<2x128xf32>
      %265 = arith.negf %264 : vector<2x128xf32>
      %266 = math.exp %265 : vector<2x128xf32>
      %cst_111 = arith.constant 1.000000e+00 : f32
      %267 = vector.broadcast %cst_111 : f32 to vector<2x128xf32>
      %268 = arith.addf %267, %266 : vector<2x128xf32>
      %269 = arith.divf %267, %268 : vector<2x128xf32>
      %270 = vector.extract_strided_slice %250 {offsets = [0, 256], sizes = [2, 128], strides = [1, 1]} : vector<2x384xf32> to vector<2x128xf32>
      %271 = vector.extract_strided_slice %253 {offsets = [0, 256], sizes = [2, 128], strides = [1, 1]} : vector<2x384xf32> to vector<2x128xf32>
      %272 = arith.addf %271, %6 : vector<2x128xf32>
      %273 = arith.mulf %261, %272 : vector<2x128xf32>
      %274 = arith.addf %270, %273 : vector<2x128xf32>
      %275 = math.tanh %274 : vector<2x128xf32>
      %cst_112 = arith.constant 1.000000e+00 : f32
      %276 = vector.broadcast %cst_112 : f32 to vector<2x128xf32>
      %277 = arith.subf %276, %269 : vector<2x128xf32>
      %278 = arith.mulf %277, %275 : vector<2x128xf32>
      %279 = arith.mulf %269, %247 : vector<2x128xf32>
      %280 = arith.addf %278, %279 : vector<2x128xf32>
      %c0_113 = arith.constant 0 : index
      %c0_114 = arith.constant 0 : index
      %281 = vector.load %arg6[%c0_113, %c0_114] : memref<2x128xf32, #tpu.memory_space<vmem>>, vector<2x128xf32>
      tpu.vector_store %arg6[%c0_113, %c0_114], %280 {strides = array<i32>} : memref<2x128xf32, #tpu.memory_space<vmem>>, vector<2x128xf32>,
      %282 = arith.truncf %280 : vector<2x128xf32> to vector<2x128xbf16>
      %c6_115 = arith.constant 6 : index
      %c0_116 = arith.constant 0 : index
      %c0_117 = arith.constant 0 : index
      %283 = vector.load %arg5[%c6_115, %c0_116, %c0_117] : memref<8x2x128xbf16, #tpu.memory_space<vmem>>, vector<1x2x128xbf16>
      %284 = vector.shape_cast %283 : vector<1x2x128xbf16> to vector<2x128xbf16>
      %285 = vector.shape_cast %282 : vector<2x128xbf16> to vector<1x2x128xbf16>
      tpu.vector_store %arg5[%c6_115, %c0_116, %c0_117], %285 {strides = array<i32>} : memref<8x2x128xbf16, #tpu.memory_space<vmem>>, vector<1x2x128xbf16>,
      %c0_118 = arith.constant 0 : index
      %c0_119 = arith.constant 0 : index
      %286 = vector.load %arg6[%c0_118, %c0_119] : memref<2x128xf32, #tpu.memory_space<vmem>>, vector<2x128xf32>
      %c7 = arith.constant 7 : index
      %c0_120 = arith.constant 0 : index
      %c0_121 = arith.constant 0 : index
      %287 = vector.load %arg2[%c7, %c0_120, %c0_121] : memref<8x2x384xbf16, #tpu.memory_space<vmem>>, vector<1x2x384xbf16>
      %288 = vector.shape_cast %287 : vector<1x2x384xbf16> to vector<2x384xbf16>
      %289 = arith.extf %288 : vector<2x384xbf16> to vector<2x384xf32>
      %c0_122 = arith.constant 0 : index
      %c0_123 = arith.constant 0 : index
      %c0_124 = arith.constant 0 : index
      %290 = vector.load %arg3[%c0_122, %c0_123, %c0_124] : memref<1x128x384xf32, #tpu.memory_space<vmem>>, vector<1x128x384xf32>
      %291 = vector.shape_cast %290 : vector<1x128x384xf32> to vector<128x384xf32>
      %cst_125 = arith.constant dense<0.000000e+00> : vector<2x384xf32>
      %292 = tpu.matmul %286, %291, %cst_125 {dimension_numbers = #tpu.dot_dimension_numbers<[1], [0], [0], [1], [0, 0, 1, 1], [], []>} : vector<2x128xf32>, vector<128x384xf32>, vector<2x384xf32> -> vector<2x384xf32>
      %293 = vector.extract_strided_slice %289 {offsets = [0, 0], sizes = [2, 128], strides = [1, 1]} : vector<2x384xf32> to vector<2x128xf32>
      %294 = vector.extract_strided_slice %292 {offsets = [0, 0], sizes = [2, 128], strides = [1, 1]} : vector<2x384xf32> to vector<2x128xf32>
      %295 = arith.addf %293, %294 : vector<2x128xf32>
      %296 = arith.negf %295 : vector<2x128xf32>
      %297 = math.exp %296 : vector<2x128xf32>
      %cst_126 = arith.constant 1.000000e+00 : f32
      %298 = vector.broadcast %cst_126 : f32 to vector<2x128xf32>
      %299 = arith.addf %298, %297 : vector<2x128xf32>
      %300 = arith.divf %298, %299 : vector<2x128xf32>
      %301 = vector.extract_strided_slice %289 {offsets = [0, 128], sizes = [2, 128], strides = [1, 1]} : vector<2x384xf32> to vector<2x128xf32>
      %302 = vector.extract_strided_slice %292 {offsets = [0, 128], sizes = [2, 128], strides = [1, 1]} : vector<2x384xf32> to vector<2x128xf32>
      %303 = arith.addf %301, %302 : vector<2x128xf32>
      %304 = arith.negf %303 : vector<2x128xf32>
      %305 = math.exp %304 : vector<2x128xf32>
      %cst_127 = arith.constant 1.000000e+00 : f32
      %306 = vector.broadcast %cst_127 : f32 to vector<2x128xf32>
      %307 = arith.addf %306, %305 : vector<2x128xf32>
      %308 = arith.divf %306, %307 : vector<2x128xf32>
      %309 = vector.extract_strided_slice %289 {offsets = [0, 256], sizes = [2, 128], strides = [1, 1]} : vector<2x384xf32> to vector<2x128xf32>
      %310 = vector.extract_strided_slice %292 {offsets = [0, 256], sizes = [2, 128], strides = [1, 1]} : vector<2x384xf32> to vector<2x128xf32>
      %311 = arith.addf %310, %6 : vector<2x128xf32>
      %312 = arith.mulf %300, %311 : vector<2x128xf32>
      %313 = arith.addf %309, %312 : vector<2x128xf32>
      %314 = math.tanh %313 : vector<2x128xf32>
      %cst_128 = arith.constant 1.000000e+00 : f32
      %315 = vector.broadcast %cst_128 : f32 to vector<2x128xf32>
      %316 = arith.subf %315, %308 : vector<2x128xf32>
      %317 = arith.mulf %316, %314 : vector<2x128xf32>
      %318 = arith.mulf %308, %286 : vector<2x128xf32>
      %319 = arith.addf %317, %318 : vector<2x128xf32>
      %c0_129 = arith.constant 0 : index
      %c0_130 = arith.constant 0 : index
      %320 = vector.load %arg6[%c0_129, %c0_130] : memref<2x128xf32, #tpu.memory_space<vmem>>, vector<2x128xf32>
      tpu.vector_store %arg6[%c0_129, %c0_130], %319 {strides = array<i32>} : memref<2x128xf32, #tpu.memory_space<vmem>>, vector<2x128xf32>,
      %321 = arith.truncf %319 : vector<2x128xf32> to vector<2x128xbf16>
      %c7_131 = arith.constant 7 : index
      %c0_132 = arith.constant 0 : index
      %c0_133 = arith.constant 0 : index
      %322 = vector.load %arg5[%c7_131, %c0_132, %c0_133] : memref<8x2x128xbf16, #tpu.memory_space<vmem>>, vector<1x2x128xbf16>
      %323 = vector.shape_cast %322 : vector<1x2x128xbf16> to vector<2x128xbf16>
      %324 = vector.shape_cast %321 : vector<2x128xbf16> to vector<1x2x128xbf16>
      tpu.vector_store %arg5[%c7_131, %c0_132, %c0_133], %324 {strides = array<i32>} : memref<8x2x128xbf16, #tpu.memory_space<vmem>>, vector<1x2x128xbf16>,
    } else {
    }
    %c1_i32 = arith.constant 1 : i32
    %10 = arith.cmpi eq, %arg0, %c1_i32 : i32
    %11 = arith.extui %10 : i1 to i32
    %c0_i32_5 = arith.constant 0 : i32
    %12 = arith.cmpi ne, %11, %c0_i32_5 : i32
    scf.if %12 {
      %c0_6 = arith.constant 0 : index
      %c0_7 = arith.constant 0 : index
      %13 = vector.load %arg6[%c0_6, %c0_7] : memref<2x128xf32, #tpu.memory_space<vmem>>, vector<2x128xf32>
      %c7 = arith.constant 7 : index
      %c0_8 = arith.constant 0 : index
      %c0_9 = arith.constant 0 : index
      %14 = vector.load %arg2[%c7, %c0_8, %c0_9] : memref<8x2x384xbf16, #tpu.memory_space<vmem>>, vector<1x2x384xbf16>
      %15 = vector.shape_cast %14 : vector<1x2x384xbf16> to vector<2x384xbf16>
      %16 = arith.extf %15 : vector<2x384xbf16> to vector<2x384xf32>
      %c0_10 = arith.constant 0 : index
      %c0_11 = arith.constant 0 : index
      %c0_12 = arith.constant 0 : index
      %17 = vector.load %arg3[%c0_10, %c0_11, %c0_12] : memref<1x128x384xf32, #tpu.memory_space<vmem>>, vector<1x128x384xf32>
      %18 = vector.shape_cast %17 : vector<1x128x384xf32> to vector<128x384xf32>
      %cst = arith.constant dense<0.000000e+00> : vector<2x384xf32>
      %19 = tpu.matmul %13, %18, %cst {dimension_numbers = #tpu.dot_dimension_numbers<[1], [0], [0], [1], [0, 0, 1, 1], [], []>} : vector<2x128xf32>, vector<128x384xf32>, vector<2x384xf32> -> vector<2x384xf32>
      %20 = vector.extract_strided_slice %16 {offsets = [0, 0], sizes = [2, 128], strides = [1, 1]} : vector<2x384xf32> to vector<2x128xf32>
      %21 = vector.extract_strided_slice %19 {offsets = [0, 0], sizes = [2, 128], strides = [1, 1]} : vector<2x384xf32> to vector<2x128xf32>
      %22 = arith.addf %20, %21 : vector<2x128xf32>
      %23 = arith.negf %22 : vector<2x128xf32>
      %24 = math.exp %23 : vector<2x128xf32>
      %cst_13 = arith.constant 1.000000e+00 : f32
      %25 = vector.broadcast %cst_13 : f32 to vector<2x128xf32>
      %26 = arith.addf %25, %24 : vector<2x128xf32>
      %27 = arith.divf %25, %26 : vector<2x128xf32>
      %28 = vector.extract_strided_slice %16 {offsets = [0, 128], sizes = [2, 128], strides = [1, 1]} : vector<2x384xf32> to vector<2x128xf32>
      %29 = vector.extract_strided_slice %19 {offsets = [0, 128], sizes = [2, 128], strides = [1, 1]} : vector<2x384xf32> to vector<2x128xf32>
      %30 = arith.addf %28, %29 : vector<2x128xf32>
      %31 = arith.negf %30 : vector<2x128xf32>
      %32 = math.exp %31 : vector<2x128xf32>
      %cst_14 = arith.constant 1.000000e+00 : f32
      %33 = vector.broadcast %cst_14 : f32 to vector<2x128xf32>
      %34 = arith.addf %33, %32 : vector<2x128xf32>
      %35 = arith.divf %33, %34 : vector<2x128xf32>
      %36 = vector.extract_strided_slice %16 {offsets = [0, 256], sizes = [2, 128], strides = [1, 1]} : vector<2x384xf32> to vector<2x128xf32>
      %37 = vector.extract_strided_slice %19 {offsets = [0, 256], sizes = [2, 128], strides = [1, 1]} : vector<2x384xf32> to vector<2x128xf32>
      %38 = arith.addf %37, %6 : vector<2x128xf32>
      %39 = arith.mulf %27, %38 : vector<2x128xf32>
      %40 = arith.addf %36, %39 : vector<2x128xf32>
      %41 = math.tanh %40 : vector<2x128xf32>
      %cst_15 = arith.constant 1.000000e+00 : f32
      %42 = vector.broadcast %cst_15 : f32 to vector<2x128xf32>
      %43 = arith.subf %42, %35 : vector<2x128xf32>
      %44 = arith.mulf %43, %41 : vector<2x128xf32>
      %45 = arith.mulf %35, %13 : vector<2x128xf32>
      %46 = arith.addf %44, %45 : vector<2x128xf32>
      %c0_16 = arith.constant 0 : index
      %c0_17 = arith.constant 0 : index
      %47 = vector.load %arg6[%c0_16, %c0_17] : memref<2x128xf32, #tpu.memory_space<vmem>>, vector<2x128xf32>
      tpu.vector_store %arg6[%c0_16, %c0_17], %46 {strides = array<i32>} : memref<2x128xf32, #tpu.memory_space<vmem>>, vector<2x128xf32>,
      %48 = arith.truncf %46 : vector<2x128xf32> to vector<2x128xbf16>
      %c7_18 = arith.constant 7 : index
      %c0_19 = arith.constant 0 : index
      %c0_20 = arith.constant 0 : index
      %49 = vector.load %arg5[%c7_18, %c0_19, %c0_20] : memref<8x2x128xbf16, #tpu.memory_space<vmem>>, vector<1x2x128xbf16>
      %50 = vector.shape_cast %49 : vector<1x2x128xbf16> to vector<2x128xbf16>
      %51 = vector.shape_cast %48 : vector<2x128xbf16> to vector<1x2x128xbf16>
      tpu.vector_store %arg5[%c7_18, %c0_19, %c0_20], %51 {strides = array<i32>} : memref<8x2x128xbf16, #tpu.memory_space<vmem>>, vector<1x2x128xbf16>,
      %c0_21 = arith.constant 0 : index
      %c0_22 = arith.constant 0 : index
      %52 = vector.load %arg6[%c0_21, %c0_22] : memref<2x128xf32, #tpu.memory_space<vmem>>, vector<2x128xf32>
      %c6 = arith.constant 6 : index
      %c0_23 = arith.constant 0 : index
      %c0_24 = arith.constant 0 : index
      %53 = vector.load %arg2[%c6, %c0_23, %c0_24] : memref<8x2x384xbf16, #tpu.memory_space<vmem>>, vector<1x2x384xbf16>
      %54 = vector.shape_cast %53 : vector<1x2x384xbf16> to vector<2x384xbf16>
      %55 = arith.extf %54 : vector<2x384xbf16> to vector<2x384xf32>
      %c0_25 = arith.constant 0 : index
      %c0_26 = arith.constant 0 : index
      %c0_27 = arith.constant 0 : index
      %56 = vector.load %arg3[%c0_25, %c0_26, %c0_27] : memref<1x128x384xf32, #tpu.memory_space<vmem>>, vector<1x128x384xf32>
      %57 = vector.shape_cast %56 : vector<1x128x384xf32> to vector<128x384xf32>
      %cst_28 = arith.constant dense<0.000000e+00> : vector<2x384xf32>
      %58 = tpu.matmul %52, %57, %cst_28 {dimension_numbers = #tpu.dot_dimension_numbers<[1], [0], [0], [1], [0, 0, 1, 1], [], []>} : vector<2x128xf32>, vector<128x384xf32>, vector<2x384xf32> -> vector<2x384xf32>
      %59 = vector.extract_strided_slice %55 {offsets = [0, 0], sizes = [2, 128], strides = [1, 1]} : vector<2x384xf32> to vector<2x128xf32>
      %60 = vector.extract_strided_slice %58 {offsets = [0, 0], sizes = [2, 128], strides = [1, 1]} : vector<2x384xf32> to vector<2x128xf32>
      %61 = arith.addf %59, %60 : vector<2x128xf32>
      %62 = arith.negf %61 : vector<2x128xf32>
      %63 = math.exp %62 : vector<2x128xf32>
      %cst_29 = arith.constant 1.000000e+00 : f32
      %64 = vector.broadcast %cst_29 : f32 to vector<2x128xf32>
      %65 = arith.addf %64, %63 : vector<2x128xf32>
      %66 = arith.divf %64, %65 : vector<2x128xf32>
      %67 = vector.extract_strided_slice %55 {offsets = [0, 128], sizes = [2, 128], strides = [1, 1]} : vector<2x384xf32> to vector<2x128xf32>
      %68 = vector.extract_strided_slice %58 {offsets = [0, 128], sizes = [2, 128], strides = [1, 1]} : vector<2x384xf32> to vector<2x128xf32>
      %69 = arith.addf %67, %68 : vector<2x128xf32>
      %70 = arith.negf %69 : vector<2x128xf32>
      %71 = math.exp %70 : vector<2x128xf32>
      %cst_30 = arith.constant 1.000000e+00 : f32
      %72 = vector.broadcast %cst_30 : f32 to vector<2x128xf32>
      %73 = arith.addf %72, %71 : vector<2x128xf32>
      %74 = arith.divf %72, %73 : vector<2x128xf32>
      %75 = vector.extract_strided_slice %55 {offsets = [0, 256], sizes = [2, 128], strides = [1, 1]} : vector<2x384xf32> to vector<2x128xf32>
      %76 = vector.extract_strided_slice %58 {offsets = [0, 256], sizes = [2, 128], strides = [1, 1]} : vector<2x384xf32> to vector<2x128xf32>
      %77 = arith.addf %76, %6 : vector<2x128xf32>
      %78 = arith.mulf %66, %77 : vector<2x128xf32>
      %79 = arith.addf %75, %78 : vector<2x128xf32>
      %80 = math.tanh %79 : vector<2x128xf32>
      %cst_31 = arith.constant 1.000000e+00 : f32
      %81 = vector.broadcast %cst_31 : f32 to vector<2x128xf32>
      %82 = arith.subf %81, %74 : vector<2x128xf32>
      %83 = arith.mulf %82, %80 : vector<2x128xf32>
      %84 = arith.mulf %74, %52 : vector<2x128xf32>
      %85 = arith.addf %83, %84 : vector<2x128xf32>
      %c0_32 = arith.constant 0 : index
      %c0_33 = arith.constant 0 : index
      %86 = vector.load %arg6[%c0_32, %c0_33] : memref<2x128xf32, #tpu.memory_space<vmem>>, vector<2x128xf32>
      tpu.vector_store %arg6[%c0_32, %c0_33], %85 {strides = array<i32>} : memref<2x128xf32, #tpu.memory_space<vmem>>, vector<2x128xf32>,
      %87 = arith.truncf %85 : vector<2x128xf32> to vector<2x128xbf16>
      %c6_34 = arith.constant 6 : index
      %c0_35 = arith.constant 0 : index
      %c0_36 = arith.constant 0 : index
      %88 = vector.load %arg5[%c6_34, %c0_35, %c0_36] : memref<8x2x128xbf16, #tpu.memory_space<vmem>>, vector<1x2x128xbf16>
      %89 = vector.shape_cast %88 : vector<1x2x128xbf16> to vector<2x128xbf16>
      %90 = vector.shape_cast %87 : vector<2x128xbf16> to vector<1x2x128xbf16>
      tpu.vector_store %arg5[%c6_34, %c0_35, %c0_36], %90 {strides = array<i32>} : memref<8x2x128xbf16, #tpu.memory_space<vmem>>, vector<1x2x128xbf16>,
      %c0_37 = arith.constant 0 : index
      %c0_38 = arith.constant 0 : index
      %91 = vector.load %arg6[%c0_37, %c0_38] : memref<2x128xf32, #tpu.memory_space<vmem>>, vector<2x128xf32>
      %c5 = arith.constant 5 : index
      %c0_39 = arith.constant 0 : index
      %c0_40 = arith.constant 0 : index
      %92 = vector.load %arg2[%c5, %c0_39, %c0_40] : memref<8x2x384xbf16, #tpu.memory_space<vmem>>, vector<1x2x384xbf16>
      %93 = vector.shape_cast %92 : vector<1x2x384xbf16> to vector<2x384xbf16>
      %94 = arith.extf %93 : vector<2x384xbf16> to vector<2x384xf32>
      %c0_41 = arith.constant 0 : index
      %c0_42 = arith.constant 0 : index
      %c0_43 = arith.constant 0 : index
      %95 = vector.load %arg3[%c0_41, %c0_42, %c0_43] : memref<1x128x384xf32, #tpu.memory_space<vmem>>, vector<1x128x384xf32>
      %96 = vector.shape_cast %95 : vector<1x128x384xf32> to vector<128x384xf32>
      %cst_44 = arith.constant dense<0.000000e+00> : vector<2x384xf32>
      %97 = tpu.matmul %91, %96, %cst_44 {dimension_numbers = #tpu.dot_dimension_numbers<[1], [0], [0], [1], [0, 0, 1, 1], [], []>} : vector<2x128xf32>, vector<128x384xf32>, vector<2x384xf32> -> vector<2x384xf32>
      %98 = vector.extract_strided_slice %94 {offsets = [0, 0], sizes = [2, 128], strides = [1, 1]} : vector<2x384xf32> to vector<2x128xf32>
      %99 = vector.extract_strided_slice %97 {offsets = [0, 0], sizes = [2, 128], strides = [1, 1]} : vector<2x384xf32> to vector<2x128xf32>
      %100 = arith.addf %98, %99 : vector<2x128xf32>
      %101 = arith.negf %100 : vector<2x128xf32>
      %102 = math.exp %101 : vector<2x128xf32>
      %cst_45 = arith.constant 1.000000e+00 : f32
      %103 = vector.broadcast %cst_45 : f32 to vector<2x128xf32>
      %104 = arith.addf %103, %102 : vector<2x128xf32>
      %105 = arith.divf %103, %104 : vector<2x128xf32>
      %106 = vector.extract_strided_slice %94 {offsets = [0, 128], sizes = [2, 128], strides = [1, 1]} : vector<2x384xf32> to vector<2x128xf32>
      %107 = vector.extract_strided_slice %97 {offsets = [0, 128], sizes = [2, 128], strides = [1, 1]} : vector<2x384xf32> to vector<2x128xf32>
      %108 = arith.addf %106, %107 : vector<2x128xf32>
      %109 = arith.negf %108 : vector<2x128xf32>
      %110 = math.exp %109 : vector<2x128xf32>
      %cst_46 = arith.constant 1.000000e+00 : f32
      %111 = vector.broadcast %cst_46 : f32 to vector<2x128xf32>
      %112 = arith.addf %111, %110 : vector<2x128xf32>
      %113 = arith.divf %111, %112 : vector<2x128xf32>
      %114 = vector.extract_strided_slice %94 {offsets = [0, 256], sizes = [2, 128], strides = [1, 1]} : vector<2x384xf32> to vector<2x128xf32>
      %115 = vector.extract_strided_slice %97 {offsets = [0, 256], sizes = [2, 128], strides = [1, 1]} : vector<2x384xf32> to vector<2x128xf32>
      %116 = arith.addf %115, %6 : vector<2x128xf32>
      %117 = arith.mulf %105, %116 : vector<2x128xf32>
      %118 = arith.addf %114, %117 : vector<2x128xf32>
      %119 = math.tanh %118 : vector<2x128xf32>
      %cst_47 = arith.constant 1.000000e+00 : f32
      %120 = vector.broadcast %cst_47 : f32 to vector<2x128xf32>
      %121 = arith.subf %120, %113 : vector<2x128xf32>
      %122 = arith.mulf %121, %119 : vector<2x128xf32>
      %123 = arith.mulf %113, %91 : vector<2x128xf32>
      %124 = arith.addf %122, %123 : vector<2x128xf32>
      %c0_48 = arith.constant 0 : index
      %c0_49 = arith.constant 0 : index
      %125 = vector.load %arg6[%c0_48, %c0_49] : memref<2x128xf32, #tpu.memory_space<vmem>>, vector<2x128xf32>
      tpu.vector_store %arg6[%c0_48, %c0_49], %124 {strides = array<i32>} : memref<2x128xf32, #tpu.memory_space<vmem>>, vector<2x128xf32>,
      %126 = arith.truncf %124 : vector<2x128xf32> to vector<2x128xbf16>
      %c5_50 = arith.constant 5 : index
      %c0_51 = arith.constant 0 : index
      %c0_52 = arith.constant 0 : index
      %127 = vector.load %arg5[%c5_50, %c0_51, %c0_52] : memref<8x2x128xbf16, #tpu.memory_space<vmem>>, vector<1x2x128xbf16>
      %128 = vector.shape_cast %127 : vector<1x2x128xbf16> to vector<2x128xbf16>
      %129 = vector.shape_cast %126 : vector<2x128xbf16> to vector<1x2x128xbf16>
      tpu.vector_store %arg5[%c5_50, %c0_51, %c0_52], %129 {strides = array<i32>} : memref<8x2x128xbf16, #tpu.memory_space<vmem>>, vector<1x2x128xbf16>,
      %c0_53 = arith.constant 0 : index
      %c0_54 = arith.constant 0 : index
      %130 = vector.load %arg6[%c0_53, %c0_54] : memref<2x128xf32, #tpu.memory_space<vmem>>, vector<2x128xf32>
      %c4 = arith.constant 4 : index
      %c0_55 = arith.constant 0 : index
      %c0_56 = arith.constant 0 : index
      %131 = vector.load %arg2[%c4, %c0_55, %c0_56] : memref<8x2x384xbf16, #tpu.memory_space<vmem>>, vector<1x2x384xbf16>
      %132 = vector.shape_cast %131 : vector<1x2x384xbf16> to vector<2x384xbf16>
      %133 = arith.extf %132 : vector<2x384xbf16> to vector<2x384xf32>
      %c0_57 = arith.constant 0 : index
      %c0_58 = arith.constant 0 : index
      %c0_59 = arith.constant 0 : index
      %134 = vector.load %arg3[%c0_57, %c0_58, %c0_59] : memref<1x128x384xf32, #tpu.memory_space<vmem>>, vector<1x128x384xf32>
      %135 = vector.shape_cast %134 : vector<1x128x384xf32> to vector<128x384xf32>
      %cst_60 = arith.constant dense<0.000000e+00> : vector<2x384xf32>
      %136 = tpu.matmul %130, %135, %cst_60 {dimension_numbers = #tpu.dot_dimension_numbers<[1], [0], [0], [1], [0, 0, 1, 1], [], []>} : vector<2x128xf32>, vector<128x384xf32>, vector<2x384xf32> -> vector<2x384xf32>
      %137 = vector.extract_strided_slice %133 {offsets = [0, 0], sizes = [2, 128], strides = [1, 1]} : vector<2x384xf32> to vector<2x128xf32>
      %138 = vector.extract_strided_slice %136 {offsets = [0, 0], sizes = [2, 128], strides = [1, 1]} : vector<2x384xf32> to vector<2x128xf32>
      %139 = arith.addf %137, %138 : vector<2x128xf32>
      %140 = arith.negf %139 : vector<2x128xf32>
      %141 = math.exp %140 : vector<2x128xf32>
      %cst_61 = arith.constant 1.000000e+00 : f32
      %142 = vector.broadcast %cst_61 : f32 to vector<2x128xf32>
      %143 = arith.addf %142, %141 : vector<2x128xf32>
      %144 = arith.divf %142, %143 : vector<2x128xf32>
      %145 = vector.extract_strided_slice %133 {offsets = [0, 128], sizes = [2, 128], strides = [1, 1]} : vector<2x384xf32> to vector<2x128xf32>
      %146 = vector.extract_strided_slice %136 {offsets = [0, 128], sizes = [2, 128], strides = [1, 1]} : vector<2x384xf32> to vector<2x128xf32>
      %147 = arith.addf %145, %146 : vector<2x128xf32>
      %148 = arith.negf %147 : vector<2x128xf32>
      %149 = math.exp %148 : vector<2x128xf32>
      %cst_62 = arith.constant 1.000000e+00 : f32
      %150 = vector.broadcast %cst_62 : f32 to vector<2x128xf32>
      %151 = arith.addf %150, %149 : vector<2x128xf32>
      %152 = arith.divf %150, %151 : vector<2x128xf32>
      %153 = vector.extract_strided_slice %133 {offsets = [0, 256], sizes = [2, 128], strides = [1, 1]} : vector<2x384xf32> to vector<2x128xf32>
      %154 = vector.extract_strided_slice %136 {offsets = [0, 256], sizes = [2, 128], strides = [1, 1]} : vector<2x384xf32> to vector<2x128xf32>
      %155 = arith.addf %154, %6 : vector<2x128xf32>
      %156 = arith.mulf %144, %155 : vector<2x128xf32>
      %157 = arith.addf %153, %156 : vector<2x128xf32>
      %158 = math.tanh %157 : vector<2x128xf32>
      %cst_63 = arith.constant 1.000000e+00 : f32
      %159 = vector.broadcast %cst_63 : f32 to vector<2x128xf32>
      %160 = arith.subf %159, %152 : vector<2x128xf32>
      %161 = arith.mulf %160, %158 : vector<2x128xf32>
      %162 = arith.mulf %152, %130 : vector<2x128xf32>
      %163 = arith.addf %161, %162 : vector<2x128xf32>
      %c0_64 = arith.constant 0 : index
      %c0_65 = arith.constant 0 : index
      %164 = vector.load %arg6[%c0_64, %c0_65] : memref<2x128xf32, #tpu.memory_space<vmem>>, vector<2x128xf32>
      tpu.vector_store %arg6[%c0_64, %c0_65], %163 {strides = array<i32>} : memref<2x128xf32, #tpu.memory_space<vmem>>, vector<2x128xf32>,
      %165 = arith.truncf %163 : vector<2x128xf32> to vector<2x128xbf16>
      %c4_66 = arith.constant 4 : index
      %c0_67 = arith.constant 0 : index
      %c0_68 = arith.constant 0 : index
      %166 = vector.load %arg5[%c4_66, %c0_67, %c0_68] : memref<8x2x128xbf16, #tpu.memory_space<vmem>>, vector<1x2x128xbf16>
      %167 = vector.shape_cast %166 : vector<1x2x128xbf16> to vector<2x128xbf16>
      %168 = vector.shape_cast %165 : vector<2x128xbf16> to vector<1x2x128xbf16>
      tpu.vector_store %arg5[%c4_66, %c0_67, %c0_68], %168 {strides = array<i32>} : memref<8x2x128xbf16, #tpu.memory_space<vmem>>, vector<1x2x128xbf16>,
      %c0_69 = arith.constant 0 : index
      %c0_70 = arith.constant 0 : index
      %169 = vector.load %arg6[%c0_69, %c0_70] : memref<2x128xf32, #tpu.memory_space<vmem>>, vector<2x128xf32>
      %c3 = arith.constant 3 : index
      %c0_71 = arith.constant 0 : index
      %c0_72 = arith.constant 0 : index
      %170 = vector.load %arg2[%c3, %c0_71, %c0_72] : memref<8x2x384xbf16, #tpu.memory_space<vmem>>, vector<1x2x384xbf16>
      %171 = vector.shape_cast %170 : vector<1x2x384xbf16> to vector<2x384xbf16>
      %172 = arith.extf %171 : vector<2x384xbf16> to vector<2x384xf32>
      %c0_73 = arith.constant 0 : index
      %c0_74 = arith.constant 0 : index
      %c0_75 = arith.constant 0 : index
      %173 = vector.load %arg3[%c0_73, %c0_74, %c0_75] : memref<1x128x384xf32, #tpu.memory_space<vmem>>, vector<1x128x384xf32>
      %174 = vector.shape_cast %173 : vector<1x128x384xf32> to vector<128x384xf32>
      %cst_76 = arith.constant dense<0.000000e+00> : vector<2x384xf32>
      %175 = tpu.matmul %169, %174, %cst_76 {dimension_numbers = #tpu.dot_dimension_numbers<[1], [0], [0], [1], [0, 0, 1, 1], [], []>} : vector<2x128xf32>, vector<128x384xf32>, vector<2x384xf32> -> vector<2x384xf32>
      %176 = vector.extract_strided_slice %172 {offsets = [0, 0], sizes = [2, 128], strides = [1, 1]} : vector<2x384xf32> to vector<2x128xf32>
      %177 = vector.extract_strided_slice %175 {offsets = [0, 0], sizes = [2, 128], strides = [1, 1]} : vector<2x384xf32> to vector<2x128xf32>
      %178 = arith.addf %176, %177 : vector<2x128xf32>
      %179 = arith.negf %178 : vector<2x128xf32>
      %180 = math.exp %179 : vector<2x128xf32>
      %cst_77 = arith.constant 1.000000e+00 : f32
      %181 = vector.broadcast %cst_77 : f32 to vector<2x128xf32>
      %182 = arith.addf %181, %180 : vector<2x128xf32>
      %183 = arith.divf %181, %182 : vector<2x128xf32>
      %184 = vector.extract_strided_slice %172 {offsets = [0, 128], sizes = [2, 128], strides = [1, 1]} : vector<2x384xf32> to vector<2x128xf32>
      %185 = vector.extract_strided_slice %175 {offsets = [0, 128], sizes = [2, 128], strides = [1, 1]} : vector<2x384xf32> to vector<2x128xf32>
      %186 = arith.addf %184, %185 : vector<2x128xf32>
      %187 = arith.negf %186 : vector<2x128xf32>
      %188 = math.exp %187 : vector<2x128xf32>
      %cst_78 = arith.constant 1.000000e+00 : f32
      %189 = vector.broadcast %cst_78 : f32 to vector<2x128xf32>
      %190 = arith.addf %189, %188 : vector<2x128xf32>
      %191 = arith.divf %189, %190 : vector<2x128xf32>
      %192 = vector.extract_strided_slice %172 {offsets = [0, 256], sizes = [2, 128], strides = [1, 1]} : vector<2x384xf32> to vector<2x128xf32>
      %193 = vector.extract_strided_slice %175 {offsets = [0, 256], sizes = [2, 128], strides = [1, 1]} : vector<2x384xf32> to vector<2x128xf32>
      %194 = arith.addf %193, %6 : vector<2x128xf32>
      %195 = arith.mulf %183, %194 : vector<2x128xf32>
      %196 = arith.addf %192, %195 : vector<2x128xf32>
      %197 = math.tanh %196 : vector<2x128xf32>
      %cst_79 = arith.constant 1.000000e+00 : f32
      %198 = vector.broadcast %cst_79 : f32 to vector<2x128xf32>
      %199 = arith.subf %198, %191 : vector<2x128xf32>
      %200 = arith.mulf %199, %197 : vector<2x128xf32>
      %201 = arith.mulf %191, %169 : vector<2x128xf32>
      %202 = arith.addf %200, %201 : vector<2x128xf32>
      %c0_80 = arith.constant 0 : index
      %c0_81 = arith.constant 0 : index
      %203 = vector.load %arg6[%c0_80, %c0_81] : memref<2x128xf32, #tpu.memory_space<vmem>>, vector<2x128xf32>
      tpu.vector_store %arg6[%c0_80, %c0_81], %202 {strides = array<i32>} : memref<2x128xf32, #tpu.memory_space<vmem>>, vector<2x128xf32>,
      %204 = arith.truncf %202 : vector<2x128xf32> to vector<2x128xbf16>
      %c3_82 = arith.constant 3 : index
      %c0_83 = arith.constant 0 : index
      %c0_84 = arith.constant 0 : index
      %205 = vector.load %arg5[%c3_82, %c0_83, %c0_84] : memref<8x2x128xbf16, #tpu.memory_space<vmem>>, vector<1x2x128xbf16>
      %206 = vector.shape_cast %205 : vector<1x2x128xbf16> to vector<2x128xbf16>
      %207 = vector.shape_cast %204 : vector<2x128xbf16> to vector<1x2x128xbf16>
      tpu.vector_store %arg5[%c3_82, %c0_83, %c0_84], %207 {strides = array<i32>} : memref<8x2x128xbf16, #tpu.memory_space<vmem>>, vector<1x2x128xbf16>,
      %c0_85 = arith.constant 0 : index
      %c0_86 = arith.constant 0 : index
      %208 = vector.load %arg6[%c0_85, %c0_86] : memref<2x128xf32, #tpu.memory_space<vmem>>, vector<2x128xf32>
      %c2 = arith.constant 2 : index
      %c0_87 = arith.constant 0 : index
      %c0_88 = arith.constant 0 : index
      %209 = vector.load %arg2[%c2, %c0_87, %c0_88] : memref<8x2x384xbf16, #tpu.memory_space<vmem>>, vector<1x2x384xbf16>
      %210 = vector.shape_cast %209 : vector<1x2x384xbf16> to vector<2x384xbf16>
      %211 = arith.extf %210 : vector<2x384xbf16> to vector<2x384xf32>
      %c0_89 = arith.constant 0 : index
      %c0_90 = arith.constant 0 : index
      %c0_91 = arith.constant 0 : index
      %212 = vector.load %arg3[%c0_89, %c0_90, %c0_91] : memref<1x128x384xf32, #tpu.memory_space<vmem>>, vector<1x128x384xf32>
      %213 = vector.shape_cast %212 : vector<1x128x384xf32> to vector<128x384xf32>
      %cst_92 = arith.constant dense<0.000000e+00> : vector<2x384xf32>
      %214 = tpu.matmul %208, %213, %cst_92 {dimension_numbers = #tpu.dot_dimension_numbers<[1], [0], [0], [1], [0, 0, 1, 1], [], []>} : vector<2x128xf32>, vector<128x384xf32>, vector<2x384xf32> -> vector<2x384xf32>
      %215 = vector.extract_strided_slice %211 {offsets = [0, 0], sizes = [2, 128], strides = [1, 1]} : vector<2x384xf32> to vector<2x128xf32>
      %216 = vector.extract_strided_slice %214 {offsets = [0, 0], sizes = [2, 128], strides = [1, 1]} : vector<2x384xf32> to vector<2x128xf32>
      %217 = arith.addf %215, %216 : vector<2x128xf32>
      %218 = arith.negf %217 : vector<2x128xf32>
      %219 = math.exp %218 : vector<2x128xf32>
      %cst_93 = arith.constant 1.000000e+00 : f32
      %220 = vector.broadcast %cst_93 : f32 to vector<2x128xf32>
      %221 = arith.addf %220, %219 : vector<2x128xf32>
      %222 = arith.divf %220, %221 : vector<2x128xf32>
      %223 = vector.extract_strided_slice %211 {offsets = [0, 128], sizes = [2, 128], strides = [1, 1]} : vector<2x384xf32> to vector<2x128xf32>
      %224 = vector.extract_strided_slice %214 {offsets = [0, 128], sizes = [2, 128], strides = [1, 1]} : vector<2x384xf32> to vector<2x128xf32>
      %225 = arith.addf %223, %224 : vector<2x128xf32>
      %226 = arith.negf %225 : vector<2x128xf32>
      %227 = math.exp %226 : vector<2x128xf32>
      %cst_94 = arith.constant 1.000000e+00 : f32
      %228 = vector.broadcast %cst_94 : f32 to vector<2x128xf32>
      %229 = arith.addf %228, %227 : vector<2x128xf32>
      %230 = arith.divf %228, %229 : vector<2x128xf32>
      %231 = vector.extract_strided_slice %211 {offsets = [0, 256], sizes = [2, 128], strides = [1, 1]} : vector<2x384xf32> to vector<2x128xf32>
      %232 = vector.extract_strided_slice %214 {offsets = [0, 256], sizes = [2, 128], strides = [1, 1]} : vector<2x384xf32> to vector<2x128xf32>
      %233 = arith.addf %232, %6 : vector<2x128xf32>
      %234 = arith.mulf %222, %233 : vector<2x128xf32>
      %235 = arith.addf %231, %234 : vector<2x128xf32>
      %236 = math.tanh %235 : vector<2x128xf32>
      %cst_95 = arith.constant 1.000000e+00 : f32
      %237 = vector.broadcast %cst_95 : f32 to vector<2x128xf32>
      %238 = arith.subf %237, %230 : vector<2x128xf32>
      %239 = arith.mulf %238, %236 : vector<2x128xf32>
      %240 = arith.mulf %230, %208 : vector<2x128xf32>
      %241 = arith.addf %239, %240 : vector<2x128xf32>
      %c0_96 = arith.constant 0 : index
      %c0_97 = arith.constant 0 : index
      %242 = vector.load %arg6[%c0_96, %c0_97] : memref<2x128xf32, #tpu.memory_space<vmem>>, vector<2x128xf32>
      tpu.vector_store %arg6[%c0_96, %c0_97], %241 {strides = array<i32>} : memref<2x128xf32, #tpu.memory_space<vmem>>, vector<2x128xf32>,
      %243 = arith.truncf %241 : vector<2x128xf32> to vector<2x128xbf16>
      %c2_98 = arith.constant 2 : index
      %c0_99 = arith.constant 0 : index
      %c0_100 = arith.constant 0 : index
      %244 = vector.load %arg5[%c2_98, %c0_99, %c0_100] : memref<8x2x128xbf16, #tpu.memory_space<vmem>>, vector<1x2x128xbf16>
      %245 = vector.shape_cast %244 : vector<1x2x128xbf16> to vector<2x128xbf16>
      %246 = vector.shape_cast %243 : vector<2x128xbf16> to vector<1x2x128xbf16>
      tpu.vector_store %arg5[%c2_98, %c0_99, %c0_100], %246 {strides = array<i32>} : memref<8x2x128xbf16, #tpu.memory_space<vmem>>, vector<1x2x128xbf16>,
      %c0_101 = arith.constant 0 : index
      %c0_102 = arith.constant 0 : index
      %247 = vector.load %arg6[%c0_101, %c0_102] : memref<2x128xf32, #tpu.memory_space<vmem>>, vector<2x128xf32>
      %c1 = arith.constant 1 : index
      %c0_103 = arith.constant 0 : index
      %c0_104 = arith.constant 0 : index
      %248 = vector.load %arg2[%c1, %c0_103, %c0_104] : memref<8x2x384xbf16, #tpu.memory_space<vmem>>, vector<1x2x384xbf16>
      %249 = vector.shape_cast %248 : vector<1x2x384xbf16> to vector<2x384xbf16>
      %250 = arith.extf %249 : vector<2x384xbf16> to vector<2x384xf32>
      %c0_105 = arith.constant 0 : index
      %c0_106 = arith.constant 0 : index
      %c0_107 = arith.constant 0 : index
      %251 = vector.load %arg3[%c0_105, %c0_106, %c0_107] : memref<1x128x384xf32, #tpu.memory_space<vmem>>, vector<1x128x384xf32>
      %252 = vector.shape_cast %251 : vector<1x128x384xf32> to vector<128x384xf32>
      %cst_108 = arith.constant dense<0.000000e+00> : vector<2x384xf32>
      %253 = tpu.matmul %247, %252, %cst_108 {dimension_numbers = #tpu.dot_dimension_numbers<[1], [0], [0], [1], [0, 0, 1, 1], [], []>} : vector<2x128xf32>, vector<128x384xf32>, vector<2x384xf32> -> vector<2x384xf32>
      %254 = vector.extract_strided_slice %250 {offsets = [0, 0], sizes = [2, 128], strides = [1, 1]} : vector<2x384xf32> to vector<2x128xf32>
      %255 = vector.extract_strided_slice %253 {offsets = [0, 0], sizes = [2, 128], strides = [1, 1]} : vector<2x384xf32> to vector<2x128xf32>
      %256 = arith.addf %254, %255 : vector<2x128xf32>
      %257 = arith.negf %256 : vector<2x128xf32>
      %258 = math.exp %257 : vector<2x128xf32>
      %cst_109 = arith.constant 1.000000e+00 : f32
      %259 = vector.broadcast %cst_109 : f32 to vector<2x128xf32>
      %260 = arith.addf %259, %258 : vector<2x128xf32>
      %261 = arith.divf %259, %260 : vector<2x128xf32>
      %262 = vector.extract_strided_slice %250 {offsets = [0, 128], sizes = [2, 128], strides = [1, 1]} : vector<2x384xf32> to vector<2x128xf32>
      %263 = vector.extract_strided_slice %253 {offsets = [0, 128], sizes = [2, 128], strides = [1, 1]} : vector<2x384xf32> to vector<2x128xf32>
      %264 = arith.addf %262, %263 : vector<2x128xf32>
      %265 = arith.negf %264 : vector<2x128xf32>
      %266 = math.exp %265 : vector<2x128xf32>
      %cst_110 = arith.constant 1.000000e+00 : f32
      %267 = vector.broadcast %cst_110 : f32 to vector<2x128xf32>
      %268 = arith.addf %267, %266 : vector<2x128xf32>
      %269 = arith.divf %267, %268 : vector<2x128xf32>
      %270 = vector.extract_strided_slice %250 {offsets = [0, 256], sizes = [2, 128], strides = [1, 1]} : vector<2x384xf32> to vector<2x128xf32>
      %271 = vector.extract_strided_slice %253 {offsets = [0, 256], sizes = [2, 128], strides = [1, 1]} : vector<2x384xf32> to vector<2x128xf32>
      %272 = arith.addf %271, %6 : vector<2x128xf32>
      %273 = arith.mulf %261, %272 : vector<2x128xf32>
      %274 = arith.addf %270, %273 : vector<2x128xf32>
      %275 = math.tanh %274 : vector<2x128xf32>
      %cst_111 = arith.constant 1.000000e+00 : f32
      %276 = vector.broadcast %cst_111 : f32 to vector<2x128xf32>
      %277 = arith.subf %276, %269 : vector<2x128xf32>
      %278 = arith.mulf %277, %275 : vector<2x128xf32>
      %279 = arith.mulf %269, %247 : vector<2x128xf32>
      %280 = arith.addf %278, %279 : vector<2x128xf32>
      %c0_112 = arith.constant 0 : index
      %c0_113 = arith.constant 0 : index
      %281 = vector.load %arg6[%c0_112, %c0_113] : memref<2x128xf32, #tpu.memory_space<vmem>>, vector<2x128xf32>
      tpu.vector_store %arg6[%c0_112, %c0_113], %280 {strides = array<i32>} : memref<2x128xf32, #tpu.memory_space<vmem>>, vector<2x128xf32>,
      %282 = arith.truncf %280 : vector<2x128xf32> to vector<2x128xbf16>
      %c1_114 = arith.constant 1 : index
      %c0_115 = arith.constant 0 : index
      %c0_116 = arith.constant 0 : index
      %283 = vector.load %arg5[%c1_114, %c0_115, %c0_116] : memref<8x2x128xbf16, #tpu.memory_space<vmem>>, vector<1x2x128xbf16>
      %284 = vector.shape_cast %283 : vector<1x2x128xbf16> to vector<2x128xbf16>
      %285 = vector.shape_cast %282 : vector<2x128xbf16> to vector<1x2x128xbf16>
      tpu.vector_store %arg5[%c1_114, %c0_115, %c0_116], %285 {strides = array<i32>} : memref<8x2x128xbf16, #tpu.memory_space<vmem>>, vector<1x2x128xbf16>,
      %c0_117 = arith.constant 0 : index
      %c0_118 = arith.constant 0 : index
      %286 = vector.load %arg6[%c0_117, %c0_118] : memref<2x128xf32, #tpu.memory_space<vmem>>, vector<2x128xf32>
      %c0_119 = arith.constant 0 : index
      %c0_120 = arith.constant 0 : index
      %c0_121 = arith.constant 0 : index
      %287 = vector.load %arg2[%c0_119, %c0_120, %c0_121] : memref<8x2x384xbf16, #tpu.memory_space<vmem>>, vector<1x2x384xbf16>
      %288 = vector.shape_cast %287 : vector<1x2x384xbf16> to vector<2x384xbf16>
      %289 = arith.extf %288 : vector<2x384xbf16> to vector<2x384xf32>
      %c0_122 = arith.constant 0 : index
      %c0_123 = arith.constant 0 : index
      %c0_124 = arith.constant 0 : index
      %290 = vector.load %arg3[%c0_122, %c0_123, %c0_124] : memref<1x128x384xf32, #tpu.memory_space<vmem>>, vector<1x128x384xf32>
      %291 = vector.shape_cast %290 : vector<1x128x384xf32> to vector<128x384xf32>
      %cst_125 = arith.constant dense<0.000000e+00> : vector<2x384xf32>
      %292 = tpu.matmul %286, %291, %cst_125 {dimension_numbers = #tpu.dot_dimension_numbers<[1], [0], [0], [1], [0, 0, 1, 1], [], []>} : vector<2x128xf32>, vector<128x384xf32>, vector<2x384xf32> -> vector<2x384xf32>
      %293 = vector.extract_strided_slice %289 {offsets = [0, 0], sizes = [2, 128], strides = [1, 1]} : vector<2x384xf32> to vector<2x128xf32>
      %294 = vector.extract_strided_slice %292 {offsets = [0, 0], sizes = [2, 128], strides = [1, 1]} : vector<2x384xf32> to vector<2x128xf32>
      %295 = arith.addf %293, %294 : vector<2x128xf32>
      %296 = arith.negf %295 : vector<2x128xf32>
      %297 = math.exp %296 : vector<2x128xf32>
      %cst_126 = arith.constant 1.000000e+00 : f32
      %298 = vector.broadcast %cst_126 : f32 to vector<2x128xf32>
      %299 = arith.addf %298, %297 : vector<2x128xf32>
      %300 = arith.divf %298, %299 : vector<2x128xf32>
      %301 = vector.extract_strided_slice %289 {offsets = [0, 128], sizes = [2, 128], strides = [1, 1]} : vector<2x384xf32> to vector<2x128xf32>
      %302 = vector.extract_strided_slice %292 {offsets = [0, 128], sizes = [2, 128], strides = [1, 1]} : vector<2x384xf32> to vector<2x128xf32>
      %303 = arith.addf %301, %302 : vector<2x128xf32>
      %304 = arith.negf %303 : vector<2x128xf32>
      %305 = math.exp %304 : vector<2x128xf32>
      %cst_127 = arith.constant 1.000000e+00 : f32
      %306 = vector.broadcast %cst_127 : f32 to vector<2x128xf32>
      %307 = arith.addf %306, %305 : vector<2x128xf32>
      %308 = arith.divf %306, %307 : vector<2x128xf32>
      %309 = vector.extract_strided_slice %289 {offsets = [0, 256], sizes = [2, 128], strides = [1, 1]} : vector<2x384xf32> to vector<2x128xf32>
      %310 = vector.extract_strided_slice %292 {offsets = [0, 256], sizes = [2, 128], strides = [1, 1]} : vector<2x384xf32> to vector<2x128xf32>
      %311 = arith.addf %310, %6 : vector<2x128xf32>
      %312 = arith.mulf %300, %311 : vector<2x128xf32>
      %313 = arith.addf %309, %312 : vector<2x128xf32>
      %314 = math.tanh %313 : vector<2x128xf32>
      %cst_128 = arith.constant 1.000000e+00 : f32
      %315 = vector.broadcast %cst_128 : f32 to vector<2x128xf32>
      %316 = arith.subf %315, %308 : vector<2x128xf32>
      %317 = arith.mulf %316, %314 : vector<2x128xf32>
      %318 = arith.mulf %308, %286 : vector<2x128xf32>
      %319 = arith.addf %317, %318 : vector<2x128xf32>
      %c0_129 = arith.constant 0 : index
      %c0_130 = arith.constant 0 : index
      %320 = vector.load %arg6[%c0_129, %c0_130] : memref<2x128xf32, #tpu.memory_space<vmem>>, vector<2x128xf32>
      tpu.vector_store %arg6[%c0_129, %c0_130], %319 {strides = array<i32>} : memref<2x128xf32, #tpu.memory_space<vmem>>, vector<2x128xf32>,
      %321 = arith.truncf %319 : vector<2x128xf32> to vector<2x128xbf16>
      %c0_131 = arith.constant 0 : index
      %c0_132 = arith.constant 0 : index
      %c0_133 = arith.constant 0 : index
      %322 = vector.load %arg5[%c0_131, %c0_132, %c0_133] : memref<8x2x128xbf16, #tpu.memory_space<vmem>>, vector<1x2x128xbf16>
      %323 = vector.shape_cast %322 : vector<1x2x128xbf16> to vector<2x128xbf16>
      %324 = vector.shape_cast %321 : vector<2x128xbf16> to vector<1x2x128xbf16>
      tpu.vector_store %arg5[%c0_131, %c0_132, %c0_133], %324 {strides = array<i32>} : memref<8x2x128xbf16, #tpu.memory_space<vmem>>, vector<1x2x128xbf16>,
    } else {
    }
    return
  }
  func.func @transform_0(%arg0: i32, %arg1: i32) -> (i32, i32, i32) {
    %c2_i32 = arith.constant 2 : i32
    %0 = arith.muli %c2_i32, %arg1 : i32
    %c0_i32 = arith.constant 0 : i32
    %1 = arith.subi %c0_i32, %0 : i32
    %2 = arith.muli %arg0, %1 : i32
    %3 = arith.addi %arg1, %2 : i32
    %c0_i32_0 = arith.constant 0 : i32
    %c0_i32_1 = arith.constant 0 : i32
    return %3, %c0_i32_0, %arg0 : i32, i32, i32
  }
  func.func @transform_1(%arg0: i32, %arg1: i32) -> (i32, i32, i32) {
    %c0_i32 = arith.constant 0 : i32
    %c0_i32_0 = arith.constant 0 : i32
    %c0_i32_1 = arith.constant 0 : i32
    return %arg0, %c0_i32, %c0_i32_0 : i32, i32, i32
  }
  func.func @transform_2(%arg0: i32, %arg1: i32) -> (i32, i32, i32) {
    %c0_i32 = arith.constant 0 : i32
    %c0_i32_0 = arith.constant 0 : i32
    %c0_i32_1 = arith.constant 0 : i32
    return %arg0, %c0_i32, %c0_i32_0 : i32, i32, i32
  }
  func.func @transform_3(%arg0: i32, %arg1: i32) -> (i32, i32, i32) {
    %c2_i32 = arith.constant 2 : i32
    %0 = arith.muli %c2_i32, %arg1 : i32
    %c0_i32 = arith.constant 0 : i32
    %1 = arith.subi %c0_i32, %0 : i32
    %2 = arith.muli %arg0, %1 : i32
    %3 = arith.addi %arg1, %2 : i32
    %c0_i32_0 = arith.constant 0 : i32
    %c0_i32_1 = arith.constant 0 : i32
    return %3, %c0_i32_0, %arg0 : i32, i32, i32
  }
}

module attributes {stable_mosaic.version = 11 : i64} {
  func.func @_proj_kernel(%arg0: i32, %arg1: memref<16x256xbf16, #tpu.memory_space<vmem>>, %arg2: memref<256x768xbf16, #tpu.memory_space<vmem>>, %arg3: memref<1x768xf32, #tpu.memory_space<vmem>>, %arg4: memref<16x768xbf16, #tpu.memory_space<vmem>>) attributes {dimension_semantics = [#tpu.dimension_semantics<parallel>], iteration_bounds = array<i64: 1>, scalar_prefetch = 0 : i64, scratch_operands = 0 : i64, tpu.core_type = #tpu.core_type<tc>, window_params = [{transform_indices = @transform_0, window_bounds = array<i64: 16, 256>}, {pipeline_mode = #tpu.pipeline_mode<synchronous>, transform_indices = @transform_1, window_bounds = array<i64: 256, 768>}, {pipeline_mode = #tpu.pipeline_mode<synchronous>, transform_indices = @transform_2, window_bounds = array<i64: 1, 768>}, {transform_indices = @transform_3, window_bounds = array<i64: 16, 768>}]} {
    %c0 = arith.constant 0 : index
    %c0_0 = arith.constant 0 : index
    %0 = vector.load %arg1[%c0, %c0_0] : memref<16x256xbf16, #tpu.memory_space<vmem>>, vector<16x256xbf16>
    %c0_1 = arith.constant 0 : index
    %c0_2 = arith.constant 0 : index
    %1 = vector.load %arg2[%c0_1, %c0_2] : memref<256x768xbf16, #tpu.memory_space<vmem>>, vector<256x768xbf16>
    %cst = arith.constant dense<0.000000e+00> : vector<16x768xf32>
    %2 = tpu.matmul %0, %1, %cst {dimension_numbers = #tpu.dot_dimension_numbers<[1], [0], [0], [1], [0, 0, 1, 1], [], []>} : vector<16x256xbf16>, vector<256x768xbf16>, vector<16x768xf32> -> vector<16x768xf32>
    %c0_3 = arith.constant 0 : index
    %c0_4 = arith.constant 0 : index
    %3 = vector.load %arg3[%c0_3, %c0_4] : memref<1x768xf32, #tpu.memory_space<vmem>>, vector<1x768xf32>
    %4 = vector.broadcast %3 : vector<1x768xf32> to vector<16x768xf32>
    %5 = arith.addf %2, %4 : vector<16x768xf32>
    %6 = arith.truncf %5 : vector<16x768xf32> to vector<16x768xbf16>
    %c0_5 = arith.constant 0 : index
    %c0_6 = arith.constant 0 : index
    %7 = vector.load %arg4[%c0_5, %c0_6] : memref<16x768xbf16, #tpu.memory_space<vmem>>, vector<16x768xbf16>
    tpu.vector_store %arg4[%c0_5, %c0_6], %6 {strides = array<i32>} : memref<16x768xbf16, #tpu.memory_space<vmem>>, vector<16x768xbf16>,
    return
  }
  func.func @transform_0(%arg0: i32) -> (i32, i32) {
    %c0_i32 = arith.constant 0 : i32
    %c0_i32_0 = arith.constant 0 : i32
    return %arg0, %c0_i32 : i32, i32
  }
  func.func @transform_1(%arg0: i32) -> (i32, i32) {
    %c0_i32 = arith.constant 0 : i32
    %c0_i32_0 = arith.constant 0 : i32
    %c0_i32_1 = arith.constant 0 : i32
    return %c0_i32, %c0_i32_0 : i32, i32
  }
  func.func @transform_2(%arg0: i32) -> (i32, i32) {
    %c0_i32 = arith.constant 0 : i32
    %c0_i32_0 = arith.constant 0 : i32
    %c0_i32_1 = arith.constant 0 : i32
    return %c0_i32, %c0_i32_0 : i32, i32
  }
  func.func @transform_3(%arg0: i32) -> (i32, i32) {
    %c0_i32 = arith.constant 0 : i32
    %c0_i32_0 = arith.constant 0 : i32
    return %arg0, %c0_i32 : i32, i32
  }
}

</mosaic_0001>

<bundles_post_ra>
// kernel: rnn2_forward.9
= control target key start
LH: loop header
LB: loop body
LE: loop exit
PB: predicated region body
PF: predicated region fallthrough
CT: control target
= control target key end

     0   :  { %s352_s1 = inlined_call_operand.vmem [shape: bf16[256,128], index: 1, kind: input, shape index: {}]   ;;  %s353_s0 = inlined_call_operand.vmem [shape: bf16[16,256], index: 0, kind: input, shape index: {}]   ;;  %s354_s2 = inlined_call_operand.vmem [shape: f32[1,128], index: 2, kind: input, shape index: {}]   ;;  %s355_s3 = inlined_call_operand.vmem [shape: f32[16,128], index: 3, kind: output, shape index: {}]  }
   0x1   :  { %v250_v0 = vld [vmem:[%s352_s1 + $0x40] sm:$0xff]   ;;  %v252_v2 = vld [vmem:[%s352_s1 + $0x48] sm:$0xff]   ;;  %v254_v4 = vld [vmem:[%s352_s1 + $0x50] sm:$0xff]  }
   0x2   :  { %v251_v1 = vld [vmem:[%s352_s1] sm:$0xff]   ;;  %228 = vmatprep.subr.bf16.mxu0 %v250_v0  ;;  %v253_v3 = vld [vmem:[%s352_s1 + $0x8] sm:$0xff]   ;;  %v255_v5 = vld [vmem:[%s352_s1 + $0x10] sm:$0xff]  }
   0x3   :  { %229 = vmatpush3.bf16.msra.mxu0 %v251_v1  ;;  %v256_v6 = vld [vmem:[%s352_s1 + $0x58] sm:$0xff]   ;;  %v258_v8 = vld [vmem:[%s352_s1 + $0x60] sm:$0xff]   ;;  %v260_v10 = vld [vmem:[%s352_s1 + $0x68] sm:$0xff]  }
   0x4   :  { %230 = vmatprep.subr.bf16.mxu0 %v252_v2  ;;  %v257_v7 = vld [vmem:[%s352_s1 + $0x18] sm:$0xff]   ;;  %v259_v9 = vld [vmem:[%s352_s1 + $0x20] sm:$0xff]   ;;  %v261_v12 = vld [vmem:[%s352_s1 + $0x28] sm:$0xff]  }
   0x5   :  { %v268_v11 = vld [vmem:[%s353_s0 + $0x4] ss:$8 sps:$4 sm:$0xff]   ;;  %v262_v13 = vld [vmem:[%s352_s1 + $0x70] sm:$0xff]   ;;  %v264_v15 = vld [vmem:[%s352_s1 + $0x78] sm:$0xff]  }
   0x6   :  { %194 = vmatprep.mubr.bf16.mxu0 %v268_v11  ;;  %v263_v14 = vld [vmem:[%s352_s1 + $0x30] sm:$0xff]   ;;  %v265_v16 = vld [vmem:[%s352_s1 + $0x38] sm:$0xff]   ;;  %v266_v17 = vld [vmem:[%s353_s0] ss:$8 sps:$4 sm:$0xff]  }
   0x7   :  { %231 = vmatpush3.bf16.msra.mxu0 %v253_v3  ;;  %v209_v19 = vld [vmem:[%s354_s2] ss:$0 sm:$0xff] }
   0x8   :  { %232 = vmatprep.subr.bf16.mxu0 %v254_v4 }
   0xb   :  { %233 = vmatpush3.bf16.msra.mxu0 %v255_v5 }
   0xc   :  { %234 = vmatprep.subr.bf16.mxu0 %v256_v6 }
   0xf   :  { %235 = vmatpush3.bf16.msra.mxu0 %v257_v7 }
  0x10   :  { %236 = vmatprep.subr.bf16.mxu0 %v258_v8 }
  0x13   :  { %237 = vmatpush3.bf16.msra.mxu0 %v259_v9 }
  0x14   :  { %238 = vmatprep.subr.bf16.mxu0 %v260_v10 }
  0x17   :  { %239 = vmatpush3.bf16.msra.mxu0 %v261_v12 }
  0x18   :  { %240 = vmatprep.subr.bf16.mxu0 %v262_v13 }
  0x1b   :  { %241 = vmatpush3.bf16.msra.mxu0 %v263_v14 }
  0x1c   :  { %242 = vmatprep.subr.bf16.mxu0 %v264_v15 }
  0x1f   :  { %243 = vmatpush3.bf16.msra.mxu0 %v265_v16 }
  0x22   :  { %195 = vmatmul.mubr.bf16.vlgmr.msra.gmra.mrb[0].mxu0 %v266_v17 }
  0xf5   :  { %v244_v18 = vpop.f32.mrb[0].mxu0 }
  0xf6   :  { %v245_v20 = vpop.f32.mrb[1].mxu0 }
  0xf7   :  { %v246_v21 = vadd.f32 %v245_v20, %v244_v18  ;;  %v247_v22 = vpop.f32.mrb[2].mxu0 }
  0xf8   :  { %v248_v23 = vpop.f32.mrb[3].mxu0 }
  0xf9   :  { %v197_v24 = vadd.f32 %v246_v21, %v209_v19  ;;  %v249_v25 = vadd.f32 %v248_v23, %v247_v22 }
  0xfb   :  { %203 = vst [vmem:[%s355_s3] sm:$0xff] %v197_v24  ;;  %v200_v26 = vadd.f32 %v249_v25, %v209_v19 }
  0xfd   :  { %204 = vst [vmem:[%s355_s3 + $0x8] sm:$0xff] %v200_v26 }

// kernel: rnn2_forward.7
= control target key start
LH: loop header
LB: loop body
LE: loop exit
PB: predicated region body
PF: predicated region fallthrough
CT: control target
= control target key end

     0   :  { %s1411_s1 = inlined_call_operand.vmem [shape: bf16[256,768], index: 1, kind: input, shape index: {}]   ;;  %s1412_s0 = inlined_call_operand.vmem [shape: bf16[16,256], index: 0, kind: input, shape index: {}]   ;;  %s1413_s2 = inlined_call_operand.vmem [shape: f32[1,768], index: 2, kind: input, shape index: {}]   ;;  %s1414_s3 = inlined_call_operand.vmem [shape: bf16[16,768], index: 3, kind: output, shape index: {}]  }
   0x1   :  { %v919_v0 = vld [vmem:[%s1411_s1 + $0x4] ss:$24 sps:$4 sm:$0xff]   ;;  %v921_v1 = vld [vmem:[%s1411_s1] ss:$24 sps:$4 sm:$0xff]   ;;  %v922_v2 = vld [vmem:[%s1411_s1 + $0x34] ss:$24 sps:$4 sm:$0xff]  }
   0x2   :  { %634 = vmatprep.subr.bf16.mxu0 %v919_v0  ;;  %v924_v3 = vld [vmem:[%s1411_s1 + $0x30] ss:$24 sps:$4 sm:$0xff]   ;;  %v925_v4 = vld [vmem:[%s1411_s1 + $0x64] ss:$24 sps:$4 sm:$0xff]   ;;  %v927_v5 = vld [vmem:[%s1411_s1 + $0x60] ss:$24 sps:$4 sm:$0xff]  }
   0x3   :  { %635 = vmatpush1.bf16.msra.mxu0 %v921_v1  ;;  %v928_v6 = vld [vmem:[%s1411_s1 + $0x94] ss:$24 sps:$4 sm:$0xff]   ;;  %v930_v7 = vld [vmem:[%s1411_s1 + $0x90] ss:$24 sps:$4 sm:$0xff]   ;;  %v931_v8 = vld [vmem:[%s1411_s1 + $0xc4] ss:$24 sps:$4 sm:$0xff]  }
   0x4   :  { %636 = vmatprep.subr.bf16.mxu0 %v922_v2  ;;  %v933_v9 = vld [vmem:[%s1411_s1 + $0xc0] ss:$24 sps:$4 sm:$0xff]   ;;  %v934_v10 = vld [vmem:[%s1411_s1 + $0xf4] ss:$24 sps:$4 sm:$0xff]   ;;  %v936_v11 = vld [vmem:[%s1411_s1 + $0xf0] ss:$24 sps:$4 sm:$0xff]  }
   0x5   :  { %v937_v12 = vld [vmem:[%s1411_s1 + $0x124] ss:$24 sps:$4 sm:$0xff]   ;;  %v969_v14 = vld [vmem:[%s1411_s1 + $0x8] ss:$24 sps:$4 sm:$0xff]   ;;  %v940_v17 = vld [vmem:[%s1411_s1 + $0x154] ss:$24 sps:$4 sm:$0xff]  }
   0x6   :  { %v967_v13 = vld [vmem:[%s1411_s1 + $0xc] ss:$24 sps:$4 sm:$0xff]   ;;  %v939_v15 = vld [vmem:[%s1411_s1 + $0x120] ss:$24 sps:$4 sm:$0xff]   ;;  %v976_v18 = vld [vmem:[%s1411_s1 + $0x3c] ss:$24 sps:$4 sm:$0xff]  }
   0x7   :  { %637 = vmatpush1.bf16.msra.mxu0 %v924_v3  ;;  %v1137_v16 = vld [vmem:[%s1412_s0 + $0x4] ss:$8 sps:$4 sm:$0xff]   ;;  %677 = vmatprep.subr.bf16.mxu1 %v967_v13  ;;  %v978_v19 = vld [vmem:[%s1411_s1 + $0x38] ss:$24 sps:$4 sm:$0xff]   ;;  %v984_v23 = vld [vmem:[%s1411_s1 + $0x68] ss:$24 sps:$4 sm:$0xff]  }
   0x8   :  { %638 = vmatprep.subr.bf16.mxu0 %v925_v4  ;;  %678 = vmatpush1.bf16.msra.mxu1 %v969_v14  ;;  %v942_v20 = vld [vmem:[%s1411_s1 + $0x150] ss:$24 sps:$4 sm:$0xff]   ;;  %v943_v21 = vld [vmem:[%s1411_s1 + $0x184] ss:$24 sps:$4 sm:$0xff]   ;;  %v945_v24 = vld [vmem:[%s1411_s1 + $0x180] ss:$24 sps:$4 sm:$0xff]  }
   0x9   :  { %666 = vmatprep.mubr.bf16.mxu0 %v1137_v16  ;;  %709 = vmatprep.mubr.bf16.mxu1 %v1137_v16  ;;  %v982_v22 = vld [vmem:[%s1411_s1 + $0x6c] ss:$24 sps:$4 sm:$0xff]   ;;  %v988_v25 = vld [vmem:[%s1411_s1 + $0x9c] ss:$24 sps:$4 sm:$0xff]   ;;  %v990_v27 = vld [vmem:[%s1411_s1 + $0x98] ss:$24 sps:$4 sm:$0xff]  }
   0xa   :  { %679 = vmatprep.subr.bf16.mxu1 %v976_v18  ;;  %v946_v26 = vld [vmem:[%s1411_s1 + $0x1b4] ss:$24 sps:$4 sm:$0xff]   ;;  %v948_v29 = vld [vmem:[%s1411_s1 + $0x1b0] ss:$24 sps:$4 sm:$0xff]   ;;  %v949_v30 = vld [vmem:[%s1411_s1 + $0x1e4] ss:$24 sps:$4 sm:$0xff]  }
   0xb   :  { %639 = vmatpush1.bf16.msra.mxu0 %v927_v5  ;;  %v994_v28 = vld [vmem:[%s1411_s1 + $0xcc] ss:$24 sps:$4 sm:$0xff]   ;;  %v996_v31 = vld [vmem:[%s1411_s1 + $0xc8] ss:$24 sps:$4 sm:$0xff]   ;;  %v1000_v32 = vld [vmem:[%s1411_s1 + $0xfc] ss:$24 sps:$4 sm:$0xff]  }
   0xc   :  { %640 = vmatprep.subr.bf16.mxu0 %v928_v6  ;;  %680 = vmatpush1.bf16.msra.mxu1 %v978_v19  ;;  %v951_v33 = vld [vmem:[%s1411_s1 + $0x1e0] ss:$24 sps:$4 sm:$0xff]   ;;  %v952_v34 = vld [vmem:[%s1411_s1 + $0x214] ss:$24 sps:$4 sm:$0xff]   ;;  %v954_v37 = vld [vmem:[%s1411_s1 + $0x210] ss:$24 sps:$4 sm:$0xff]  }
   0xd   :  { %681 = vmatprep.subr.bf16.mxu1 %v982_v22  ;;  %v1002_v35 = vld [vmem:[%s1411_s1 + $0xf8] ss:$24 sps:$4 sm:$0xff]   ;;  %v1006_v36 = vld [vmem:[%s1411_s1 + $0x12c] ss:$24 sps:$4 sm:$0xff]   ;;  %v1008_v39 = vld [vmem:[%s1411_s1 + $0x128] ss:$24 sps:$4 sm:$0xff]  }
   0xe   :  { %v955_v38 = vld [vmem:[%s1411_s1 + $0x244] ss:$24 sps:$4 sm:$0xff]   ;;  %v957_v41 = vld [vmem:[%s1411_s1 + $0x240] ss:$24 sps:$4 sm:$0xff]   ;;  %v958_v42 = vld [vmem:[%s1411_s1 + $0x274] ss:$24 sps:$4 sm:$0xff]  }
   0xf   :  { %641 = vmatpush1.bf16.msra.mxu0 %v930_v7  ;;  %v1012_v40 = vld [vmem:[%s1411_s1 + $0x15c] ss:$24 sps:$4 sm:$0xff]   ;;  %v1014_v43 = vld [vmem:[%s1411_s1 + $0x158] ss:$24 sps:$4 sm:$0xff]   ;;  %v1018_v44 = vld [vmem:[%s1411_s1 + $0x18c] ss:$24 sps:$4 sm:$0xff]  }
  0x10   :  { %642 = vmatprep.subr.bf16.mxu0 %v931_v8  ;;  %682 = vmatpush1.bf16.msra.mxu1 %v984_v23  ;;  %v960_v45 = vld [vmem:[%s1411_s1 + $0x270] ss:$24 sps:$4 sm:$0xff]   ;;  %v961_v46 = vld [vmem:[%s1411_s1 + $0x2a4] ss:$24 sps:$4 sm:$0xff]   ;;  %v963_v49 = vld [vmem:[%s1411_s1 + $0x2a0] ss:$24 sps:$4 sm:$0xff]  }
  0x11   :  { %683 = vmatprep.subr.bf16.mxu1 %v988_v25  ;;  %v1020_v47 = vld [vmem:[%s1411_s1 + $0x188] ss:$24 sps:$4 sm:$0xff]   ;;  %v1024_v48 = vld [vmem:[%s1411_s1 + $0x1bc] ss:$24 sps:$4 sm:$0xff]   ;;  %v1026_v51 = vld [vmem:[%s1411_s1 + $0x1b8] ss:$24 sps:$4 sm:$0xff]  }
  0x12   :  { %v964_v50 = vld [vmem:[%s1411_s1 + $0x2d4] ss:$24 sps:$4 sm:$0xff]   ;;  %v966_v53 = vld [vmem:[%s1411_s1 + $0x2d0] ss:$24 sps:$4 sm:$0xff]   ;;  %v981_v59 = vld [vmem:[%s1411_s1 + $0x44] ss:$24 sps:$4 sm:$0xff]  }
  0x13   :  { %643 = vmatpush1.bf16.msra.mxu0 %v933_v9  ;;  %v1030_v52 = vld [vmem:[%s1411_s1 + $0x1ec] ss:$24 sps:$4 sm:$0xff]   ;;  %v1032_v55 = vld [vmem:[%s1411_s1 + $0x1e8] ss:$24 sps:$4 sm:$0xff]   ;;  %v1036_v57 = vld [vmem:[%s1411_s1 + $0x21c] ss:$24 sps:$4 sm:$0xff]  }
  0x14   :  { %644 = vmatprep.subr.bf16.mxu0 %v934_v10  ;;  %684 = vmatpush1.bf16.msra.mxu1 %v990_v27  ;;  %v975_v54 = vld [vmem:[%s1411_s1 + $0x14] ss:$24 sps:$4 sm:$0xff]   ;;  %v1261_v56 = vld [vmem:[%s1412_s0] ss:$8 sps:$4 sm:$0xff]   ;;  %v1038_v60 = vld [vmem:[%s1411_s1 + $0x218] ss:$24 sps:$4 sm:$0xff]  }
  0x15   :  { %685 = vmatprep.subr.bf16.mxu1 %v994_v28  ;;  %v973_v58 = vld [vmem:[%s1411_s1 + $0x10] ss:$24 sps:$4 sm:$0xff]   ;;  %v1042_v61 = vld [vmem:[%s1411_s1 + $0x24c] ss:$24 sps:$4 sm:$0xff]   ;;  %v979_v62 = vld [vmem:[%s1411_s1 + $0x40] ss:$24 sps:$4 sm:$0xff]  }
  0x16   :  { %v987_v63 = vld [vmem:[%s1411_s1 + $0x74] ss:$24 sps:$4 sm:$0xff]   ;;  %v1044_v0 = vld [vmem:[%s1411_s1 + $0x248] ss:$24 sps:$4 sm:$0xff]   ;;  %v993_v3 = vld [vmem:[%s1411_s1 + $0xa4] ss:$24 sps:$4 sm:$0xff]  }
  0x17   :  { %645 = vmatpush1.bf16.msra.mxu0 %v936_v11  ;;  %v1048_v1 = vld [vmem:[%s1411_s1 + $0x27c] ss:$24 sps:$4 sm:$0xff]   ;;  %v985_v2 = vld [vmem:[%s1411_s1 + $0x70] ss:$24 sps:$4 sm:$0xff]   ;;  %v1054_v5 = vld [vmem:[%s1411_s1 + $0x2ac] ss:$24 sps:$4 sm:$0xff]  }
  0x18   :  { %646 = vmatprep.subr.bf16.mxu0 %v937_v12  ;;  %686 = vmatpush1.bf16.msra.mxu1 %v996_v31  ;;  %v1050_v4 = vld [vmem:[%s1411_s1 + $0x278] ss:$24 sps:$4 sm:$0xff]   ;;  %v999_v7 = vld [vmem:[%s1411_s1 + $0xd4] ss:$24 sps:$4 sm:$0xff]   ;;  %v1056_v8 = vld [vmem:[%s1411_s1 + $0x2a8] ss:$24 sps:$4 sm:$0xff]  }
  0x19   :  { %687 = vmatprep.subr.bf16.mxu1 %v1000_v32  ;;  %v991_v6 = vld [vmem:[%s1411_s1 + $0xa0] ss:$24 sps:$4 sm:$0xff]   ;;  %v1060_v9 = vld [vmem:[%s1411_s1 + $0x2dc] ss:$24 sps:$4 sm:$0xff]   ;;  %v997_v10 = vld [vmem:[%s1411_s1 + $0xd0] ss:$24 sps:$4 sm:$0xff]  }
  0x1a   :  { %v1005_v11 = vld [vmem:[%s1411_s1 + $0x104] ss:$24 sps:$4 sm:$0xff]   ;;  %v1062_v12 = vld [vmem:[%s1411_s1 + $0x2d8] ss:$24 sps:$4 sm:$0xff]   ;;  %v1011_v14 = vld [vmem:[%s1411_s1 + $0x134] ss:$24 sps:$4 sm:$0xff]  }
  0x1b   :  { %647 = vmatpush1.bf16.msra.mxu0 %v939_v15  ;;  %v1003_v13 = vld [vmem:[%s1411_s1 + $0x100] ss:$24 sps:$4 sm:$0xff]   ;;  %v1009_v15 = vld [vmem:[%s1411_s1 + $0x130] ss:$24 sps:$4 sm:$0xff]   ;;  %v1023_v18 = vld [vmem:[%s1411_s1 + $0x194] ss:$24 sps:$4 sm:$0xff]  }
  0x1c   :  { %648 = vmatprep.subr.bf16.mxu0 %v940_v17  ;;  %688 = vmatpush1.bf16.msra.mxu1 %v1002_v35  ;;  %v1015_v17 = vld [vmem:[%s1411_s1 + $0x160] ss:$24 sps:$4 sm:$0xff]   ;;  %v1021_v19 = vld [vmem:[%s1411_s1 + $0x190] ss:$24 sps:$4 sm:$0xff]   ;;  %v1035_v22 = vld [vmem:[%s1411_s1 + $0x1f4] ss:$24 sps:$4 sm:$0xff]  }
  0x1d   :  { %689 = vmatprep.subr.bf16.mxu1 %v1006_v36  ;;  %v1033_v23 = vld [vmem:[%s1411_s1 + $0x1f0] ss:$24 sps:$4 sm:$0xff]   ;;  %v1039_v25 = vld [vmem:[%s1411_s1 + $0x220] ss:$24 sps:$4 sm:$0xff]   ;;  %v1053_v28 = vld [vmem:[%s1411_s1 + $0x284] ss:$24 sps:$4 sm:$0xff]  }
  0x1e   :  { %v1045_v27 = vld [vmem:[%s1411_s1 + $0x250] ss:$24 sps:$4 sm:$0xff]   ;;  %v1065_v32 = vld [vmem:[%s1411_s1 + $0x2e4] ss:$24 sps:$4 sm:$0xff]  }
  0x1f   :  { %649 = vmatpush1.bf16.msra.mxu0 %v942_v20  ;;  %v1029_v20 = vld [vmem:[%s1411_s1 + $0x1c4] ss:$24 sps:$4 sm:$0xff]   ;;  %v1057_v31 = vld [vmem:[%s1411_s1 + $0x2b0] ss:$24 sps:$4 sm:$0xff]  }
  0x20   :  { %650 = vmatprep.subr.bf16.mxu0 %v943_v21  ;;  %690 = vmatpush1.bf16.msra.mxu1 %v1008_v39  ;;  %v1027_v21 = vld [vmem:[%s1411_s1 + $0x1c0] ss:$24 sps:$4 sm:$0xff]  }
  0x21   :  { %691 = vmatprep.subr.bf16.mxu1 %v1012_v40 }
  0x23   :  { %651 = vmatpush1.bf16.msra.mxu0 %v945_v24  ;;  %v1041_v24 = vld [vmem:[%s1411_s1 + $0x224] ss:$24 sps:$4 sm:$0xff]  }
  0x24   :  { %652 = vmatprep.subr.bf16.mxu0 %v946_v26  ;;  %692 = vmatpush1.bf16.msra.mxu1 %v1014_v43  ;;  %v1047_v26 = vld [vmem:[%s1411_s1 + $0x254] ss:$24 sps:$4 sm:$0xff]  }
  0x25   :  { %693 = vmatprep.subr.bf16.mxu1 %v1018_v44 }
  0x27   :  { %653 = vmatpush1.bf16.msra.mxu0 %v948_v29  ;;  %v1051_v29 = vld [vmem:[%s1411_s1 + $0x280] ss:$24 sps:$4 sm:$0xff]  }
  0x28   :  { %654 = vmatprep.subr.bf16.mxu0 %v949_v30  ;;  %694 = vmatpush1.bf16.msra.mxu1 %v1020_v47  ;;  %v1059_v30 = vld [vmem:[%s1411_s1 + $0x2b4] ss:$24 sps:$4 sm:$0xff]  }
  0x29   :  { %695 = vmatprep.subr.bf16.mxu1 %v1024_v48 }
  0x2b   :  { %655 = vmatpush1.bf16.msra.mxu0 %v951_v33  ;;  %v1063_v33 = vld [vmem:[%s1411_s1 + $0x2e0] ss:$24 sps:$4 sm:$0xff]  }
  0x2c   :  { %656 = vmatprep.subr.bf16.mxu0 %v952_v34  ;;  %696 = vmatpush1.bf16.msra.mxu1 %v1026_v51  ;;  %v114_v34 = vlaneseq }
  0x2d   :  { %697 = vmatprep.subr.bf16.mxu1 %v1030_v52 }
  0x2e   :  { %v115_v35 = vshrl.u32 %v114_v34, 7 }
  0x2f   :  { %657 = vmatpush1.bf16.msra.mxu0 %v954_v37  ;;  %v112_v37 = vld [vmem:[%s1413_s2] sm:$0x3f] }
  0x30   :  { %658 = vmatprep.subr.bf16.mxu0 %v955_v38  ;;  %698 = vmatpush1.bf16.msra.mxu1 %v1032_v55  ;;  %v132_v36 = vsub.s32 4, %v115_v35  ;;  %v136_v39 = vsub.s32 5, %v115_v35  ;;  %v124_v55 = vsub.s32 2, %v115_v35 }
  0x31   :  { %699 = vmatprep.subr.bf16.mxu1 %v1036_v57 }
  0x32   :  { %v133_v38 = vrot.slane %v112_v37, %v132_v36  ;;  %v137_v40 = vrot.slane %v112_v37, %v136_v39  ;;  %v125_v57 = vrot.slane %v112_v37, %v124_v55 }
  0x33   :  { %659 = vmatpush1.bf16.msra.mxu0 %v957_v41  ;;  %v116_v41 = vsub.s32 0, %v115_v35 }
  0x34   :  { %660 = vmatprep.subr.bf16.mxu0 %v958_v42  ;;  %700 = vmatpush1.bf16.msra.mxu1 %v1038_v60  ;;  %v120_v42 = vsub.s32 1, %v115_v35 }
  0x35   :  { %701 = vmatprep.subr.bf16.mxu1 %v1042_v61  ;;  %v117_v43 = vrot.slane %v112_v37, %v116_v41 }
  0x36   :  { %v121_v44 = vrot.slane %v112_v37, %v120_v42 }
  0x37   :  { %661 = vmatpush1.bf16.msra.mxu0 %v960_v45 }
  0x38   :  { %662 = vmatprep.subr.bf16.mxu0 %v961_v46  ;;  %702 = vmatpush1.bf16.msra.mxu1 %v1044_v0 }
  0x39   :  { %703 = vmatprep.subr.bf16.mxu1 %v1048_v1 }
  0x3b   :  { %663 = vmatpush1.bf16.msra.mxu0 %v963_v49 }
  0x3c   :  { %664 = vmatprep.subr.bf16.mxu0 %v964_v50  ;;  %704 = vmatpush1.bf16.msra.mxu1 %v1050_v4 }
  0x3d   :  { %705 = vmatprep.subr.bf16.mxu1 %v1054_v5 }
  0x3f   :  { %665 = vmatpush1.bf16.msra.mxu0 %v966_v53 }
  0x40   :  { %720 = vmatprep.subr.bf16.mxu0 %v975_v54  ;;  %706 = vmatpush1.bf16.msra.mxu1 %v1056_v8 }
  0x41   :  { %707 = vmatprep.subr.bf16.mxu1 %v1060_v9 }
  0x42   :  { %667 = vmatmul.mubr.bf16.vlgmr.msra.gmra.mrb[0].mxu0 %v1261_v56 }
  0x43   :  { %721 = vmatpush1.bf16.msra.mxu0 %v973_v58  ;;  %752 = vmatprep.mubr.bf16.mxu0 %v1137_v16  ;;  %v1017_v16 = vld [vmem:[%s1411_s1 + $0x164] ss:$24 sps:$4 sm:$0xff]  }
  0x44   :  { %722 = vmatprep.subr.bf16.mxu0 %v981_v59  ;;  %708 = vmatpush1.bf16.msra.mxu1 %v1062_v12 }
  0x47   :  { %723 = vmatpush1.bf16.msra.mxu0 %v979_v62  ;;  %710 = vmatmul.mubr.bf16.vlgmr.msra.gmra.mrb[0].mxu1 %v1261_v56 }
  0x48   :  { %724 = vmatprep.subr.bf16.mxu0 %v987_v63 }
  0x4b   :  { %725 = vmatpush1.bf16.msra.mxu0 %v985_v2 }
  0x4c   :  { %726 = vmatprep.subr.bf16.mxu0 %v993_v3 }
  0x4f   :  { %727 = vmatpush1.bf16.msra.mxu0 %v991_v6 }
  0x50   :  { %728 = vmatprep.subr.bf16.mxu0 %v999_v7 }
  0x53   :  { %729 = vmatpush1.bf16.msra.mxu0 %v997_v10 }
  0x54   :  { %730 = vmatprep.subr.bf16.mxu0 %v1005_v11 }
  0x57   :  { %731 = vmatpush1.bf16.msra.mxu0 %v1003_v13 }
  0x58   :  { %732 = vmatprep.subr.bf16.mxu0 %v1011_v14 }
  0x5b   :  { %733 = vmatpush1.bf16.msra.mxu0 %v1009_v15 }
  0x5c   :  { %734 = vmatprep.subr.bf16.mxu0 %v1017_v16 }
  0x5f   :  { %735 = vmatpush1.bf16.msra.mxu0 %v1015_v17 }
  0x60   :  { %736 = vmatprep.subr.bf16.mxu0 %v1023_v18 }
  0x63   :  { %737 = vmatpush1.bf16.msra.mxu0 %v1021_v19 }
  0x64   :  { %738 = vmatprep.subr.bf16.mxu0 %v1029_v20 }
  0x67   :  { %739 = vmatpush1.bf16.msra.mxu0 %v1027_v21 }
  0x68   :  { %740 = vmatprep.subr.bf16.mxu0 %v1035_v22 }
  0x6b   :  { %741 = vmatpush1.bf16.msra.mxu0 %v1033_v23 }
  0x6c   :  { %742 = vmatprep.subr.bf16.mxu0 %v1041_v24 }
  0x6f   :  { %743 = vmatpush1.bf16.msra.mxu0 %v1039_v25 }
  0x70   :  { %744 = vmatprep.subr.bf16.mxu0 %v1047_v26 }
  0x73   :  { %745 = vmatpush1.bf16.msra.mxu0 %v1045_v27 }
  0x74   :  { %746 = vmatprep.subr.bf16.mxu0 %v1053_v28 }
  0x77   :  { %747 = vmatpush1.bf16.msra.mxu0 %v1051_v29 }
  0x78   :  { %748 = vmatprep.subr.bf16.mxu0 %v1059_v30 }
  0x7b   :  { %749 = vmatpush1.bf16.msra.mxu0 %v1057_v31 }
  0x7c   :  { %750 = vmatprep.subr.bf16.mxu0 %v1065_v32 }
  0x7f   :  { %751 = vmatpush1.bf16.msra.mxu0 %v1063_v33 }
  0x82   :  { %753 = vmatmul.mubr.bf16.vlgmr.msra.gmra.mrb[4].mxu0 %v1261_v56  ;;  %v128_v56 = vsub.s32 3, %v115_v35 }
  0x84   :  { %v129_v58 = vrot.slane %v112_v37, %v128_v56 }
 0x115   :  { %v668_v45 = vpop.f32.mrb[0].mxu0 }
 0x116   :  { %v669_v46 = vadd.f32 %v668_v45, %v117_v43  ;;  %v670_v47 = vpop.f32.mrb[1].mxu0 }
 0x117   :  { %v671_v48 = vadd.f32 %v670_v47, %v121_v44  ;;  %v672_v49 = vpop.f32.mrb[2].mxu0 }
 0x118   :  { %v673_v50 = vadd.f32 %v672_v49, %v117_v43  ;;  %v674_v51 = vpop.f32.mrb[3].mxu0 }
 0x119   :  { %v913_v52 = vpack.c.bf16 %v671_v48, %v669_v46  ;;  %v675_v53 = vadd.f32 %v674_v51, %v121_v44 }
 0x11a   :  { %v711_v59 = vpop.f32.mrb[0].mxu1 }
 0x11b   :  { %799 = vst [vmem:[%s1414_s3] sm:$0xff] %v913_v52  ;;  %v916_v54 = vpack.c.bf16 %v675_v53, %v673_v50  ;;  %v712_v60 = vadd.f32 %v711_v59, %v125_v57  ;;  %v713_v61 = vpop.f32.mrb[1].mxu1 }
 0x11c   :  { %v714_v62 = vadd.f32 %v713_v61, %v129_v58  ;;  %v715_v63 = vpop.f32.mrb[2].mxu1 }
 0x11d   :  { %802 = vst [vmem:[%s1414_s3 + $0x18] sm:$0xff] %v916_v54  ;;  %v716_v0 = vadd.f32 %v715_v63, %v125_v57  ;;  %v717_v1 = vpop.f32.mrb[3].mxu1 }
 0x11e   :  { %v914_v2 = vpack.c.bf16 %v714_v62, %v712_v60  ;;  %v718_v3 = vadd.f32 %v717_v1, %v129_v58 }
 0x120   :  { %800 = vst [vmem:[%s1414_s3 + $0x8] sm:$0xff] %v914_v2  ;;  %v917_v4 = vpack.c.bf16 %v718_v3, %v716_v0 }
 0x122   :  { %803 = vst [vmem:[%s1414_s3 + $0x20] sm:$0xff] %v917_v4 }
 0x155   :  { %v754_v5 = vpop.f32.mrb[4].mxu0 }
 0x156   :  { %v755_v6 = vadd.f32 %v754_v5, %v133_v38  ;;  %v756_v7 = vpop.f32.mrb[5].mxu0 }
 0x157   :  { %v757_v8 = vadd.f32 %v756_v7, %v137_v40  ;;  %v758_v9 = vpop.f32.mrb[6].mxu0 }
 0x158   :  { %v759_v10 = vadd.f32 %v758_v9, %v133_v38  ;;  %v760_v11 = vpop.f32.mrb[7].mxu0 }
 0x159   :  { %v915_v12 = vpack.c.bf16 %v757_v8, %v755_v6  ;;  %v761_v13 = vadd.f32 %v760_v11, %v137_v40 }
 0x15b   :  { %801 = vst [vmem:[%s1414_s3 + $0x10] sm:$0xff] %v915_v12  ;;  %v918_v14 = vpack.c.bf16 %v761_v13, %v759_v10 }
 0x15d   :  { %804 = vst [vmem:[%s1414_s3 + $0x28] sm:$0xff] %v918_v14 }

// kernel: rnn2_forward.5
= control target key start
LH: loop header
LB: loop body
LE: loop exit
PB: predicated region body
PF: predicated region fallthrough
CT: control target
= control target key end

     0   :  { %8 = vsyncpa [#allocation3], 0  ;;  %s3861_s0 = inlined_call_operand.vmem [shape: f32[16,912], index: 0, kind: input, shape index: {}]   ;;  %s3862_s1 = inlined_call_operand.hbm [shape: bf16[912,768], index: 1, kind: input, shape index: {}]   ;;  %s3863_s2 = inlined_call_operand.hbm [shape: f32[1,768], index: 2, kind: input, shape index: {}]   ;;  %s3864_s3 = inlined_call_operand.vmem [shape: bf16[16,768], index: 3, kind: output, shape index: {}]  }
   0x1   :  { %9 = vsyncpa [#allocation5], 0  ;;  %s3687_s12 = smov [#allocation2]   ;;  %s3639_s16 = scalar_lea.hbm %s3862_s1, 43776 }
   0x2   :  { %s17_s13 = sshll.u32 %s3687_s12, 4  ;;  %p3640_p0 = scmp.ne.s32.totalorder %s3862_s1, %s3639_s16  ;;  %s18_s13 = int_to_ptr.vmem [resolvable:$true] %s17_s13 }
   0x3   :  { %p3643_p1 = scmp.lt.u32.totalorder %s3639_s16, %s3862_s1 }
   0x5   :  { %p3645_p2 = pnand %p3643_p1, %p3640_p0 }
   0x7   :  { %3648 = shalt.err (!%p3645_p2)
}
   0x8   :  { %s3649_s21 = scalar_lea.vmem %s18_s13, 43776  ;;  %p3654_p4 = scmp.lt.s32.totalorder %s18_s13, %s18_s13 }
   0x9   :  { %p3650_p3 = scmp.ne.s32.totalorder %s18_s13, %s3649_s21  ;;  %p3655_p5 = scmp.lt.s32.totalorder %s3649_s21, %s3649_s21 }
   0xb   :  { %p3656_p6 = por %p3655_p5, %p3654_p4 }
   0xd   :  { %p3657_p7 = pnand %p3656_p6, %p3650_p3 }
   0xf   :  { %3660 = shalt.err (!%p3657_p7)
}
  0x10   :  { %s3688_s22 = smov 384   ;;  %s3689_s23 = smov 24  }
  0x11   :  { %23 = dma.hbm_to_vmem [thread:$0]  %s3862_s1, 43776, %s18_s13, [#allocation3], %s3688_s22, %s3688_s22, %s3689_s23  }
  0x12   :  { %s3690_s26 = smov [#allocation4]   ;;  %s3661_s30 = scalar_lea.hbm %s3863_s2, 96 }
  0x13   :  { %s30_s27 = sshll.u32 %s3690_s26, 4  ;;  %p3662_p8 = scmp.ne.s32.totalorder %s3863_s2, %s3661_s30  ;;  %s31_s27 = int_to_ptr.vmem [resolvable:$true] %s30_s27 }
  0x14   :  { %p3665_p9 = scmp.lt.u32.totalorder %s3661_s30, %s3863_s2 }
  0x16   :  { %p3667_p10 = pnand %p3665_p9, %p3662_p8 }
  0x18   :  { %3670 = shalt.err (!%p3667_p10)
}
  0x19   :  { %s3671_s8 = scalar_lea.vmem %s31_s27, 96  ;;  %p3676_p12 = scmp.lt.s32.totalorder %s31_s27, %s31_s27 }
  0x1a   :  { %p3672_p11 = scmp.ne.s32.totalorder %s31_s27, %s3671_s8  ;;  %p3677_p13 = scmp.lt.s32.totalorder %s3671_s8, %s3671_s8 }
  0x1c   :  { %p3678_p0 = por %p3677_p13, %p3676_p12 }
  0x1e   :  { %p3679_p1 = pnand %p3678_p0, %p3672_p11 }
  0x20   :  { %3682 = shalt.err (!%p3679_p1)
}
  0x21   :  { %33 = dma.hbm_to_vmem [thread:$0]  %s3863_s2, 96, %s31_s27, [#allocation5]  }
  0x22   :  { %3683 = dma.done.wait [#allocation3], 43776  }
  0x23   :  { %3684 = vsyncadd [#allocation3], 4294923520 }
  0x24   :  { %3685 = dma.done.wait [#allocation5], 96  }
  0x25   :  { %3686 = vsyncadd [#allocation5], 4294967200  ;;  %v3126_v0 = vld [vmem:[#allocation2 + $0x4] ss:$24 sps:$4 sm:$0xff]   ;;  %v3130_v2 = vld [vmem:[#allocation2] ss:$24 sps:$4 sm:$0xff]  }
  0x26   :  { %v3128_v1 = vld [vmem:[#allocation2 + $0x604] ss:$24 sps:$4 sm:$0xff]   ;;  %2153 = vmatprep.subr.bf16.mxu1 %v3126_v0  ;;  %v3131_v3 = vld [vmem:[#allocation2 + $0x600] ss:$24 sps:$4 sm:$0xff]   ;;  %v3132_v4 = vld [vmem:[#allocation2 + $0x34] ss:$24 sps:$4 sm:$0xff]  }
  0x27   :  { %2239 = vmatprep.subr.bf16.mxu0 %v3128_v1  ;;  %2154 = vmatpush1.bf16.msra.mxu1 %v3130_v2  ;;  %v3134_v5 = vld [vmem:[#allocation2 + $0x634] ss:$24 sps:$4 sm:$0xff]   ;;  %v3136_v6 = vld [vmem:[#allocation2 + $0x30] ss:$24 sps:$4 sm:$0xff]   ;;  %v3138_v8 = vld [vmem:[#allocation2 + $0x64] ss:$24 sps:$4 sm:$0xff]  }
  0x28   :  { %2240 = vmatpush1.bf16.msra.mxu0 %v3131_v3  ;;  %2155 = vmatprep.subr.bf16.mxu1 %v3132_v4  ;;  %v3137_v7 = vld [vmem:[#allocation2 + $0x630] ss:$24 sps:$4 sm:$0xff]   ;;  %v3140_v9 = vld [vmem:[#allocation2 + $0x664] ss:$24 sps:$4 sm:$0xff]   ;;  %v3142_v10 = vld [vmem:[#allocation2 + $0x60] ss:$24 sps:$4 sm:$0xff]  }
  0x29   :  { %2241 = vmatprep.subr.bf16.mxu0 %v3134_v5  ;;  %v3143_v11 = vld [vmem:[#allocation2 + $0x660] ss:$24 sps:$4 sm:$0xff]   ;;  %v3144_v12 = vld [vmem:[#allocation2 + $0x94] ss:$24 sps:$4 sm:$0xff]   ;;  %v3148_v14 = vld [vmem:[#allocation2 + $0x90] ss:$24 sps:$4 sm:$0xff]  }
  0x2a   :  { %v3146_v13 = vld [vmem:[#allocation2 + $0x694] ss:$24 sps:$4 sm:$0xff]   ;;  %v3149_v15 = vld [vmem:[#allocation2 + $0x690] ss:$24 sps:$4 sm:$0xff]   ;;  %v3150_v16 = vld [vmem:[#allocation2 + $0xc4] ss:$24 sps:$4 sm:$0xff]  }
  0x2b   :  { %2156 = vmatpush1.bf16.msra.mxu1 %v3136_v6  ;;  %v3152_v17 = vld [vmem:[#allocation2 + $0x6c4] ss:$24 sps:$4 sm:$0xff]   ;;  %v3154_v18 = vld [vmem:[#allocation2 + $0xc0] ss:$24 sps:$4 sm:$0xff]   ;;  %v3156_v20 = vld [vmem:[#allocation2 + $0xf4] ss:$24 sps:$4 sm:$0xff]  }
  0x2c   :  { %2242 = vmatpush1.bf16.msra.mxu0 %v3137_v7  ;;  %2157 = vmatprep.subr.bf16.mxu1 %v3138_v8  ;;  %v3155_v19 = vld [vmem:[#allocation2 + $0x6c0] ss:$24 sps:$4 sm:$0xff]   ;;  %v3158_v21 = vld [vmem:[#allocation2 + $0x6f4] ss:$24 sps:$4 sm:$0xff]   ;;  %v3160_v22 = vld [vmem:[#allocation2 + $0xf0] ss:$24 sps:$4 sm:$0xff]  }
  0x2d   :  { %2243 = vmatprep.subr.bf16.mxu0 %v3140_v9  ;;  %v3161_v23 = vld [vmem:[#allocation2 + $0x6f0] ss:$24 sps:$4 sm:$0xff]   ;;  %v3162_v24 = vld [vmem:[#allocation2 + $0x124] ss:$24 sps:$4 sm:$0xff]   ;;  %v3166_v26 = vld [vmem:[#allocation2 + $0x120] ss:$24 sps:$4 sm:$0xff]  }
  0x2e   :  { %v3164_v25 = vld [vmem:[#allocation2 + $0x724] ss:$24 sps:$4 sm:$0xff]   ;;  %v3167_v27 = vld [vmem:[#allocation2 + $0x720] ss:$24 sps:$4 sm:$0xff]   ;;  %v3168_v28 = vld [vmem:[#allocation2 + $0x154] ss:$24 sps:$4 sm:$0xff]  }
  0x2f   :  { %2158 = vmatpush1.bf16.msra.mxu1 %v3142_v10  ;;  %v3170_v29 = vld [vmem:[#allocation2 + $0x754] ss:$24 sps:$4 sm:$0xff]   ;;  %v3172_v30 = vld [vmem:[#allocation2 + $0x150] ss:$24 sps:$4 sm:$0xff]   ;;  %v3174_v32 = vld [vmem:[#allocation2 + $0x184] ss:$24 sps:$4 sm:$0xff]  }
  0x30   :  { %2244 = vmatpush1.bf16.msra.mxu0 %v3143_v11  ;;  %2159 = vmatprep.subr.bf16.mxu1 %v3144_v12  ;;  %v3173_v31 = vld [vmem:[#allocation2 + $0x750] ss:$24 sps:$4 sm:$0xff]   ;;  %v3176_v33 = vld [vmem:[#allocation2 + $0x784] ss:$24 sps:$4 sm:$0xff]   ;;  %v3178_v34 = vld [vmem:[#allocation2 + $0x180] ss:$24 sps:$4 sm:$0xff]  }
  0x31   :  { %2245 = vmatprep.subr.bf16.mxu0 %v3146_v13  ;;  %v3179_v35 = vld [vmem:[#allocation2 + $0x780] ss:$24 sps:$4 sm:$0xff]   ;;  %v3180_v36 = vld [vmem:[#allocation2 + $0x1b4] ss:$24 sps:$4 sm:$0xff]   ;;  %v3184_v38 = vld [vmem:[#allocation2 + $0x1b0] ss:$24 sps:$4 sm:$0xff]  }
  0x32   :  { %v3182_v37 = vld [vmem:[#allocation2 + $0x7b4] ss:$24 sps:$4 sm:$0xff]   ;;  %v3185_v39 = vld [vmem:[#allocation2 + $0x7b0] ss:$24 sps:$4 sm:$0xff]   ;;  %v3186_v40 = vld [vmem:[#allocation2 + $0x1e4] ss:$24 sps:$4 sm:$0xff]  }
  0x33   :  { %2160 = vmatpush1.bf16.msra.mxu1 %v3148_v14  ;;  %v3188_v41 = vld [vmem:[#allocation2 + $0x7e4] ss:$24 sps:$4 sm:$0xff]   ;;  %v3190_v42 = vld [vmem:[#allocation2 + $0x1e0] ss:$24 sps:$4 sm:$0xff]   ;;  %v3192_v44 = vld [vmem:[#allocation2 + $0x214] ss:$24 sps:$4 sm:$0xff]  }
  0x34   :  { %2246 = vmatpush1.bf16.msra.mxu0 %v3149_v15  ;;  %2161 = vmatprep.subr.bf16.mxu1 %v3150_v16  ;;  %v3191_v43 = vld [vmem:[#allocation2 + $0x7e0] ss:$24 sps:$4 sm:$0xff]   ;;  %v3194_v45 = vld [vmem:[#allocation2 + $0x814] ss:$24 sps:$4 sm:$0xff]   ;;  %v3196_v46 = vld [vmem:[#allocation2 + $0x210] ss:$24 sps:$4 sm:$0xff]  }
  0x35   :  { %2247 = vmatprep.subr.bf16.mxu0 %v3152_v17  ;;  %v3197_v47 = vld [vmem:[#allocation2 + $0x810] ss:$24 sps:$4 sm:$0xff]   ;;  %v3198_v50 = vld [vmem:[#allocation2 + $0x244] ss:$24 sps:$4 sm:$0xff]   ;;  %v3202_v56 = vld [vmem:[#allocation2 + $0x240] ss:$24 sps:$4 sm:$0xff]  }
  0x36   :  { %v42_v48 = vld [vmem:[%s3861_s0 + $0x8] sm:$0xff]  ;;  %v3200_v51 = vld [vmem:[#allocation2 + $0x844] ss:$24 sps:$4 sm:$0xff]   ;;  %v3203_v57 = vld [vmem:[#allocation2 + $0x840] ss:$24 sps:$4 sm:$0xff]   ;;  %vm2149_vm0 = vcmask 130048  }
  0x37   :  { %2162 = vmatpush1.bf16.msra.mxu1 %v3154_v18  ;;  %v50_v49 = vld [vmem:[%s3861_s0 + $0x48] sm:$0xff]  ;;  %v3210_v62 = vld [vmem:[#allocation2 + $0x2a4] ss:$24 sps:$4 sm:$0xff]   ;;  %v3214_v0 = vld [vmem:[#allocation2 + $0x2a0] ss:$24 sps:$4 sm:$0xff]  }
  0x38   :  { %2248 = vmatpush1.bf16.msra.mxu0 %v3155_v19  ;;  %2163 = vmatprep.subr.bf16.mxu1 %v3156_v20  ;;  %v3741_v52 = vpack.c.bf16 %v50_v49, %v42_v48  ;;  %v46_v53 = vld [vmem:[%s3861_s0 + $0x28] sm:$0xff]  ;;  %v3212_v63 = vld [vmem:[#allocation2 + $0x8a4] ss:$24 sps:$4 sm:$0xff]   ;;  %v3215_v1 = vld [vmem:[#allocation2 + $0x8a0] ss:$24 sps:$4 sm:$0xff]  }
  0x39   :  { %2249 = vmatprep.subr.bf16.mxu0 %v3158_v21  ;;  %v54_v54 = vld [vmem:[%s3861_s0 + $0x68] sm:$0xff]  ;;  %v41_v6 = vld [vmem:[%s3861_s0] sm:$0xff] }
  0x3a   :  { %2185 = vmatprep.mubr.bf16.mxu1 %v3741_v52  ;;  %v3750_v55 = vpack.c.bf16 %v54_v54, %v46_v53  ;;  %v3204_v58 = vld [vmem:[#allocation2 + $0x274] ss:$24 sps:$4 sm:$0xff]   ;;  %v3208_v60 = vld [vmem:[#allocation2 + $0x270] ss:$24 sps:$4 sm:$0xff]   ;;  %v3224_v7 = vld [vmem:[#allocation2 + $0x304] ss:$24 sps:$4 sm:$0xff]  }
  0x3b   :  { %2164 = vmatpush1.bf16.msra.mxu1 %v3160_v22  ;;  %v3206_v59 = vld [vmem:[#allocation2 + $0x874] ss:$24 sps:$4 sm:$0xff]   ;;  %v3209_v61 = vld [vmem:[#allocation2 + $0x870] ss:$24 sps:$4 sm:$0xff]   ;;  %v49_v8 = vld [vmem:[%s3861_s0 + $0x40] sm:$0xff] }
  0x3c   :  { %2250 = vmatpush1.bf16.msra.mxu0 %v3161_v23  ;;  %2165 = vmatprep.subr.bf16.mxu1 %v3162_v24  ;;  %v3216_v2 = vld [vmem:[#allocation2 + $0x2d4] ss:$24 sps:$4 sm:$0xff]   ;;  %v3220_v4 = vld [vmem:[#allocation2 + $0x2d0] ss:$24 sps:$4 sm:$0xff]   ;;  %v45_v9 = vld [vmem:[%s3861_s0 + $0x20] sm:$0xff]  ;;  %v3765_v14 = vpack.c.bf16 %v49_v8, %v41_v6 }
  0x3d   :  { %2251 = vmatprep.subr.bf16.mxu0 %v3164_v25  ;;  %2271 = vmatprep.mubr.bf16.mxu0 %v3750_v55  ;;  %v3218_v3 = vld [vmem:[#allocation2 + $0x8d4] ss:$24 sps:$4 sm:$0xff]   ;;  %v3221_v5 = vld [vmem:[#allocation2 + $0x8d0] ss:$24 sps:$4 sm:$0xff]   ;;  %v53_v10 = vld [vmem:[%s3861_s0 + $0x60] sm:$0xff] }
  0x3e   :  { %v3227_v11 = vld [vmem:[#allocation2 + $0x904] ss:$24 sps:$4 sm:$0xff]   ;;  %v3222_v12 = vld [vmem:[#allocation2 + $0x300] ss:$24 sps:$4 sm:$0xff]   ;;  %v3767_v15 = vpack.c.bf16 %v53_v10, %v45_v9  ;;  %v3230_v16 = vld [vmem:[#allocation2 + $0x334] ss:$24 sps:$4 sm:$0xff]  }
  0x3f   :  { %2166 = vmatpush1.bf16.msra.mxu1 %v3166_v26  ;;  %v3225_v13 = vld [vmem:[#allocation2 + $0x900] ss:$24 sps:$4 sm:$0xff]   ;;  %v3233_v17 = vld [vmem:[#allocation2 + $0x934] ss:$24 sps:$4 sm:$0xff]   ;;  %v3228_v18 = vld [vmem:[#allocation2 + $0x330] ss:$24 sps:$4 sm:$0xff]  }
  0x40   :  { %2252 = vmatpush1.bf16.msra.mxu0 %v3167_v27  ;;  %2167 = vmatprep.subr.bf16.mxu1 %v3168_v28  ;;  %v3231_v19 = vld [vmem:[#allocation2 + $0x930] ss:$24 sps:$4 sm:$0xff]   ;;  %v3236_v20 = vld [vmem:[#allocation2 + $0x364] ss:$24 sps:$4 sm:$0xff]   ;;  %v3234_v25 = vld [vmem:[#allocation2 + $0x360] ss:$24 sps:$4 sm:$0xff]  }
  0x41   :  { %2253 = vmatprep.subr.bf16.mxu0 %v3170_v29  ;;  %v3239_v21 = vld [vmem:[#allocation2 + $0x964] ss:$24 sps:$4 sm:$0xff]   ;;  %v3237_v26 = vld [vmem:[#allocation2 + $0x960] ss:$24 sps:$4 sm:$0xff]   ;;  %v3242_v27 = vld [vmem:[#allocation2 + $0x394] ss:$24 sps:$4 sm:$0xff]  }
  0x42   :  { %v48_v22 = vld [vmem:[%s3861_s0 + $0x38] sm:$0xff]  ;;  %v3245_v28 = vld [vmem:[#allocation2 + $0x994] ss:$24 sps:$4 sm:$0xff]   ;;  %v3240_v29 = vld [vmem:[#allocation2 + $0x390] ss:$24 sps:$4 sm:$0xff]  }
  0x43   :  { %2168 = vmatpush1.bf16.msra.mxu1 %v3172_v30  ;;  %v56_v23 = vld [vmem:[%s3861_s0 + $0x78] sm:$0xff]  ;;  %v3243_v30 = vld [vmem:[#allocation2 + $0x990] ss:$24 sps:$4 sm:$0xff]  }
  0x44   :  { %2254 = vmatpush1.bf16.msra.mxu0 %v3173_v31  ;;  %2169 = vmatprep.subr.bf16.mxu1 %v3174_v32  ;;  %v3777_v24 = vpack.c.bf16 %v56_v23, %v48_v22  ;;  %v3248_v31 = vld [vmem:[#allocation2 + $0x3c4] ss:$24 sps:$4 sm:$0xff]   ;;  %v3264_v48 = vld [vmem:[#allocation2 + $0x450] ss:$24 sps:$4 sm:$0xff]   ;;  %v3270_v53 = vld [vmem:[#allocation2 + $0x480] ss:$24 sps:$4 sm:$0xff]  }
  0x45   :  { %2255 = vmatprep.subr.bf16.mxu0 %v3176_v33  ;;  %v3251_v32 = vld [vmem:[#allocation2 + $0x9c4] ss:$24 sps:$4 sm:$0xff]   ;;  %v3246_v33 = vld [vmem:[#allocation2 + $0x3c0] ss:$24 sps:$4 sm:$0xff]   ;;  %v3267_v49 = vld [vmem:[#allocation2 + $0xa50] ss:$24 sps:$4 sm:$0xff]  }
  0x46   :  { %v3273_v54 = vld [vmem:[#allocation2 + $0xa80] ss:$24 sps:$4 sm:$0xff]   ;;  %v3291_v6 = vld [vmem:[#allocation2 + $0x70] ss:$24 sps:$4 sm:$0xff]   ;;  %v3299_v8 = vld [vmem:[#allocation2 + $0xa4] ss:$24 sps:$4 sm:$0xff]  }
  0x47   :  { %2170 = vmatpush1.bf16.msra.mxu1 %v3178_v34  ;;  %v3249_v34 = vld [vmem:[#allocation2 + $0x9c0] ss:$24 sps:$4 sm:$0xff]   ;;  %v3317_v22 = vld [vmem:[#allocation2 + $0x134] ss:$24 sps:$4 sm:$0xff]   ;;  %v3312_v23 = vld [vmem:[#allocation2 + $0x5d0] ss:$24 sps:$4 sm:$0xff]  }
  0x48   :  { %2256 = vmatpush1.bf16.msra.mxu0 %v3179_v35  ;;  %2171 = vmatprep.subr.bf16.mxu1 %v3180_v36  ;;  %v3254_v35 = vld [vmem:[#allocation2 + $0x3f4] ss:$24 sps:$4 sm:$0xff]   ;;  %v3294_v9 = vld [vmem:[#allocation2 + $0x540] ss:$24 sps:$4 sm:$0xff]  }
  0x49   :  { %2257 = vmatprep.subr.bf16.mxu0 %v3182_v37  ;;  %v3257_v36 = vld [vmem:[#allocation2 + $0x9f4] ss:$24 sps:$4 sm:$0xff]   ;;  %v3252_v37 = vld [vmem:[#allocation2 + $0x3f0] ss:$24 sps:$4 sm:$0xff]   ;;  %v3297_v10 = vld [vmem:[#allocation2 + $0xa0] ss:$24 sps:$4 sm:$0xff]  }
  0x4b   :  { %2172 = vmatpush1.bf16.msra.mxu1 %v3184_v38  ;;  %v3255_v38 = vld [vmem:[#allocation2 + $0x9f0] ss:$24 sps:$4 sm:$0xff]  }
  0x4c   :  { %2258 = vmatpush1.bf16.msra.mxu0 %v3185_v39  ;;  %2173 = vmatprep.subr.bf16.mxu1 %v3186_v40  ;;  %v3260_v39 = vld [vmem:[#allocation2 + $0x424] ss:$24 sps:$4 sm:$0xff]  }
  0x4d   :  { %2259 = vmatprep.subr.bf16.mxu0 %v3188_v41  ;;  %v3263_v40 = vld [vmem:[#allocation2 + $0xa24] ss:$24 sps:$4 sm:$0xff]   ;;  %v3258_v41 = vld [vmem:[#allocation2 + $0x420] ss:$24 sps:$4 sm:$0xff]  }
  0x4f   :  { %2174 = vmatpush1.bf16.msra.mxu1 %v3190_v42  ;;  %v3261_v42 = vld [vmem:[#allocation2 + $0xa20] ss:$24 sps:$4 sm:$0xff]  }
  0x50   :  { %2260 = vmatpush1.bf16.msra.mxu0 %v3191_v43  ;;  %2175 = vmatprep.subr.bf16.mxu1 %v3192_v44  ;;  %v3266_v43 = vld [vmem:[#allocation2 + $0x454] ss:$24 sps:$4 sm:$0xff]  }
  0x51   :  { %2261 = vmatprep.subr.bf16.mxu0 %v3194_v45  ;;  %v3269_v44 = vld [vmem:[#allocation2 + $0xa54] ss:$24 sps:$4 sm:$0xff]   ;;  %v44_v45 = vld [vmem:[%s3861_s0 + $0x18] sm:$0xff] }
  0x53   :  { %2176 = vmatpush1.bf16.msra.mxu1 %v3196_v46  ;;  %v52_v46 = vld [vmem:[%s3861_s0 + $0x58] sm:$0xff] }
  0x54   :  { %2262 = vmatpush1.bf16.msra.mxu0 %v3197_v47  ;;  %2177 = vmatprep.subr.bf16.mxu1 %v3198_v50  ;;  %v3787_v47 = vpack.c.bf16 %v52_v46, %v44_v45  ;;  %v3272_v50 = vld [vmem:[#allocation2 + $0x484] ss:$24 sps:$4 sm:$0xff]  }
  0x55   :  { %2263 = vmatprep.subr.bf16.mxu0 %v3200_v51  ;;  %v3275_v51 = vld [vmem:[#allocation2 + $0xa84] ss:$24 sps:$4 sm:$0xff]  }
  0x56   :  { %v3344_v45 = vld [vmem:[#allocation2 + $0xcc] ss:$24 sps:$4 sm:$0xff]  }
  0x57   :  { %2178 = vmatpush1.bf16.msra.mxu1 %v3202_v56  ;;  %v3278_v56 = vld [vmem:[#allocation2 + $0x4b4] ss:$24 sps:$4 sm:$0xff]   ;;  %v3347_v46 = vld [vmem:[#allocation2 + $0x224] ss:$24 sps:$4 sm:$0xff]  }
  0x58   :  { %2264 = vmatpush1.bf16.msra.mxu0 %v3203_v57  ;;  %2179 = vmatprep.subr.bf16.mxu1 %v3204_v58  ;;  %v47_v57 = vld [vmem:[%s3861_s0 + $0x30] sm:$0xff] }
  0x59   :  { %2265 = vmatprep.subr.bf16.mxu0 %v3206_v59  ;;  %v55_v58 = vld [vmem:[%s3861_s0 + $0x70] sm:$0xff] }
  0x5a   :  { %v3281_v59 = vld [vmem:[#allocation2 + $0x14] ss:$24 sps:$4 sm:$0xff]  }
  0x5b   :  { %2180 = vmatpush1.bf16.msra.mxu1 %v3208_v60  ;;  %v3276_v60 = vld [vmem:[#allocation2 + $0x4b0] ss:$24 sps:$4 sm:$0xff]  }
  0x5c   :  { %2266 = vmatpush1.bf16.msra.mxu0 %v3209_v61  ;;  %2181 = vmatprep.subr.bf16.mxu1 %v3210_v62  ;;  %v3796_v61 = vpack.c.bf16 %v55_v58, %v47_v57  ;;  %v3279_v62 = vld [vmem:[#allocation2 + $0x10] ss:$24 sps:$4 sm:$0xff]   ;;  %v3357_v58 = vld [vmem:[#allocation2 + $0x280] ss:$24 sps:$4 sm:$0xff]  }
  0x5d   :  { %2267 = vmatprep.subr.bf16.mxu0 %v3212_v63  ;;  %v3284_v63 = vld [vmem:[#allocation2 + $0x4e4] ss:$24 sps:$4 sm:$0xff]   ;;  %v3354_v57 = vld [vmem:[#allocation2 + $0x128] ss:$24 sps:$4 sm:$0xff]  }
  0x5f   :  { %2182 = vmatpush1.bf16.msra.mxu1 %v3214_v0  ;;  %v3287_v0 = vld [vmem:[#allocation2 + $0x44] ss:$24 sps:$4 sm:$0xff]  }
  0x60   :  { %2268 = vmatpush1.bf16.msra.mxu0 %v3215_v1  ;;  %2183 = vmatprep.subr.bf16.mxu1 %v3216_v2  ;;  %v3282_v1 = vld [vmem:[#allocation2 + $0x4e0] ss:$24 sps:$4 sm:$0xff]  }
  0x61   :  { %2269 = vmatprep.subr.bf16.mxu0 %v3218_v3  ;;  %v3285_v2 = vld [vmem:[#allocation2 + $0x40] ss:$24 sps:$4 sm:$0xff]   ;;  %v3290_v3 = vld [vmem:[#allocation2 + $0x514] ss:$24 sps:$4 sm:$0xff]  }
  0x63   :  { %2184 = vmatpush1.bf16.msra.mxu1 %v3220_v4  ;;  %v3293_v4 = vld [vmem:[#allocation2 + $0x74] ss:$24 sps:$4 sm:$0xff]  }
  0x64   :  { %2270 = vmatpush1.bf16.msra.mxu0 %v3221_v5  ;;  %2196 = vmatprep.subr.bf16.mxu1 %v3224_v7  ;;  %v3288_v5 = vld [vmem:[#allocation2 + $0x510] ss:$24 sps:$4 sm:$0xff]   ;;  %v3296_v7 = vld [vmem:[#allocation2 + $0x544] ss:$24 sps:$4 sm:$0xff]  }
  0x65   :  { %2282 = vmatprep.subr.bf16.mxu0 %v3227_v11  ;;  %v3302_v11 = vld [vmem:[#allocation2 + $0x574] ss:$24 sps:$4 sm:$0xff]  }
  0x66   :  { %2186 = vmatmul.mubr.bf16.vlgmr.msra.gmra.mrb[0].mxu1 %v3765_v14 }
  0x67   :  { %2272 = vmatmul.mubr.bf16.vlgmr.msra.gmra.mrb[0].mxu0 %v3767_v15  ;;  %2197 = vmatpush1.bf16.msra.mxu1 %v3222_v12  ;;  %v3305_v12 = vld [vmem:[#allocation2 + $0xd4] ss:$24 sps:$4 sm:$0xff]  }
  0x68   :  { %2283 = vmatpush1.bf16.msra.mxu0 %v3225_v13  ;;  %2198 = vmatprep.subr.bf16.mxu1 %v3230_v16  ;;  %v3300_v13 = vld [vmem:[#allocation2 + $0x570] ss:$24 sps:$4 sm:$0xff]  }
  0x69   :  { %2284 = vmatprep.subr.bf16.mxu0 %v3233_v17  ;;  %3059 = vmatprep.mubr.msk.bf16.mxu0 %vm2149_vm0, %v3777_v24  ;;  %v3303_v16 = vld [vmem:[#allocation2 + $0xd0] ss:$24 sps:$4 sm:$0xff]   ;;  %v3308_v17 = vld [vmem:[#allocation2 + $0x5a4] ss:$24 sps:$4 sm:$0xff]  }
  0x6a   :  { %2228 = vmatprep.mubr.bf16.mxu1 %v3787_v47 }
  0x6b   :  { %2199 = vmatpush1.bf16.msra.mxu1 %v3228_v18  ;;  %v3311_v18 = vld [vmem:[#allocation2 + $0x104] ss:$24 sps:$4 sm:$0xff]  }
  0x6c   :  { %2285 = vmatpush1.bf16.msra.mxu0 %v3231_v19  ;;  %2200 = vmatprep.subr.bf16.mxu1 %v3236_v20  ;;  %v3306_v19 = vld [vmem:[#allocation2 + $0x5a0] ss:$24 sps:$4 sm:$0xff]  }
  0x6d   :  { %2286 = vmatprep.subr.bf16.mxu0 %v3239_v21  ;;  %v3309_v20 = vld [vmem:[#allocation2 + $0x100] ss:$24 sps:$4 sm:$0xff]   ;;  %v3314_v21 = vld [vmem:[#allocation2 + $0x5d4] ss:$24 sps:$4 sm:$0xff]  }
  0x6f   :  { %2201 = vmatpush1.bf16.msra.mxu1 %v3234_v25  ;;  %v3315_v25 = vld [vmem:[#allocation2 + $0x130] ss:$24 sps:$4 sm:$0xff]  }
  0x70   :  { %2287 = vmatpush1.bf16.msra.mxu0 %v3237_v26  ;;  %2202 = vmatprep.subr.bf16.mxu1 %v3242_v27  ;;  %v43_v26 = vld [vmem:[%s3861_s0 + $0x10] sm:$0xff] }
  0x71   :  { %2288 = vmatprep.subr.bf16.mxu0 %v3245_v28  ;;  %v51_v27 = vld [vmem:[%s3861_s0 + $0x50] sm:$0xff]  ;;  %v3320_v28 = vld [vmem:[#allocation2 + $0xc] ss:$24 sps:$4 sm:$0xff]  }
  0x73   :  { %2203 = vmatpush1.bf16.msra.mxu1 %v3240_v29  ;;  %v3323_v29 = vld [vmem:[#allocation2 + $0x164] ss:$24 sps:$4 sm:$0xff]  }
  0x74   :  { %2289 = vmatpush1.bf16.msra.mxu0 %v3243_v30  ;;  %2204 = vmatprep.subr.bf16.mxu1 %v3248_v31  ;;  %v3806_v30 = vpack.c.bf16 %v51_v27, %v43_v26  ;;  %v3318_v31 = vld [vmem:[#allocation2 + $0x8] ss:$24 sps:$4 sm:$0xff]   ;;  %v3404_v27 = vld [vmem:[#allocation2 + $0x2ac] ss:$24 sps:$4 sm:$0xff]  }
  0x75   :  { %2290 = vmatprep.subr.bf16.mxu0 %v3251_v32  ;;  %v3321_v32 = vld [vmem:[#allocation2 + $0x160] ss:$24 sps:$4 sm:$0xff]   ;;  %v3399_v26 = vld [vmem:[#allocation2 + $0x3d0] ss:$24 sps:$4 sm:$0xff]  }
  0x77   :  { %2205 = vmatpush1.bf16.msra.mxu1 %v3246_v33  ;;  %v3326_v33 = vld [vmem:[#allocation2 + $0x3c] ss:$24 sps:$4 sm:$0xff]  }
  0x78   :  { %2291 = vmatpush1.bf16.msra.mxu0 %v3249_v34  ;;  %2206 = vmatprep.subr.bf16.mxu1 %v3254_v35  ;;  %v3329_v34 = vld [vmem:[#allocation2 + $0x194] ss:$24 sps:$4 sm:$0xff]   ;;  %v3324_v35 = vld [vmem:[#allocation2 + $0x38] ss:$24 sps:$4 sm:$0xff]  }
  0x79   :  { %2292 = vmatprep.subr.bf16.mxu0 %v3257_v36  ;;  %v3327_v36 = vld [vmem:[#allocation2 + $0x190] ss:$24 sps:$4 sm:$0xff]  }
  0x7b   :  { %2207 = vmatpush1.bf16.msra.mxu1 %v3252_v37  ;;  %v3332_v37 = vld [vmem:[#allocation2 + $0x6c] ss:$24 sps:$4 sm:$0xff]  }
  0x7c   :  { %2293 = vmatpush1.bf16.msra.mxu0 %v3255_v38  ;;  %2208 = vmatprep.subr.bf16.mxu1 %v3260_v39  ;;  %v3335_v38 = vld [vmem:[#allocation2 + $0x1c4] ss:$24 sps:$4 sm:$0xff]   ;;  %v3330_v39 = vld [vmem:[#allocation2 + $0x68] ss:$24 sps:$4 sm:$0xff]  }
  0x7d   :  { %2294 = vmatprep.subr.bf16.mxu0 %v3263_v40  ;;  %v3333_v40 = vld [vmem:[#allocation2 + $0x1c0] ss:$24 sps:$4 sm:$0xff]  }
  0x7f   :  { %2209 = vmatpush1.bf16.msra.mxu1 %v3258_v41  ;;  %v3338_v41 = vld [vmem:[#allocation2 + $0x9c] ss:$24 sps:$4 sm:$0xff]  }
  0x80   :  { %2295 = vmatpush1.bf16.msra.mxu0 %v3261_v42  ;;  %2210 = vmatprep.subr.bf16.mxu1 %v3266_v43  ;;  %v3341_v42 = vld [vmem:[#allocation2 + $0x1f4] ss:$24 sps:$4 sm:$0xff]   ;;  %v3336_v43 = vld [vmem:[#allocation2 + $0x98] ss:$24 sps:$4 sm:$0xff]  }
  0x81   :  { %2296 = vmatprep.subr.bf16.mxu0 %v3269_v44  ;;  %v3339_v44 = vld [vmem:[#allocation2 + $0x1f0] ss:$24 sps:$4 sm:$0xff]  }
  0x83   :  { %2211 = vmatpush1.bf16.msra.mxu1 %v3264_v48  ;;  %v3342_v48 = vld [vmem:[#allocation2 + $0xc8] ss:$24 sps:$4 sm:$0xff]  }
  0x84   :  { %2297 = vmatpush1.bf16.msra.mxu0 %v3267_v49  ;;  %2212 = vmatprep.subr.bf16.mxu1 %v3272_v50  ;;  %v3345_v49 = vld [vmem:[#allocation2 + $0x220] ss:$24 sps:$4 sm:$0xff]   ;;  %v3353_v50 = vld [vmem:[#allocation2 + $0x254] ss:$24 sps:$4 sm:$0xff]  }
  0x85   :  { %2298 = vmatprep.subr.bf16.mxu0 %v3275_v51  ;;  %v3348_v51 = vld [vmem:[#allocation2 + $0xf8] ss:$24 sps:$4 sm:$0xff]  }
  0x87   :  { %2213 = vmatpush1.bf16.msra.mxu1 %v3270_v53  ;;  %v3351_v53 = vld [vmem:[#allocation2 + $0x250] ss:$24 sps:$4 sm:$0xff]  }
  0x88   :  { %2299 = vmatpush1.bf16.msra.mxu0 %v3273_v54  ;;  %2214 = vmatprep.subr.bf16.mxu1 %v3278_v56  ;;  %v3356_v54 = vld [vmem:[#allocation2 + $0x12c] ss:$24 sps:$4 sm:$0xff]  }
  0x89   :  { %2497 = vmatprep.subr.bf16.mxu0 %v3281_v59  ;;  %v3359_v56 = vld [vmem:[#allocation2 + $0x284] ss:$24 sps:$4 sm:$0xff]  }
  0x8a   :  { %v3362_v59 = vld [vmem:[#allocation2 + $0x15c] ss:$24 sps:$4 sm:$0xff]  }
  0x8b   :  { %2315 = vmatmul.mubr.bf16.vlgmr.msra.gmra.mrb[0].mxu0 %v3796_v61  ;;  %2215 = vmatpush1.bf16.msra.mxu1 %v3276_v60  ;;  %v3365_v60 = vld [vmem:[#allocation2 + $0x2b4] ss:$24 sps:$4 sm:$0xff]  }
  0x8c   :  { %2498 = vmatpush1.bf16.msra.mxu0 %v3279_v62  ;;  %2216 = vmatprep.subr.bf16.mxu1 %v3284_v63  ;;  %v3360_v62 = vld [vmem:[#allocation2 + $0x158] ss:$24 sps:$4 sm:$0xff]  }
  0x8d   :  { %2499 = vmatprep.subr.bf16.mxu0 %v3287_v0  ;;  %2529 = vmatprep.mubr.bf16.mxu0 %v3741_v52  ;;  %v3363_v63 = vld [vmem:[#allocation2 + $0x2b0] ss:$24 sps:$4 sm:$0xff]   ;;  %v3368_v0 = vld [vmem:[#allocation2 + $0x18c] ss:$24 sps:$4 sm:$0xff]  }
  0x8f   :  { %2217 = vmatpush1.bf16.msra.mxu1 %v3282_v1  ;;  %v3371_v1 = vld [vmem:[#allocation2 + $0x2e4] ss:$24 sps:$4 sm:$0xff]  }
  0x90   :  { %2500 = vmatpush1.bf16.msra.mxu0 %v3285_v2  ;;  %2218 = vmatprep.subr.bf16.mxu1 %v3290_v3  ;;  %v3366_v2 = vld [vmem:[#allocation2 + $0x188] ss:$24 sps:$4 sm:$0xff]  }
  0x91   :  { %2501 = vmatprep.subr.bf16.mxu0 %v3293_v4  ;;  %v3369_v3 = vld [vmem:[#allocation2 + $0x2e0] ss:$24 sps:$4 sm:$0xff]   ;;  %v3374_v4 = vld [vmem:[#allocation2 + $0x1bc] ss:$24 sps:$4 sm:$0xff]  }
  0x93   :  { %2219 = vmatpush1.bf16.msra.mxu1 %v3288_v5  ;;  %v3377_v5 = vld [vmem:[#allocation2 + $0x314] ss:$24 sps:$4 sm:$0xff]  }
  0x94   :  { %2502 = vmatpush1.bf16.msra.mxu0 %v3291_v6  ;;  %2220 = vmatprep.subr.bf16.mxu1 %v3296_v7  ;;  %v3372_v6 = vld [vmem:[#allocation2 + $0x1b8] ss:$24 sps:$4 sm:$0xff]  }
  0x95   :  { %2503 = vmatprep.subr.bf16.mxu0 %v3299_v8  ;;  %v3375_v7 = vld [vmem:[#allocation2 + $0x310] ss:$24 sps:$4 sm:$0xff]   ;;  %v3380_v8 = vld [vmem:[#allocation2 + $0x1ec] ss:$24 sps:$4 sm:$0xff]  }
  0x97   :  { %2221 = vmatpush1.bf16.msra.mxu1 %v3294_v9  ;;  %v3383_v9 = vld [vmem:[#allocation2 + $0x344] ss:$24 sps:$4 sm:$0xff]  }
  0x98   :  { %2504 = vmatpush1.bf16.msra.mxu0 %v3297_v10  ;;  %2222 = vmatprep.subr.bf16.mxu1 %v3302_v11  ;;  %v3378_v10 = vld [vmem:[#allocation2 + $0x1e8] ss:$24 sps:$4 sm:$0xff]  }
  0x99   :  { %2505 = vmatprep.subr.bf16.mxu0 %v3305_v12  ;;  %v3381_v11 = vld [vmem:[#allocation2 + $0x340] ss:$24 sps:$4 sm:$0xff]   ;;  %v3386_v12 = vld [vmem:[#allocation2 + $0x21c] ss:$24 sps:$4 sm:$0xff]  }
  0x9b   :  { %2223 = vmatpush1.bf16.msra.mxu1 %v3300_v13  ;;  %v3389_v13 = vld [vmem:[#allocation2 + $0x374] ss:$24 sps:$4 sm:$0xff]  }
  0x9c   :  { %2506 = vmatpush1.bf16.msra.mxu0 %v3303_v16  ;;  %2224 = vmatprep.subr.bf16.mxu1 %v3308_v17  ;;  %v3384_v16 = vld [vmem:[#allocation2 + $0x218] ss:$24 sps:$4 sm:$0xff]  }
  0x9d   :  { %2507 = vmatprep.subr.bf16.mxu0 %v3311_v18  ;;  %v3387_v17 = vld [vmem:[#allocation2 + $0x370] ss:$24 sps:$4 sm:$0xff]   ;;  %v3392_v18 = vld [vmem:[#allocation2 + $0x24c] ss:$24 sps:$4 sm:$0xff]  }
  0x9f   :  { %2225 = vmatpush1.bf16.msra.mxu1 %v3306_v19  ;;  %v3395_v19 = vld [vmem:[#allocation2 + $0x3a4] ss:$24 sps:$4 sm:$0xff]  }
  0xa0   :  { %2508 = vmatpush1.bf16.msra.mxu0 %v3309_v20  ;;  %2226 = vmatprep.subr.bf16.mxu1 %v3314_v21  ;;  %v3390_v20 = vld [vmem:[#allocation2 + $0x248] ss:$24 sps:$4 sm:$0xff]  }
  0xa1   :  { %2509 = vmatprep.subr.bf16.mxu0 %v3317_v22  ;;  %v3393_v21 = vld [vmem:[#allocation2 + $0x3a0] ss:$24 sps:$4 sm:$0xff]   ;;  %v3398_v22 = vld [vmem:[#allocation2 + $0x27c] ss:$24 sps:$4 sm:$0xff]  }
  0xa3   :  { %2227 = vmatpush1.bf16.msra.mxu1 %v3312_v23  ;;  %v3401_v23 = vld [vmem:[#allocation2 + $0x3d4] ss:$24 sps:$4 sm:$0xff]  }
  0xa4   :  { %2510 = vmatpush1.bf16.msra.mxu0 %v3315_v25  ;;  %2325 = vmatprep.subr.bf16.mxu1 %v3320_v28  ;;  %v3396_v25 = vld [vmem:[#allocation2 + $0x278] ss:$24 sps:$4 sm:$0xff]   ;;  %v3407_v28 = vld [vmem:[#allocation2 + $0x404] ss:$24 sps:$4 sm:$0xff]  }
  0xa5   :  { %2511 = vmatprep.subr.bf16.mxu0 %v3323_v29  ;;  %v3402_v29 = vld [vmem:[#allocation2 + $0x2a8] ss:$24 sps:$4 sm:$0xff]  }
  0xa6   :  { %2229 = vmatmul.mubr.bf16.vlgmr.msra.gmra.mrb[0].mxu1 %v3806_v30 }
  0xa7   :  { %2326 = vmatpush1.bf16.msra.mxu1 %v3318_v31  ;;  %2357 = vmatprep.mubr.bf16.mxu1 %v3741_v52  ;;  %v3350_v52 = vld [vmem:[#allocation2 + $0xfc] ss:$24 sps:$4 sm:$0xff]   ;;  %v3405_v31 = vld [vmem:[#allocation2 + $0x400] ss:$24 sps:$4 sm:$0xff]  }
  0xa8   :  { %2512 = vmatpush1.bf16.msra.mxu0 %v3321_v32  ;;  %2327 = vmatprep.subr.bf16.mxu1 %v3326_v33  ;;  %v3410_v32 = vld [vmem:[#allocation2 + $0x2dc] ss:$24 sps:$4 sm:$0xff]  }
  0xa9   :  { %2513 = vmatprep.subr.bf16.mxu0 %v3329_v34  ;;  %v3413_v33 = vld [vmem:[#allocation2 + $0x434] ss:$24 sps:$4 sm:$0xff]   ;;  %v3408_v34 = vld [vmem:[#allocation2 + $0x2d8] ss:$24 sps:$4 sm:$0xff]  }
  0xab   :  { %2328 = vmatpush1.bf16.msra.mxu1 %v3324_v35  ;;  %v3411_v35 = vld [vmem:[#allocation2 + $0x430] ss:$24 sps:$4 sm:$0xff]  }
  0xac   :  { %2514 = vmatpush1.bf16.msra.mxu0 %v3327_v36  ;;  %2329 = vmatprep.subr.bf16.mxu1 %v3332_v37  ;;  %v3416_v36 = vld [vmem:[#allocation2 + $0x30c] ss:$24 sps:$4 sm:$0xff]  }
  0xad   :  { %2515 = vmatprep.subr.bf16.mxu0 %v3335_v38  ;;  %v3419_v37 = vld [vmem:[#allocation2 + $0x464] ss:$24 sps:$4 sm:$0xff]   ;;  %v3414_v38 = vld [vmem:[#allocation2 + $0x308] ss:$24 sps:$4 sm:$0xff]  }
  0xaf   :  { %2330 = vmatpush1.bf16.msra.mxu1 %v3330_v39  ;;  %v3417_v39 = vld [vmem:[#allocation2 + $0x460] ss:$24 sps:$4 sm:$0xff]  }
  0xb0   :  { %2516 = vmatpush1.bf16.msra.mxu0 %v3333_v40  ;;  %2331 = vmatprep.subr.bf16.mxu1 %v3338_v41  ;;  %v3422_v40 = vld [vmem:[#allocation2 + $0x33c] ss:$24 sps:$4 sm:$0xff]  }
  0xb1   :  { %2517 = vmatprep.subr.bf16.mxu0 %v3341_v42  ;;  %v3425_v41 = vld [vmem:[#allocation2 + $0x494] ss:$24 sps:$4 sm:$0xff]   ;;  %v3420_v42 = vld [vmem:[#allocation2 + $0x338] ss:$24 sps:$4 sm:$0xff]  }
  0xb3   :  { %2332 = vmatpush1.bf16.msra.mxu1 %v3336_v43  ;;  %v3423_v43 = vld [vmem:[#allocation2 + $0x490] ss:$24 sps:$4 sm:$0xff]  }
  0xb4   :  { %2518 = vmatpush1.bf16.msra.mxu0 %v3339_v44  ;;  %2333 = vmatprep.subr.bf16.mxu1 %v3344_v45  ;;  %v3428_v44 = vld [vmem:[#allocation2 + $0x36c] ss:$24 sps:$4 sm:$0xff]  }
  0xb5   :  { %2519 = vmatprep.subr.bf16.mxu0 %v3347_v46  ;;  %v3431_v45 = vld [vmem:[#allocation2 + $0x4c4] ss:$24 sps:$4 sm:$0xff]   ;;  %v3426_v46 = vld [vmem:[#allocation2 + $0x368] ss:$24 sps:$4 sm:$0xff]  }
  0xb7   :  { %2334 = vmatpush1.bf16.msra.mxu1 %v3342_v48  ;;  %v3429_v48 = vld [vmem:[#allocation2 + $0x4c0] ss:$24 sps:$4 sm:$0xff]  }
  0xb8   :  { %2520 = vmatpush1.bf16.msra.mxu0 %v3345_v49  ;;  %2335 = vmatprep.subr.bf16.mxu1 %v3350_v52  ;;  %v3434_v49 = vld [vmem:[#allocation2 + $0x39c] ss:$24 sps:$4 sm:$0xff]  }
  0xb9   :  { %2521 = vmatprep.subr.bf16.mxu0 %v3353_v50  ;;  %v3437_v52 = vld [vmem:[#allocation2 + $0x4f4] ss:$24 sps:$4 sm:$0xff]   ;;  %v3432_v50 = vld [vmem:[#allocation2 + $0x398] ss:$24 sps:$4 sm:$0xff]  }
  0xbb   :  { %2336 = vmatpush1.bf16.msra.mxu1 %v3348_v51  ;;  %v3440_v51 = vld [vmem:[#allocation2 + $0x3cc] ss:$24 sps:$4 sm:$0xff]  }
  0xbc   :  { %2522 = vmatpush1.bf16.msra.mxu0 %v3351_v53  ;;  %2337 = vmatprep.subr.bf16.mxu1 %v3356_v54  ;;  %v3443_v53 = vld [vmem:[#allocation2 + $0x524] ss:$24 sps:$4 sm:$0xff]   ;;  %v3438_v54 = vld [vmem:[#allocation2 + $0x3c8] ss:$24 sps:$4 sm:$0xff]  }
  0xbd   :  { %2523 = vmatprep.subr.bf16.mxu0 %v3359_v56  ;;  %v3441_v56 = vld [vmem:[#allocation2 + $0x520] ss:$24 sps:$4 sm:$0xff]  }
  0xbf   :  { %2338 = vmatpush1.bf16.msra.mxu1 %v3354_v57  ;;  %v3449_v57 = vld [vmem:[#allocation2 + $0x554] ss:$24 sps:$4 sm:$0xff]  }
  0xc0   :  { %2524 = vmatpush1.bf16.msra.mxu0 %v3357_v58  ;;  %2339 = vmatprep.subr.bf16.mxu1 %v3362_v59  ;;  %v3444_v58 = vld [vmem:[#allocation2 + $0x3f8] ss:$24 sps:$4 sm:$0xff]  }
  0xc1   :  { %2525 = vmatprep.subr.bf16.mxu0 %v3365_v60  ;;  %v3447_v59 = vld [vmem:[#allocation2 + $0x550] ss:$24 sps:$4 sm:$0xff]   ;;  %v3452_v60 = vld [vmem:[#allocation2 + $0x42c] ss:$24 sps:$4 sm:$0xff]  }
  0xc3   :  { %2340 = vmatpush1.bf16.msra.mxu1 %v3360_v62  ;;  %v3455_v62 = vld [vmem:[#allocation2 + $0x584] ss:$24 sps:$4 sm:$0xff]  }
  0xc4   :  { %2526 = vmatpush1.bf16.msra.mxu0 %v3363_v63  ;;  %2341 = vmatprep.subr.bf16.mxu1 %v3368_v0  ;;  %v3450_v63 = vld [vmem:[#allocation2 + $0x428] ss:$24 sps:$4 sm:$0xff]  }
  0xc5   :  { %2527 = vmatprep.subr.bf16.mxu0 %v3371_v1  ;;  %v3453_v0 = vld [vmem:[#allocation2 + $0x580] ss:$24 sps:$4 sm:$0xff]   ;;  %v3458_v1 = vld [vmem:[#allocation2 + $0x45c] ss:$24 sps:$4 sm:$0xff]  }
  0xc7   :  { %2342 = vmatpush1.bf16.msra.mxu1 %v3366_v2  ;;  %v3461_v2 = vld [vmem:[#allocation2 + $0x5b4] ss:$24 sps:$4 sm:$0xff]  }
  0xc8   :  { %2528 = vmatpush1.bf16.msra.mxu0 %v3369_v3  ;;  %2343 = vmatprep.subr.bf16.mxu1 %v3374_v4  ;;  %v3456_v3 = vld [vmem:[#allocation2 + $0x458] ss:$24 sps:$4 sm:$0xff]  }
  0xc9   :  { %2540 = vmatprep.subr.bf16.mxu0 %v3377_v5  ;;  %v3459_v4 = vld [vmem:[#allocation2 + $0x5b0] ss:$24 sps:$4 sm:$0xff]   ;;  %v3464_v5 = vld [vmem:[#allocation2 + $0x48c] ss:$24 sps:$4 sm:$0xff]  }
  0xcb   :  { %2530 = vmatmul.mubr.bf16.vlgmr.msra.gmra.mrb[4].mxu0 %v3765_v14  ;;  %2344 = vmatpush1.bf16.msra.mxu1 %v3372_v6  ;;  %v3467_v6 = vld [vmem:[#allocation2 + $0x5e4] ss:$24 sps:$4 sm:$0xff]  }
  0xcc   :  { %2541 = vmatpush1.bf16.msra.mxu0 %v3375_v7  ;;  %2345 = vmatprep.subr.bf16.mxu1 %v3380_v8  ;;  %v3462_v7 = vld [vmem:[#allocation2 + $0x488] ss:$24 sps:$4 sm:$0xff]  }
  0xcd   :  { %2542 = vmatprep.subr.bf16.mxu0 %v3383_v9  ;;  %2572 = vmatprep.mubr.bf16.mxu0 %v3787_v47  ;;  %v3465_v8 = vld [vmem:[#allocation2 + $0x5e0] ss:$24 sps:$4 sm:$0xff]   ;;  %v3470_v9 = vld [vmem:[#allocation2 + $0x4bc] ss:$24 sps:$4 sm:$0xff]  }
  0xcf   :  { %2346 = vmatpush1.bf16.msra.mxu1 %v3378_v10  ;;  %v3473_v10 = vld [vmem:[#allocation2 + $0x614] ss:$24 sps:$4 sm:$0xff]  }
  0xd0   :  { %2543 = vmatpush1.bf16.msra.mxu0 %v3381_v11  ;;  %2347 = vmatprep.subr.bf16.mxu1 %v3386_v12  ;;  %v3468_v11 = vld [vmem:[#allocation2 + $0x4b8] ss:$24 sps:$4 sm:$0xff]  }
  0xd1   :  { %2544 = vmatprep.subr.bf16.mxu0 %v3389_v13  ;;  %v3471_v12 = vld [vmem:[#allocation2 + $0x610] ss:$24 sps:$4 sm:$0xff]   ;;  %v3476_v13 = vld [vmem:[#allocation2 + $0x4ec] ss:$24 sps:$4 sm:$0xff]  }
  0xd3   :  { %2348 = vmatpush1.bf16.msra.mxu1 %v3384_v16  ;;  %v3479_v16 = vld [vmem:[#allocation2 + $0x644] ss:$24 sps:$4 sm:$0xff]  }
  0xd4   :  { %2545 = vmatpush1.bf16.msra.mxu0 %v3387_v17  ;;  %2349 = vmatprep.subr.bf16.mxu1 %v3392_v18  ;;  %v3474_v17 = vld [vmem:[#allocation2 + $0x4e8] ss:$24 sps:$4 sm:$0xff]  }
  0xd5   :  { %2546 = vmatprep.subr.bf16.mxu0 %v3395_v19  ;;  %v3477_v18 = vld [vmem:[#allocation2 + $0x640] ss:$24 sps:$4 sm:$0xff]   ;;  %v3482_v19 = vld [vmem:[#allocation2 + $0x51c] ss:$24 sps:$4 sm:$0xff]  }
  0xd7   :  { %2350 = vmatpush1.bf16.msra.mxu1 %v3390_v20  ;;  %v3485_v20 = vld [vmem:[#allocation2 + $0x674] ss:$24 sps:$4 sm:$0xff]  }
  0xd8   :  { %2547 = vmatpush1.bf16.msra.mxu0 %v3393_v21  ;;  %2351 = vmatprep.subr.bf16.mxu1 %v3398_v22  ;;  %v3480_v21 = vld [vmem:[#allocation2 + $0x518] ss:$24 sps:$4 sm:$0xff]  }
  0xd9   :  { %2548 = vmatprep.subr.bf16.mxu0 %v3401_v23  ;;  %v3483_v22 = vld [vmem:[#allocation2 + $0x670] ss:$24 sps:$4 sm:$0xff]   ;;  %v3488_v23 = vld [vmem:[#allocation2 + $0x54c] ss:$24 sps:$4 sm:$0xff]  }
  0xdb   :  { %2352 = vmatpush1.bf16.msra.mxu1 %v3396_v25  ;;  %v3491_v25 = vld [vmem:[#allocation2 + $0x6a4] ss:$24 sps:$4 sm:$0xff]  }
  0xdc   :  { %2549 = vmatpush1.bf16.msra.mxu0 %v3399_v26  ;;  %2353 = vmatprep.subr.bf16.mxu1 %v3404_v27  ;;  %v3486_v26 = vld [vmem:[#allocation2 + $0x548] ss:$24 sps:$4 sm:$0xff]  }
  0xdd   :  { %2550 = vmatprep.subr.bf16.mxu0 %v3407_v28  ;;  %v3489_v27 = vld [vmem:[#allocation2 + $0x6a0] ss:$24 sps:$4 sm:$0xff]   ;;  %v3494_v28 = vld [vmem:[#allocation2 + $0x57c] ss:$24 sps:$4 sm:$0xff]  }
  0xdf   :  { %2354 = vmatpush1.bf16.msra.mxu1 %v3402_v29  ;;  %v3497_v29 = vld [vmem:[#allocation2 + $0x6d4] ss:$24 sps:$4 sm:$0xff]  }
  0xe0   :  { %2551 = vmatpush1.bf16.msra.mxu0 %v3405_v31  ;;  %2355 = vmatprep.subr.bf16.mxu1 %v3410_v32  ;;  %v3492_v31 = vld [vmem:[#allocation2 + $0x578] ss:$24 sps:$4 sm:$0xff]  }
  0xe1   :  { %2552 = vmatprep.subr.bf16.mxu0 %v3413_v33  ;;  %v3495_v32 = vld [vmem:[#allocation2 + $0x6d0] ss:$24 sps:$4 sm:$0xff]   ;;  %v3500_v33 = vld [vmem:[#allocation2 + $0x5ac] ss:$24 sps:$4 sm:$0xff]  }
  0xe3   :  { %2356 = vmatpush1.bf16.msra.mxu1 %v3408_v34  ;;  %v3503_v34 = vld [vmem:[#allocation2 + $0x704] ss:$24 sps:$4 sm:$0xff]  }
  0xe4   :  { %2553 = vmatpush1.bf16.msra.mxu0 %v3411_v35  ;;  %2368 = vmatprep.subr.bf16.mxu1 %v3416_v36  ;;  %v3498_v35 = vld [vmem:[#allocation2 + $0x5a8] ss:$24 sps:$4 sm:$0xff]  }
  0xe5   :  { %2554 = vmatprep.subr.bf16.mxu0 %v3419_v37  ;;  %v3501_v36 = vld [vmem:[#allocation2 + $0x700] ss:$24 sps:$4 sm:$0xff]   ;;  %v3506_v37 = vld [vmem:[#allocation2 + $0x5dc] ss:$24 sps:$4 sm:$0xff]  }
  0xe6   :  { %2358 = vmatmul.mubr.bf16.vlgmr.msra.gmra.mrb[4].mxu1 %v3765_v14  ;;  %v3435_v14 = vld [vmem:[#allocation2 + $0x4f0] ss:$24 sps:$4 sm:$0xff]  }
  0xe7   :  { %2369 = vmatpush1.bf16.msra.mxu1 %v3414_v38  ;;  %2400 = vmatprep.mubr.bf16.mxu1 %v3787_v47  ;;  %v3446_v47 = vld [vmem:[#allocation2 + $0x3fc] ss:$24 sps:$4 sm:$0xff]  }
  0xe8   :  { %2555 = vmatpush1.bf16.msra.mxu0 %v3417_v39  ;;  %2370 = vmatprep.subr.bf16.mxu1 %v3422_v40  ;;  %v3509_v38 = vld [vmem:[#allocation2 + $0x734] ss:$24 sps:$4 sm:$0xff]   ;;  %v3504_v39 = vld [vmem:[#allocation2 + $0x5d8] ss:$24 sps:$4 sm:$0xff]  }
  0xe9   :  { %2556 = vmatprep.subr.bf16.mxu0 %v3425_v41  ;;  %v3507_v40 = vld [vmem:[#allocation2 + $0x730] ss:$24 sps:$4 sm:$0xff]   ;;  %v3512_v41 = vld [vmem:[#allocation2 + $0x60c] ss:$24 sps:$4 sm:$0xff]  }
  0xeb   :  { %2371 = vmatpush1.bf16.msra.mxu1 %v3420_v42  ;;  %v3515_v42 = vld [vmem:[#allocation2 + $0x764] ss:$24 sps:$4 sm:$0xff]  }
  0xec   :  { %2557 = vmatpush1.bf16.msra.mxu0 %v3423_v43  ;;  %2372 = vmatprep.subr.bf16.mxu1 %v3428_v44  ;;  %v3510_v43 = vld [vmem:[#allocation2 + $0x608] ss:$24 sps:$4 sm:$0xff]  }
  0xed   :  { %2558 = vmatprep.subr.bf16.mxu0 %v3431_v45  ;;  %v3513_v44 = vld [vmem:[#allocation2 + $0x760] ss:$24 sps:$4 sm:$0xff]   ;;  %v3518_v45 = vld [vmem:[#allocation2 + $0x63c] ss:$24 sps:$4 sm:$0xff]  }
  0xef   :  { %2373 = vmatpush1.bf16.msra.mxu1 %v3426_v46  ;;  %v3521_v46 = vld [vmem:[#allocation2 + $0x794] ss:$24 sps:$4 sm:$0xff]  }
  0xf0   :  { %2559 = vmatpush1.bf16.msra.mxu0 %v3429_v48  ;;  %2374 = vmatprep.subr.bf16.mxu1 %v3434_v49  ;;  %v3516_v48 = vld [vmem:[#allocation2 + $0x638] ss:$24 sps:$4 sm:$0xff]  }
  0xf1   :  { %2560 = vmatprep.subr.bf16.mxu0 %v3437_v52  ;;  %v3519_v49 = vld [vmem:[#allocation2 + $0x790] ss:$24 sps:$4 sm:$0xff]   ;;  %v3524_v52 = vld [vmem:[#allocation2 + $0x66c] ss:$24 sps:$4 sm:$0xff]  }
  0xf3   :  { %2375 = vmatpush1.bf16.msra.mxu1 %v3432_v50  ;;  %v3527_v50 = vld [vmem:[#allocation2 + $0x7c4] ss:$24 sps:$4 sm:$0xff]  }
  0xf4   :  { %2561 = vmatpush1.bf16.msra.mxu0 %v3435_v14  ;;  %2376 = vmatprep.subr.bf16.mxu1 %v3440_v51  ;;  %v3522_v14 = vld [vmem:[#allocation2 + $0x668] ss:$24 sps:$4 sm:$0xff]  }
  0xf5   :  { %2562 = vmatprep.subr.bf16.mxu0 %v3443_v53  ;;  %v3525_v51 = vld [vmem:[#allocation2 + $0x7c0] ss:$24 sps:$4 sm:$0xff]   ;;  %v3530_v53 = vld [vmem:[#allocation2 + $0x69c] ss:$24 sps:$4 sm:$0xff]  }
  0xf7   :  { %2377 = vmatpush1.bf16.msra.mxu1 %v3438_v54  ;;  %v3533_v54 = vld [vmem:[#allocation2 + $0x7f4] ss:$24 sps:$4 sm:$0xff]  }
  0xf8   :  { %2563 = vmatpush1.bf16.msra.mxu0 %v3441_v56  ;;  %2378 = vmatprep.subr.bf16.mxu1 %v3446_v47  ;;  %v3531_v56 = vld [vmem:[#allocation2 + $0x7f0] ss:$24 sps:$4 sm:$0xff]   ;;  %v3536_v47 = vld [vmem:[#allocation2 + $0x6cc] ss:$24 sps:$4 sm:$0xff]  }
  0xf9   :  { %2564 = vmatprep.subr.bf16.mxu0 %v3449_v57  ;;  %v3539_v57 = vld [vmem:[#allocation2 + $0x824] ss:$24 sps:$4 sm:$0xff]  }
  0xfb   :  { %2379 = vmatpush1.bf16.msra.mxu1 %v3444_v58  ;;  %v3534_v58 = vld [vmem:[#allocation2 + $0x6c8] ss:$24 sps:$4 sm:$0xff]  }
  0xfc   :  { %2565 = vmatpush1.bf16.msra.mxu0 %v3447_v59  ;;  %2380 = vmatprep.subr.bf16.mxu1 %v3452_v60  ;;  %v3542_v59 = vld [vmem:[#allocation2 + $0x6fc] ss:$24 sps:$4 sm:$0xff]  }
  0xfd   :  { %2566 = vmatprep.subr.bf16.mxu0 %v3455_v62  ;;  %v3545_v60 = vld [vmem:[#allocation2 + $0x854] ss:$24 sps:$4 sm:$0xff]   ;;  %v3540_v62 = vld [vmem:[#allocation2 + $0x6f8] ss:$24 sps:$4 sm:$0xff]  }
  0xff   :  { %2381 = vmatpush1.bf16.msra.mxu1 %v3450_v63  ;;  %v3543_v63 = vld [vmem:[#allocation2 + $0x850] ss:$24 sps:$4 sm:$0xff]  }
 0x100   :  { %2567 = vmatpush1.bf16.msra.mxu0 %v3453_v0  ;;  %2382 = vmatprep.subr.bf16.mxu1 %v3458_v1  ;;  %v3548_v0 = vld [vmem:[#allocation2 + $0x72c] ss:$24 sps:$4 sm:$0xff]  }
 0x101   :  { %2568 = vmatprep.subr.bf16.mxu0 %v3461_v2  ;;  %v3551_v1 = vld [vmem:[#allocation2 + $0x884] ss:$24 sps:$4 sm:$0xff]   ;;  %v3546_v2 = vld [vmem:[#allocation2 + $0x728] ss:$24 sps:$4 sm:$0xff]  }
 0x103   :  { %2383 = vmatpush1.bf16.msra.mxu1 %v3456_v3  ;;  %v3549_v3 = vld [vmem:[#allocation2 + $0x880] ss:$24 sps:$4 sm:$0xff]  }
 0x104   :  { %2569 = vmatpush1.bf16.msra.mxu0 %v3459_v4  ;;  %2384 = vmatprep.subr.bf16.mxu1 %v3464_v5  ;;  %v3554_v4 = vld [vmem:[#allocation2 + $0x75c] ss:$24 sps:$4 sm:$0xff]  }
 0x105   :  { %2570 = vmatprep.subr.bf16.mxu0 %v3467_v6  ;;  %v3557_v5 = vld [vmem:[#allocation2 + $0x8b4] ss:$24 sps:$4 sm:$0xff]   ;;  %v3552_v6 = vld [vmem:[#allocation2 + $0x758] ss:$24 sps:$4 sm:$0xff]  }
 0x107   :  { %2385 = vmatpush1.bf16.msra.mxu1 %v3462_v7  ;;  %v3555_v7 = vld [vmem:[#allocation2 + $0x8b0] ss:$24 sps:$4 sm:$0xff]  }
 0x108   :  { %2571 = vmatpush1.bf16.msra.mxu0 %v3465_v8  ;;  %2386 = vmatprep.subr.bf16.mxu1 %v3470_v9  ;;  %v3560_v8 = vld [vmem:[#allocation2 + $0x78c] ss:$24 sps:$4 sm:$0xff]  }
 0x109   :  { %2583 = vmatprep.subr.bf16.mxu0 %v3473_v10  ;;  %v3563_v9 = vld [vmem:[#allocation2 + $0x8e4] ss:$24 sps:$4 sm:$0xff]   ;;  %v3558_v10 = vld [vmem:[#allocation2 + $0x788] ss:$24 sps:$4 sm:$0xff]  }
 0x10b   :  { %2573 = vmatmul.mubr.bf16.vlgmr.msra.gmra.mrb[4].mxu0 %v3806_v30  ;;  %2387 = vmatpush1.bf16.msra.mxu1 %v3468_v11  ;;  %v3561_v11 = vld [vmem:[#allocation2 + $0x8e0] ss:$24 sps:$4 sm:$0xff]  }
 0x10c   :  { %2584 = vmatpush1.bf16.msra.mxu0 %v3471_v12  ;;  %2388 = vmatprep.subr.bf16.mxu1 %v3476_v13  ;;  %v3566_v12 = vld [vmem:[#allocation2 + $0x7bc] ss:$24 sps:$4 sm:$0xff]  }
 0x10d   :  { %2585 = vmatprep.subr.bf16.mxu0 %v3479_v16  ;;  %2615 = vmatprep.mubr.bf16.mxu0 %v3750_v55  ;;  %v3569_v13 = vld [vmem:[#allocation2 + $0x914] ss:$24 sps:$4 sm:$0xff]   ;;  %v3564_v16 = vld [vmem:[#allocation2 + $0x7b8] ss:$24 sps:$4 sm:$0xff]  }
 0x10f   :  { %2389 = vmatpush1.bf16.msra.mxu1 %v3474_v17  ;;  %v3567_v17 = vld [vmem:[#allocation2 + $0x910] ss:$24 sps:$4 sm:$0xff]  }
 0x110   :  { %2586 = vmatpush1.bf16.msra.mxu0 %v3477_v18  ;;  %2390 = vmatprep.subr.bf16.mxu1 %v3482_v19  ;;  %v3572_v18 = vld [vmem:[#allocation2 + $0x7ec] ss:$24 sps:$4 sm:$0xff]  }
 0x111   :  { %2587 = vmatprep.subr.bf16.mxu0 %v3485_v20  ;;  %v3575_v19 = vld [vmem:[#allocation2 + $0x944] ss:$24 sps:$4 sm:$0xff]   ;;  %v3570_v20 = vld [vmem:[#allocation2 + $0x7e8] ss:$24 sps:$4 sm:$0xff]  }
 0x113   :  { %2391 = vmatpush1.bf16.msra.mxu1 %v3480_v21  ;;  %v3573_v21 = vld [vmem:[#allocation2 + $0x940] ss:$24 sps:$4 sm:$0xff]  }
 0x114   :  { %2588 = vmatpush1.bf16.msra.mxu0 %v3483_v22  ;;  %2392 = vmatprep.subr.bf16.mxu1 %v3488_v23  ;;  %v3578_v22 = vld [vmem:[#allocation2 + $0x81c] ss:$24 sps:$4 sm:$0xff]  }
 0x115   :  { %2589 = vmatprep.subr.bf16.mxu0 %v3491_v25  ;;  %v3581_v23 = vld [vmem:[#allocation2 + $0x974] ss:$24 sps:$4 sm:$0xff]   ;;  %v3576_v25 = vld [vmem:[#allocation2 + $0x818] ss:$24 sps:$4 sm:$0xff]  }
 0x117   :  { %2393 = vmatpush1.bf16.msra.mxu1 %v3486_v26  ;;  %v3579_v26 = vld [vmem:[#allocation2 + $0x970] ss:$24 sps:$4 sm:$0xff]  }
 0x118   :  { %2590 = vmatpush1.bf16.msra.mxu0 %v3489_v27  ;;  %2394 = vmatprep.subr.bf16.mxu1 %v3494_v28  ;;  %v3584_v27 = vld [vmem:[#allocation2 + $0x84c] ss:$24 sps:$4 sm:$0xff]  }
 0x119   :  { %2591 = vmatprep.subr.bf16.mxu0 %v3497_v29  ;;  %v3587_v28 = vld [vmem:[#allocation2 + $0x9a4] ss:$24 sps:$4 sm:$0xff]   ;;  %v3582_v29 = vld [vmem:[#allocation2 + $0x848] ss:$24 sps:$4 sm:$0xff]  }
 0x11b   :  { %2395 = vmatpush1.bf16.msra.mxu1 %v3492_v31  ;;  %v3585_v31 = vld [vmem:[#allocation2 + $0x9a0] ss:$24 sps:$4 sm:$0xff]  }
 0x11c   :  { %2592 = vmatpush1.bf16.msra.mxu0 %v3495_v32  ;;  %2396 = vmatprep.subr.bf16.mxu1 %v3500_v33  ;;  %v3590_v32 = vld [vmem:[#allocation2 + $0x87c] ss:$24 sps:$4 sm:$0xff]  }
 0x11d   :  { %2593 = vmatprep.subr.bf16.mxu0 %v3503_v34  ;;  %v3593_v33 = vld [vmem:[#allocation2 + $0x9d4] ss:$24 sps:$4 sm:$0xff]   ;;  %v3588_v34 = vld [vmem:[#allocation2 + $0x878] ss:$24 sps:$4 sm:$0xff]  }
 0x11f   :  { %2397 = vmatpush1.bf16.msra.mxu1 %v3498_v35  ;;  %v3591_v35 = vld [vmem:[#allocation2 + $0x9d0] ss:$24 sps:$4 sm:$0xff]  }
 0x120   :  { %2594 = vmatpush1.bf16.msra.mxu0 %v3501_v36  ;;  %2398 = vmatprep.subr.bf16.mxu1 %v3506_v37  ;;  %v3596_v36 = vld [vmem:[#allocation2 + $0x8ac] ss:$24 sps:$4 sm:$0xff]  }
 0x121   :  { %2595 = vmatprep.subr.bf16.mxu0 %v3509_v38  ;;  %v3599_v37 = vld [vmem:[#allocation2 + $0xa04] ss:$24 sps:$4 sm:$0xff]   ;;  %v3594_v38 = vld [vmem:[#allocation2 + $0x8a8] ss:$24 sps:$4 sm:$0xff]  }
 0x123   :  { %2399 = vmatpush1.bf16.msra.mxu1 %v3504_v39  ;;  %v3597_v39 = vld [vmem:[#allocation2 + $0xa00] ss:$24 sps:$4 sm:$0xff]  }
 0x124   :  { %2596 = vmatpush1.bf16.msra.mxu0 %v3507_v40  ;;  %2411 = vmatprep.subr.bf16.mxu1 %v3512_v41  ;;  %v3602_v40 = vld [vmem:[#allocation2 + $0x8dc] ss:$24 sps:$4 sm:$0xff]  }
 0x125   :  { %2597 = vmatprep.subr.bf16.mxu0 %v3515_v42  ;;  %v3605_v41 = vld [vmem:[#allocation2 + $0xa34] ss:$24 sps:$4 sm:$0xff]  }
 0x126   :  { %2401 = vmatmul.mubr.bf16.vlgmr.msra.gmra.mrb[4].mxu1 %v3806_v30  ;;  %v3528_v30 = vld [vmem:[#allocation2 + $0x698] ss:$24 sps:$4 sm:$0xff]  }
 0x127   :  { %2412 = vmatpush1.bf16.msra.mxu1 %v3510_v43  ;;  %2443 = vmatprep.mubr.bf16.mxu1 %v3750_v55  ;;  %v3537_v55 = vld [vmem:[#allocation2 + $0x820] ss:$24 sps:$4 sm:$0xff]  }
 0x128   :  { %2598 = vmatpush1.bf16.msra.mxu0 %v3513_v44  ;;  %2413 = vmatprep.subr.bf16.mxu1 %v3518_v45  ;;  %v3600_v45 = vld [vmem:[#allocation2 + $0x8d8] ss:$24 sps:$4 sm:$0xff]  }
 0x129   :  { %2599 = vmatprep.subr.bf16.mxu0 %v3521_v46  ;;  %v3603_v46 = vld [vmem:[#allocation2 + $0xa30] ss:$24 sps:$4 sm:$0xff]  }
 0x12b   :  { %2414 = vmatpush1.bf16.msra.mxu1 %v3516_v48 }
 0x12c   :  { %2600 = vmatpush1.bf16.msra.mxu0 %v3519_v49  ;;  %2415 = vmatprep.subr.bf16.mxu1 %v3524_v52  ;;  %v3608_v49 = vld [vmem:[#allocation2 + $0x90c] ss:$24 sps:$4 sm:$0xff]  }
 0x12d   :  { %2601 = vmatprep.subr.bf16.mxu0 %v3527_v50  ;;  %v3611_v52 = vld [vmem:[#allocation2 + $0xa64] ss:$24 sps:$4 sm:$0xff]   ;;  %v3606_v50 = vld [vmem:[#allocation2 + $0x908] ss:$24 sps:$4 sm:$0xff]  }
 0x12f   :  { %2416 = vmatpush1.bf16.msra.mxu1 %v3522_v14  ;;  %v3609_v14 = vld [vmem:[#allocation2 + $0xa60] ss:$24 sps:$4 sm:$0xff]  }
 0x130   :  { %2602 = vmatpush1.bf16.msra.mxu0 %v3525_v51  ;;  %2417 = vmatprep.subr.bf16.mxu1 %v3530_v53  ;;  %v3614_v51 = vld [vmem:[#allocation2 + $0x93c] ss:$24 sps:$4 sm:$0xff]  }
 0x131   :  { %2603 = vmatprep.subr.bf16.mxu0 %v3533_v54  ;;  %v3617_v53 = vld [vmem:[#allocation2 + $0xa94] ss:$24 sps:$4 sm:$0xff]   ;;  %v3612_v54 = vld [vmem:[#allocation2 + $0x938] ss:$24 sps:$4 sm:$0xff]  }
 0x133   :  { %2418 = vmatpush1.bf16.msra.mxu1 %v3528_v30  ;;  %v3615_v30 = vld [vmem:[#allocation2 + $0xa90] ss:$24 sps:$4 sm:$0xff]  }
 0x134   :  { %2604 = vmatpush1.bf16.msra.mxu0 %v3531_v56  ;;  %2419 = vmatprep.subr.bf16.mxu1 %v3536_v47  ;;  %v3620_v56 = vld [vmem:[#allocation2 + $0x96c] ss:$24 sps:$4 sm:$0xff]   ;;  %v409_v47 = vlaneseq }
 0x135   :  { %2605 = vmatprep.subr.bf16.mxu0 %v3539_v57  ;;  %v3618_v57 = vld [vmem:[#allocation2 + $0x968] ss:$24 sps:$4 sm:$0xff]  }
 0x137   :  { %2420 = vmatpush1.bf16.msra.mxu1 %v3534_v58  ;;  %v3623_v58 = vld [vmem:[#allocation2 + $0x99c] ss:$24 sps:$4 sm:$0xff]  }
 0x138   :  { %2606 = vmatpush1.bf16.msra.mxu0 %v3537_v55  ;;  %2421 = vmatprep.subr.bf16.mxu1 %v3542_v59  ;;  %v3831_v55 = vshrl.u32 %v409_v47, 7  ;;  %v3626_v59 = vld [vmem:[#allocation2 + $0x9cc] ss:$24 sps:$4 sm:$0xff]  }
 0x139   :  { %2607 = vmatprep.subr.bf16.mxu0 %v3545_v60 }
 0x13a   :  { %v411_v60 = vsub.s32 0, %v3831_v55 }
 0x13b   :  { %2422 = vmatpush1.bf16.msra.mxu1 %v3540_v62  ;;  %v3624_v62 = vld [vmem:[#allocation2 + $0x9c8] ss:$24 sps:$4 sm:$0xff]  }
 0x13c   :  { %2608 = vmatpush1.bf16.msra.mxu0 %v3543_v63  ;;  %2423 = vmatprep.subr.bf16.mxu1 %v3548_v0  ;;  %v407_v63 = vld [vmem:[#allocation4] sm:$0x3f] }
 0x13d   :  { %2609 = vmatprep.subr.bf16.mxu0 %v3551_v1  ;;  %v3629_v0 = vld [vmem:[#allocation2 + $0x9fc] ss:$24 sps:$4 sm:$0xff]   ;;  %v412_v1 = vrot.slane %v407_v63, %v411_v60 }
 0x13f   :  { %2424 = vmatpush1.bf16.msra.mxu1 %v3546_v2 }
 0x140   :  { %2610 = vmatpush1.bf16.msra.mxu0 %v3549_v3  ;;  %2425 = vmatprep.subr.bf16.mxu1 %v3554_v4  ;;  %v3627_v3 = vld [vmem:[#allocation2 + $0x9f8] ss:$24 sps:$4 sm:$0xff]   ;;  %v3632_v4 = vld [vmem:[#allocation2 + $0xa2c] ss:$24 sps:$4 sm:$0xff]  }
 0x141   :  { %2611 = vmatprep.subr.bf16.mxu0 %v3557_v5 }
 0x143   :  { %2426 = vmatpush1.bf16.msra.mxu1 %v3552_v6 }
 0x144   :  { %2612 = vmatpush1.bf16.msra.mxu0 %v3555_v7  ;;  %2427 = vmatprep.subr.bf16.mxu1 %v3560_v8 }
 0x145   :  { %2613 = vmatprep.subr.bf16.mxu0 %v3563_v9 }
 0x147   :  { %2428 = vmatpush1.bf16.msra.mxu1 %v3558_v10  ;;  %v3630_v10 = vld [vmem:[#allocation2 + $0xa28] ss:$24 sps:$4 sm:$0xff]  }
 0x148   :  { %2614 = vmatpush1.bf16.msra.mxu0 %v3561_v11  ;;  %2429 = vmatprep.subr.bf16.mxu1 %v3566_v12 }
 0x149   :  { %2626 = vmatprep.subr.bf16.mxu0 %v3569_v13 }
 0x14b   :  { %2616 = vmatmul.mubr.bf16.vlgmr.msra.gmra.mrb[4].mxu0 %v3767_v15  ;;  %2430 = vmatpush1.bf16.msra.mxu1 %v3564_v16  ;;  %v3635_v16 = vld [vmem:[#allocation2 + $0xa5c] ss:$24 sps:$4 sm:$0xff]  }
 0x14c   :  { %2627 = vmatpush1.bf16.msra.mxu0 %v3567_v17  ;;  %2431 = vmatprep.subr.bf16.mxu1 %v3572_v18 }
 0x14d   :  { %2628 = vmatprep.subr.bf16.mxu0 %v3575_v19  ;;  %3061 = vmatprep.mubr.msk.bf16.mxu0 %vm2149_vm0, %v3777_v24 }
 0x14f   :  { %2432 = vmatpush1.bf16.msra.mxu1 %v3570_v20 }
 0x150   :  { %2629 = vmatpush1.bf16.msra.mxu0 %v3573_v21  ;;  %2433 = vmatprep.subr.bf16.mxu1 %v3578_v22  ;;  %v3633_v22 = vld [vmem:[#allocation2 + $0xa58] ss:$24 sps:$4 sm:$0xff]  }
 0x151   :  { %2630 = vmatprep.subr.bf16.mxu0 %v3581_v23  ;;  %v3638_v23 = vld [vmem:[#allocation2 + $0xa8c] ss:$24 sps:$4 sm:$0xff]  }
 0x153   :  { %2434 = vmatpush1.bf16.msra.mxu1 %v3576_v25 }
 0x154   :  { %2631 = vmatpush1.bf16.msra.mxu0 %v3579_v26  ;;  %2435 = vmatprep.subr.bf16.mxu1 %v3584_v27  ;;  %v3636_v26 = vld [vmem:[#allocation2 + $0xa88] ss:$24 sps:$4 sm:$0xff]   ;;  %v427_v27 = vsub.s32 4, %v3831_v55 }
 0x155   :  { %2632 = vmatprep.subr.bf16.mxu0 %v3587_v28  ;;  %v431_v28 = vsub.s32 5, %v3831_v55 }
 0x157   :  { %2436 = vmatpush1.bf16.msra.mxu1 %v3582_v29  ;;  %v428_v29 = vrot.slane %v407_v63, %v427_v27 }
 0x158   :  { %2633 = vmatpush1.bf16.msra.mxu0 %v3585_v31  ;;  %2437 = vmatprep.subr.bf16.mxu1 %v3590_v32  ;;  %v432_v31 = vrot.slane %v407_v63, %v431_v28 }
 0x159   :  { %2634 = vmatprep.subr.bf16.mxu0 %v3593_v33 }
 0x15b   :  { %2438 = vmatpush1.bf16.msra.mxu1 %v3588_v34 }
 0x15c   :  { %2635 = vmatpush1.bf16.msra.mxu0 %v3591_v35  ;;  %2439 = vmatprep.subr.bf16.mxu1 %v3596_v36 }
 0x15d   :  { %2636 = vmatprep.subr.bf16.mxu0 %v3599_v37 }
 0x15e   :  { %v2316_v42 = vpop.f32.mrb[0].mxu0 }
 0x15f   :  { %v3821_v43 = vpop.f32.mrb[1].mxu0  ;;  %2440 = vmatpush1.bf16.msra.mxu1 %v3594_v38 }
 0x160   :  { %v3823_v44 = vpop.f32.mrb[2].mxu0  ;;  %2637 = vmatpush1.bf16.msra.mxu0 %v3597_v39  ;;  %2441 = vmatprep.subr.bf16.mxu1 %v3602_v40 }
 0x161   :  { %v3825_v48 = vpop.f32.mrb[3].mxu0  ;;  %2638 = vmatprep.subr.bf16.mxu0 %v3605_v41  ;;  %v419_v41 = vsub.s32 2, %v3831_v55 }
 0x163   :  { %2442 = vmatpush1.bf16.msra.mxu1 %v3600_v45 }
 0x164   :  { %2639 = vmatpush1.bf16.msra.mxu0 %v3603_v46  ;;  %2454 = vmatprep.subr.bf16.mxu1 %v3608_v49 }
 0x165   :  { %2640 = vmatprep.subr.bf16.mxu0 %v3611_v52 }
 0x166   :  { %2444 = vmatmul.mubr.bf16.vlgmr.msra.gmra.mrb[4].mxu1 %v3767_v15  ;;  %v3621_v15 = vld [vmem:[#allocation2 + $0x998] ss:$24 sps:$4 sm:$0xff]  }
 0x167   :  { %2455 = vmatpush1.bf16.msra.mxu1 %v3606_v50  ;;  %3060 = vmatprep.mubr.msk.bf16.mxu1 %vm2149_vm0, %v3777_v24  ;;  %v415_v24 = vsub.s32 1, %v3831_v55 }
 0x168   :  { %2641 = vmatpush1.bf16.msra.mxu0 %v3609_v14  ;;  %2456 = vmatprep.subr.bf16.mxu1 %v3614_v51 }
 0x169   :  { %2642 = vmatprep.subr.bf16.mxu0 %v3617_v53  ;;  %v416_v2 = vrot.slane %v407_v63, %v415_v24 }
 0x16b   :  { %2457 = vmatpush1.bf16.msra.mxu1 %v3612_v54 }
 0x16c   :  { %2643 = vmatpush1.bf16.msra.mxu0 %v3615_v30  ;;  %2458 = vmatprep.subr.bf16.mxu1 %v3620_v56 }
 0x16f   :  { %2659 = vmatmul.mubr.bf16.vlgmr.msra.gmra.mrb[4].mxu0 %v3796_v61  ;;  %2459 = vmatpush1.bf16.msra.mxu1 %v3618_v57 }
 0x170   :  { %2460 = vmatprep.subr.bf16.mxu1 %v3623_v58 }
 0x173   :  { %2461 = vmatpush1.bf16.msra.mxu1 %v3621_v15 }
 0x174   :  { %2462 = vmatprep.subr.bf16.mxu1 %v3626_v59 }
 0x177   :  { %2463 = vmatpush1.bf16.msra.mxu1 %v3624_v62 }
 0x178   :  { %2464 = vmatprep.subr.bf16.mxu1 %v3629_v0 }
 0x179   :  { %v2230_v5 = vpop.f32.mrb[0].mxu1 }
 0x17a   :  { %v3074_v6 = vadd.f32 %v2230_v5, %v412_v1  ;;  %v2232_v7 = vpop.f32.mrb[1].mxu1 }
 0x17b   :  { %v3076_v8 = vadd.f32 %v2232_v7, %v416_v2  ;;  %v2234_v9 = vpop.f32.mrb[2].mxu1  ;;  %2465 = vmatpush1.bf16.msra.mxu1 %v3627_v3 }
 0x17c   :  { %v3075_v11 = vadd.f32 %v3074_v6, %v2316_v42  ;;  %v3078_v12 = vadd.f32 %v2234_v9, %v412_v1  ;;  %v2236_v13 = vpop.f32.mrb[3].mxu1  ;;  %2466 = vmatprep.subr.bf16.mxu1 %v3632_v4  ;;  %v423_v42 = vsub.s32 3, %v3831_v55 }
 0x17d   :  { %v3077_v17 = vadd.f32 %v3076_v8, %v3821_v43  ;;  %v3080_v18 = vadd.f32 %v2236_v13, %v416_v2  ;;  %v420_v43 = vrot.slane %v407_v63, %v419_v41 }
 0x17e   :  { %v3079_v19 = vadd.f32 %v3078_v12, %v3823_v44  ;;  %v424_v44 = vrot.slane %v407_v63, %v423_v42 }
 0x17f   :  { %v3068_v20 = vpack.c.bf16 %v3077_v17, %v3075_v11  ;;  %v3081_v21 = vadd.f32 %v3080_v18, %v3825_v48  ;;  %2467 = vmatpush1.bf16.msra.mxu1 %v3630_v10 }
 0x180   :  { %2468 = vmatprep.subr.bf16.mxu1 %v3635_v16 }
 0x181   :  { %2705 = vst [vmem:[%s3864_s3] sm:$0xff] %v3068_v20  ;;  %v3071_v25 = vpack.c.bf16 %v3081_v21, %v3079_v19 }
 0x183   :  { %2708 = vst [vmem:[%s3864_s3 + $0x18] sm:$0xff] %v3071_v25  ;;  %2469 = vmatpush1.bf16.msra.mxu1 %v3633_v22 }
 0x184   :  { %2470 = vmatprep.subr.bf16.mxu1 %v3638_v23 }
 0x187   :  { %2471 = vmatpush1.bf16.msra.mxu1 %v3636_v26 }
 0x18a   :  { %2487 = vmatmul.mubr.bf16.vlgmr.msra.gmra.mrb[4].mxu1 %v3796_v61 }
 0x242   :  { %v2660_v32 = vpop.f32.mrb[4].mxu0 }
 0x243   :  { %v3086_v33 = vadd.f32 %v2660_v32, %v428_v29  ;;  %v2662_v34 = vpop.f32.mrb[5].mxu0 }
 0x244   :  { %v3087_v35 = vadd.f32 %v2662_v34, %v432_v31  ;;  %v2664_v36 = vpop.f32.mrb[6].mxu0 }
 0x245   :  { %v3088_v37 = vadd.f32 %v2664_v36, %v428_v29  ;;  %v2666_v38 = vpop.f32.mrb[7].mxu0 }
 0x246   :  { %v3070_v39 = vpack.c.bf16 %v3087_v35, %v3086_v33  ;;  %v3089_v40 = vadd.f32 %v2666_v38, %v432_v31 }
 0x248   :  { %2707 = vst [vmem:[%s3864_s3 + $0x10] sm:$0xff] %v3070_v39  ;;  %v3073_v61 = vpack.c.bf16 %v3089_v40, %v3088_v37 }
 0x24a   :  { %2710 = vst [vmem:[%s3864_s3 + $0x28] sm:$0xff] %v3073_v61 }
 0x25d   :  { %v2488_v45 = vpop.f32.mrb[4].mxu1 }
 0x25e   :  { %v3082_v46 = vadd.f32 %v2488_v45, %v420_v43  ;;  %v2490_v48 = vpop.f32.mrb[5].mxu1 }
 0x25f   :  { %v3083_v49 = vadd.f32 %v2490_v48, %v424_v44  ;;  %v2492_v52 = vpop.f32.mrb[6].mxu1 }
 0x260   :  { %v3084_v50 = vadd.f32 %v2492_v52, %v420_v43  ;;  %v2494_v14 = vpop.f32.mrb[7].mxu1 }
 0x261   :  { %v3069_v51 = vpack.c.bf16 %v3083_v49, %v3082_v46  ;;  %v3085_v53 = vadd.f32 %v2494_v14, %v424_v44 }
 0x263   :  { %2706 = vst [vmem:[%s3864_s3 + $0x8] sm:$0xff] %v3069_v51  ;;  %v3072_v54 = vpack.c.bf16 %v3085_v53, %v3084_v50 }
 0x265   :  { %2709 = vst [vmem:[%s3864_s3 + $0x20] sm:$0xff] %v3072_v54 }
 0x266   :  { %2715 = vsyncpa [#allocation3], 1 }
 0x267   :  { %2716 = vsyncpa [#allocation5], 1 }

// kernel: rnn2_forward.6
= control target key start
LH: loop header
LB: loop body
LE: loop exit
PB: predicated region body
PF: predicated region fallthrough
CT: control target
= control target key end

     0   :  { %s6169_s12 = smov 0   ;;  %s6171_s13 = smov 0   ;;  %s7329_s0 = inlined_call_operand.vmem [shape: bf16[8,2,768], index: 0, kind: input, shape index: {}]   ;;  %s7330_s1 = inlined_call_operand.vmem [shape: f32[2,128,384], index: 1, kind: input, shape index: {}]   ;;  %s7331_s2 = inlined_call_operand.vmem [shape: f32[2,1,128], index: 2, kind: input, shape index: {}]   ;;  %s7332_s3 = inlined_call_operand.vmem [shape: bf16[8,2,256], index: 3, kind: output, shape index: {}]  }
   0x1   :  { %s6173_s14 = smov 0   ;;  %s6175_s15 = smov 0  }
   0x2   :  { %s6177_s16 = smov 0  }
   0x3 LB: > { %s25_s17 = sadd.s32 1, %s6136_s15  ;;  %s4091_s18 = sadd.s32 4294967295, %s6140_s16   ;;  %s6140_s16 = sphi %s6177_s16, %s13_s16   ;;  %s6136_s15 = sphi %s6175_s15, %s7337_s15   ;;  %s6132_s14 = sphi %s6173_s14, %s7336_s14   ;;  %s6128_s13 = sphi %s6171_s13, %s7335_s13   ;;  %s6124_s12 = sphi %s6169_s12, %s7334_s12  }
   0x4   : > { %p27_p0 = scmp.ge.s32.totalorder %s25_s17, 2  ;;  %p49_p1 = scmp.ne.s32.totalorder %s6128_s13, %s6124_s12 }
   0x5   : > { %p50_p2 = scmp.eq.s32.totalorder %s6140_s16, 0  ;;  %p141_p4 = scmp.eq.s32.totalorder %s4091_s18, 1 }
   0x6   : > { %s7339_s17 = smov (%p27_p0, %s25_s17), 0  ;;  %s42_s20 = sadd.s32 1, %s6128_s13 }
   0x7   : > { %p51_p3 = por %p50_p2, %p49_p1  ;;  %s38_s19 = ssub.s32 %s6136_s15, %s7339_s17 }
   0x8   : > { %p40_p5 = scmp.eq.s32.totalorder %s38_s19, 0  ;;  %p6204_p6 = por %p141_p4, %p49_p1 }
   0x9   : > { %p4094_p7 = scmp.ge.s32.totalorder %s6140_s16, 2 }
   0xa   : > { %s6209_s22 = scalar_select %p40_p5, %s6128_s13, %s42_s20  }
   0xb   : > { %163 = sbr.rel (%p4094_p7) target bundleno = 28 (0x1c), region = 16 }
  0x12   : > { %166 = sbr.rel (!%p51_p3) target bundleno = 28 (0x1c), region = 20  ;;  %s168_s23 = sand.u32 (%p51_p3), 1, %s6128_s13  }
  0x13   : > { %s176_s24 = smul.u32 (%p51_p3), 3, %s6136_s15 }
  0x14   : > { %s5892_s25 = smul.u32 (%p51_p3), 24, %s168_s23 }
  0x15   : > { %s179_s28 = scalar_lea.vmem (%p51_p3), %s7329_s0, %s176_s24 }
  0x16   : > { %v195_v0 = vld [vmem:[%s179_s28] sm:$0x7] (%p51_p3)  ;;  %v197_v1 = vld [vmem:[%s179_s28 + $0x6] sm:$0x7] (%p51_p3)  ;;  %s170_s29 = scalar_lea.vmem (%p51_p3), [#allocation3], %s5892_s25 }
  0x17   : > { %196 = vst [vmem:[%s170_s29] sm:$0x7] (%p51_p3), %v195_v0  ;;  %198 = vst [vmem:[%s170_s29 + $0x3] sm:$0x7] (%p51_p3), %v197_v1  ;;  %v199_v2 = vld [vmem:[%s179_s28 + $0xc] sm:$0x7] (%p51_p3) }
  0x18   : > { %v201_v3 = vld [vmem:[%s179_s28 + $0x12] sm:$0x7] (%p51_p3)  ;;  %v203_v4 = vld [vmem:[%s179_s28 + $0x18] sm:$0x7] (%p51_p3)  ;;  %200 = vst [vmem:[%s170_s29 + $0x6] sm:$0x7] (%p51_p3), %v199_v2 }
  0x19   : > { %202 = vst [vmem:[%s170_s29 + $0x9] sm:$0x7] %v201_v3  ;;  %204 = vst [vmem:[%s170_s29 + $0xc] sm:$0x7] %v203_v4  ;;  %v205_v5 = vld [vmem:[%s179_s28 + $0x1e] sm:$0x7] }
  0x1a   : > { %v207_v6 = vld [vmem:[%s179_s28 + $0x24] sm:$0x7]  ;;  %v209_v7 = vld [vmem:[%s179_s28 + $0x2a] sm:$0x7]  ;;  %206 = vst [vmem:[%s170_s29 + $0xf] sm:$0x7] %v205_v5 }
  0x1b   : > { %208 = vst [vmem:[%s170_s29 + $0x12] sm:$0x7] %v207_v6  ;;  %210 = vst [vmem:[%s170_s29 + $0x15] sm:$0x7] %v209_v7 }
  0x1c PF: > { %p4095_p8 = scmp.ge.s32.totalorder %s6140_s16, 1  ;;  %p262_p9 = scmp.lt.s32.totalorder %s6140_s16, 3 }
  0x1e   : > { %p263_p10 = pnand %p4095_p8, %p262_p9 }
  0x1f   : > { %s269_s30 = sand.u32 (!%p263_p10), 1, %s6124_s12   ;;  %p305_p11 = scmp.lt.s32.totalorder (!%p263_p10), %s6132_s14, 1  ;;  %v6142_v8 = vmov (!%p263_p10), 0.0  }
  0x20   : > { %266 = sbr.rel (%p263_p10) target bundleno = 4385 (0x1121), region = 69  ;;  %s4096_s5 = sshll.u32 (!%p263_p10), %s269_s30, 3  ;;  %322 = vst [vmem:[#allocation2] sm:$0x3] (!%p263_p10), %v6142_v8 }
  0x21   : > { %s5893_s4 = smul.u32 (!%p263_p10), 24, %s269_s30  ;;  %s6234_s12 = scalar_lea.vmem (!%p263_p10), [#allocation4], %s4096_s5 }
  0x22   : > { %p4099_p12 = scmp.ne.s32.totalorder (!%p263_p10), %s6132_s14, 0 }
  0x23   : > { %s6232_s20 = scalar_lea.vmem (!%p263_p10), [#allocation3], %s5893_s4 }
  0x27   : > { %s306_s6 = scalar_select %p305_p11, %s6132_s14, 1 }
  0x28   : > { %333 = sbr.rel (%p4099_p12) target bundleno = 2210 (0x8a2), region = 81  ;;  %v6143_v17 = vmov (!%p4099_p12), 0.0|0.0   ;;  %v6144_v18 = vmov (!%p4099_p12), 0.0   ;;  %vm6145_vm0 = vmmov (!%p4099_p12), 0  }
  0x29   : > { %s5894_s7 = smul.u32 384, %s306_s6  ;;  %s312_s10 = scalar_lea.vmem %s7331_s2, %s306_s6  ;;  %5028 = vmatprep.subr.bf16.mxu1 (!%p4099_p12), %v6143_v17  ;;  %449 = vmatprep.mubr.f32.mxu0 (!%p4099_p12), %v6144_v18 }
  0x2a   : > { %v6225_v9 = vld [vmem:[%s312_s10] ss:$0 sm:$0xff]  ;;  %4468 = vmatprep.mubr.msk.f32.mxu1 (!%p4099_p12), %vm6145_vm0, %v6144_v18 }
  0x2b   : > { %s6230_s19 = scalar_lea.vmem %s7330_s1, %s5894_s7 }
  0x2c   : > { %v338_v10 = vld [vmem:[%s6230_s19 + $0x8] sm:$0xff] (!%p4099_p12)  ;;  %v341_v11 = vld [vmem:[%s6230_s19 + $0x20] sm:$0xff] (!%p4099_p12)  ;;  %v340_v14 = vld [vmem:[%s6230_s19 + $0x18] sm:$0xff] (!%p4099_p12) }
  0x2d   : > { %v337_v12 = vld [vmem:[%s6230_s19] sm:$0xff] (!%p4099_p12)  ;;  %v6240_v13 = vpack.c.bf16 (!%p4099_p12), %v341_v11, %v338_v10  ;;  %v344_v15 = vld [vmem:[%s6230_s19 + $0x38] sm:$0xff] (!%p4099_p12)  ;;  %v347_v16 = vld [vmem:[%s6230_s19 + $0x50] sm:$0xff] (!%p4099_p12) }
  0x2e   : > { %v6247_v19 = vpack.c.bf16 (!%p4099_p12), %v340_v14, %v337_v12  ;;  %v6249_v20 = vpack.c.bf16 (!%p4099_p12), %v347_v16, %v344_v15  ;;  %v343_v21 = vld [vmem:[%s6230_s19 + $0x30] sm:$0xff] (!%p4099_p12)  ;;  %v346_v22 = vld [vmem:[%s6230_s19 + $0x48] sm:$0xff] (!%p4099_p12)  ;;  %v353_v24 = vld [vmem:[%s6230_s19 + $0x80] sm:$0xff] (!%p4099_p12) }
  0x2f   : > { %v350_v23 = vld [vmem:[%s6230_s19 + $0x68] sm:$0xff]  ;;  %4997 = vmatprep.subr.bf16.mxu0 %v6240_v13  ;;  %v6259_v25 = vpack.c.bf16 %v346_v22, %v343_v21  ;;  %v349_v27 = vld [vmem:[%s6230_s19 + $0x60] sm:$0xff]  ;;  %v352_v28 = vld [vmem:[%s6230_s19 + $0x78] sm:$0xff] }
  0x30   : > { %4999 = vmatpush1.bf16.msra.mxu0 %v6247_v19  ;;  %v6262_v26 = vpack.c.bf16 %v353_v24, %v350_v23  ;;  %v356_v29 = vld [vmem:[%s6230_s19 + $0x98] sm:$0xff]  ;;  %v359_v30 = vld [vmem:[%s6230_s19 + $0xb0] sm:$0xff]  ;;  %v6269_v31 = vpack.c.bf16 %v352_v28, %v349_v27  ;;  %v358_v34 = vld [vmem:[%s6230_s19 + $0xa8] sm:$0xff] }
  0x31   : > { %5001 = vmatprep.subr.bf16.mxu0 %v6249_v20  ;;  %v355_v32 = vld [vmem:[%s6230_s19 + $0x90] sm:$0xff]  ;;  %v6273_v33 = vpack.c.bf16 %v359_v30, %v356_v29  ;;  %v342_v36 = vld [vmem:[%s6230_s19 + $0x28] sm:$0xff]  ;;  %v365_v38 = vld [vmem:[%s6230_s19 + $0xe0] sm:$0xff] }
  0x32   : > { %v339_v35 = vld [vmem:[%s6230_s19 + $0x10] sm:$0xff]  ;;  %v362_v37 = vld [vmem:[%s6230_s19 + $0xc8] sm:$0xff]  ;;  %v345_v40 = vld [vmem:[%s6230_s19 + $0x40] sm:$0xff]  ;;  %v6285_v42 = vpack.c.bf16 %v358_v34, %v355_v32 }
  0x33   : > { %v6280_v39 = vpack.c.bf16 %v342_v36, %v339_v35  ;;  %v348_v41 = vld [vmem:[%s6230_s19 + $0x58] sm:$0xff]  ;;  %v361_v43 = vld [vmem:[%s6230_s19 + $0xc0] sm:$0xff]  ;;  %v6292_v45 = vpack.c.bf16 %v365_v38, %v362_v37  ;;  %v351_v47 = vld [vmem:[%s6230_s19 + $0x70] sm:$0xff] }
  0x34   : > { %5003 = vmatpush1.bf16.msra.mxu0 %v6259_v25  ;;  %v6289_v44 = vpack.c.bf16 %v348_v41, %v345_v40  ;;  %v364_v46 = vld [vmem:[%s6230_s19 + $0xd8] sm:$0xff]  ;;  %v354_v48 = vld [vmem:[%s6230_s19 + $0x88] sm:$0xff]  ;;  %v371_v50 = vld [vmem:[%s6230_s19 + $0x110] sm:$0xff] }
  0x35   : > { %5005 = vmatprep.subr.bf16.mxu0 %v6262_v26  ;;  %5030 = vmatpush3.bf16.msra.mxu1 %v6280_v39  ;;  %v368_v49 = vld [vmem:[%s6230_s19 + $0xf8] sm:$0xff]  ;;  %v6301_v51 = vpack.c.bf16 %v364_v46, %v361_v43  ;;  %v367_v52 = vld [vmem:[%s6230_s19 + $0xf0] sm:$0xff]  ;;  %v6305_v53 = vpack.c.bf16 %v354_v48, %v351_v47  ;;  %v370_v55 = vld [vmem:[%s6230_s19 + $0x108] sm:$0xff] }
  0x36   : > { %5031 = vmatprep.subr.bf16.mxu1 %v6143_v17  ;;  %v6308_v54 = vpack.c.bf16 %v371_v50, %v368_v49  ;;  %v357_v56 = vld [vmem:[%s6230_s19 + $0xa0] sm:$0xff]  ;;  %v360_v57 = vld [vmem:[%s6230_s19 + $0xb8] sm:$0xff]  ;;  %v374_v58 = vld [vmem:[%s6230_s19 + $0x128] sm:$0xff]  ;;  %v6317_v60 = vpack.c.bf16 %v370_v55, %v367_v52 }
  0x37   : > { %v377_v59 = vld [vmem:[%s6230_s19 + $0x140] sm:$0xff]  ;;  %v6321_v62 = vpack.c.bf16 %v360_v57, %v357_v56  ;;  %v376_v0 = vld [vmem:[%s6230_s19 + $0x138] sm:$0xff]  ;;  %v363_v1 = vld [vmem:[%s6230_s19 + $0xd0] sm:$0xff] }
  0x38   : > { %5007 = vmatpush1.bf16.msra.mxu0 %v6269_v31  ;;  %v373_v61 = vld [vmem:[%s6230_s19 + $0x120] sm:$0xff]  ;;  %v6324_v63 = vpack.c.bf16 %v377_v59, %v374_v58  ;;  %v366_v2 = vld [vmem:[%s6230_s19 + $0xe8] sm:$0xff]  ;;  %v380_v3 = vld [vmem:[%s6230_s19 + $0x158] sm:$0xff] }
  0x39   : > { %5009 = vmatprep.subr.bf16.mxu0 %v6273_v33  ;;  %5033 = vmatpush3.bf16.msra.mxu1 %v6289_v44  ;;  %v383_v4 = vld [vmem:[%s6230_s19 + $0x170] sm:$0xff]  ;;  %v6333_v5 = vpack.c.bf16 %v376_v0, %v373_v61  ;;  %v6337_v7 = vpack.c.bf16 %v366_v2, %v363_v1  ;;  %v382_v10 = vld [vmem:[%s6230_s19 + $0x168] sm:$0xff]  ;;  %v369_v11 = vld [vmem:[%s6230_s19 + $0x100] sm:$0xff] }
  0x3a   : > { %5034 = vmatprep.subr.bf16.mxu1 %v6143_v17  ;;  %v379_v6 = vld [vmem:[%s6230_s19 + $0x150] sm:$0xff]  ;;  %v6340_v8 = vpack.c.bf16 %v383_v4, %v380_v3  ;;  %v372_v12 = vld [vmem:[%s6230_s19 + $0x118] sm:$0xff]  ;;  %v378_v21 = vld [vmem:[%s6230_s19 + $0x148] sm:$0xff] }
  0x3b   : > { %v6347_v14 = vpack.c.bf16 %v382_v10, %v379_v6  ;;  %v6350_v15 = vpack.c.bf16 %v372_v12, %v369_v11  ;;  %v375_v16 = vld [vmem:[%s6230_s19 + $0x130] sm:$0xff]  ;;  %v6357_v22 = vld [vmem:[#allocation2] sm:$0x3]  ;;  %v384_v27 = vld [vmem:[%s6230_s19 + $0x178] sm:$0xff] }
  0x3c   : > { %5011 = vmatpush1.bf16.msra.mxu0 %v6285_v42  ;;  %v6360_v23 = vpack.c.bf16 %v378_v21, %v375_v16  ;;  %v381_v24 = vld [vmem:[%s6230_s19 + $0x160] sm:$0xff] }
  0x3d   : > { %5013 = vmatprep.subr.bf16.mxu0 %v6292_v45  ;;  %5036 = vmatpush3.bf16.msra.mxu1 %v6305_v53  ;;  %v6368_v28 = vpack.c.bf16 %v384_v27, %v381_v24  ;;  %v335_v29 = vld [vmem:[%s6232_s20] sm:$0x7]  ;;  %v4102_v6 = vld [vmem:[%s6232_s20 + $0x3] sm:$0x7] }
  0x3e   : > { %5037 = vmatprep.subr.bf16.mxu1 %v6143_v17  ;;  %v336_v30 = vunpack.c.l.bf16 %v335_v29  ;;  %v559_v10 = vunpack.c.l.bf16 %v4102_v6  ;;  %v1232_v6 = vld [vmem:[%s6230_s19] sm:$0xff] }
  0x40   : > { %5015 = vmatpush1.bf16.msra.mxu0 %v6301_v51  ;;  %v534_v34 = vrot.slane %v336_v30, 2  ;;  %v545_v52 = vrot.slane %v336_v30, 4  ;;  %v757_v16 = vrot.slane %v559_v10, 2 }
  0x41   : > { %5017 = vmatprep.subr.bf16.mxu0 %v6308_v54  ;;  %5039 = vmatpush3.bf16.msra.mxu1 %v6321_v62 }
  0x42   : > { %5040 = vmatprep.subr.bf16.mxu1 %v6143_v17 }
  0x44   : > { %5019 = vmatpush1.bf16.msra.mxu0 %v6317_v60 }
  0x45   : > { %5021 = vmatprep.subr.bf16.mxu0 %v6324_v63  ;;  %5042 = vmatpush3.bf16.msra.mxu1 %v6337_v7 }
  0x46   : > { %5043 = vmatprep.subr.bf16.mxu1 %v6143_v17 }
  0x48   : > { %5023 = vmatpush1.bf16.msra.mxu0 %v6333_v5 }
  0x49   : > { %5025 = vmatprep.subr.bf16.mxu0 %v6340_v8  ;;  %5045 = vmatpush3.bf16.msra.mxu1 %v6350_v15 }
  0x4a   : > { %5046 = vmatprep.subr.bf16.mxu1 %v6143_v17 }
  0x4c   : > { %5027 = vmatpush1.bf16.msra.mxu0 %v6347_v14 }
  0x4d   : > { %5053 = vmatprep.subr.bf16.mxu0 %v6240_v13  ;;  %5048 = vmatpush3.bf16.msra.mxu1 %v6360_v23 }
  0x4e   : > { %5049 = vmatprep.subr.bf16.mxu1 %v6143_v17 }
  0x4f   : > { %450 = vmatmul.mubr.f32.vlgmr.msra.gmra.mrb[0].mxu0 %v6357_v22 }
  0x50   : > { %5055 = vmatpush1.bf16.msra.mxu0 %v6247_v19  ;;  %672 = vmatprep.mubr.f32.mxu0 %v6144_v18 }
  0x51   : > { %5057 = vmatprep.subr.bf16.mxu0 %v6249_v20  ;;  %5051 = vmatpush3.bf16.msra.mxu1 %v6368_v28 }
  0x52   : > { %5084 = vmatprep.subr.bf16.mxu1 %v6143_v17 }
  0x54   : > { %5059 = vmatpush1.bf16.msra.mxu0 %v6259_v25  ;;  %4469 = vmatmul.mubr.f32.vlgmr.msra.gmra.mrb[0].mxu1 %v6357_v22 }
  0x55   : > { %5061 = vmatprep.subr.bf16.mxu0 %v6262_v26  ;;  %5086 = vmatpush3.bf16.msra.mxu1 %v6280_v39 }
  0x56   : > { %5087 = vmatprep.subr.bf16.mxu1 %v6143_v17  ;;  %4503 = vmatprep.mubr.msk.f32.mxu1 %vm6145_vm0, %v6144_v18 }
  0x58   : > { %5063 = vmatpush1.bf16.msra.mxu0 %v6269_v31 }
  0x59   : > { %5065 = vmatprep.subr.bf16.mxu0 %v6273_v33  ;;  %5089 = vmatpush3.bf16.msra.mxu1 %v6289_v44 }
  0x5a   : > { %5090 = vmatprep.subr.bf16.mxu1 %v6143_v17 }
  0x5c   : > { %5067 = vmatpush1.bf16.msra.mxu0 %v6285_v42 }
  0x5d   : > { %5069 = vmatprep.subr.bf16.mxu0 %v6292_v45  ;;  %5092 = vmatpush3.bf16.msra.mxu1 %v6305_v53 }
  0x5e   : > { %5093 = vmatprep.subr.bf16.mxu1 %v6143_v17 }
  0x60   : > { %5071 = vmatpush1.bf16.msra.mxu0 %v6301_v51 }
  0x61   : > { %5073 = vmatprep.subr.bf16.mxu0 %v6308_v54  ;;  %5095 = vmatpush3.bf16.msra.mxu1 %v6321_v62 }
  0x62   : > { %5096 = vmatprep.subr.bf16.mxu1 %v6143_v17 }
  0x64   : > { %5075 = vmatpush1.bf16.msra.mxu0 %v6317_v60 }
  0x65   : > { %5077 = vmatprep.subr.bf16.mxu0 %v6324_v63  ;;  %5098 = vmatpush3.bf16.msra.mxu1 %v6337_v7 }
  0x66   : > { %5099 = vmatprep.subr.bf16.mxu1 %v6143_v17 }
  0x68   : > { %5079 = vmatpush1.bf16.msra.mxu0 %v6333_v5 }
  0x69   : > { %5081 = vmatprep.subr.bf16.mxu0 %v6340_v8  ;;  %5101 = vmatpush3.bf16.msra.mxu1 %v6350_v15 }
  0x6a   : > { %5102 = vmatprep.subr.bf16.mxu1 %v6143_v17 }
  0x6c   : > { %5083 = vmatpush1.bf16.msra.mxu0 %v6347_v14 }
  0x6d   : > { %5109 = vmatprep.subr.bf16.mxu0 %v6240_v13  ;;  %5104 = vmatpush3.bf16.msra.mxu1 %v6360_v23 }
  0x6e   : > { %5105 = vmatprep.subr.bf16.mxu1 %v6143_v17 }
  0x71   : > { %5107 = vmatpush3.bf16.msra.mxu1 %v6368_v28 }
  0x72   : > { %5140 = vmatprep.subr.bf16.mxu1 %v6143_v17 }
 0x122   : > { %v451_v32 = vpop.f32.mrb[0].mxu0 }
 0x123   : > { %v526_v35 = vadd.f32 %v451_v32, %v336_v30  ;;  %v453_v36 = vpop.f32.mrb[1].mxu0 }
 0x124   : > { %v536_v38 = vadd.f32 %v534_v34, %v453_v36 }
 0x125   : > { %v4100_v37 = vmul.f32 -1.442695, %v526_v35 }
 0x126   : > { %v4101_v40 = vmul.f32 -1.442695, %v536_v38 }
 0x127   : > { %5942 = vpow2.f32 %v4100_v37  ;;  %v522_v41 = vpop.f32.mrb[0].mxu1  ;;  %v768_v37 = vrot.slane %v559_v10, 4 }
 0x128   : > { %v4470_v43 = vpop.f32.mrb[1].mxu1  ;;  %5944 = vpow2.f32 %v4101_v40  ;;  %v543_v50 = vadd.f32 %v6225_v9, %v522_v41 }
 0x131   : > { %v5943_v46 = vpop.eup %5942 }
 0x132   : > { %v530_v47 = vadd.f32 1.0, %v5943_v46  ;;  %v5945_v48 = vpop.eup %5944 }
 0x133   : > { %v540_v49 = vadd.f32 1.0, %v5945_v48 }
 0x134   : > { %5946 = vrcp.f32 %v530_v47 }
 0x135   : > { %5948 = vrcp.f32 %v540_v49 }
 0x13e   : > { %v5947_v55 = vpop.eup %5946 }
 0x13f   : > { %v544_v56 = vmul.f32 %v5947_v55, %v543_v50  ;;  %v5949_v58 = vpop.eup %5948 }
 0x140   : > { %v549_v59 = vsub.f32 1.0, %v5949_v58  ;;  %v551_v0 = vmul.f32 %v5949_v58, %v6357_v22 }
 0x141   : > { %v547_v57 = vadd.f32 %v545_v52, %v544_v56 }
 0x143   : > { %5950 = vtanh.f32 %v547_v57 }
 0x14d   : > { %v5951_v61 = vpop.eup %5950 }
 0x14e   : > { %v550_v1 = vmul.f32 %v5951_v61, %v549_v59 }
 0x150   : > { %v552_v2 = vadd.f32 %v551_v0, %v550_v1 }
 0x152   : > { %553 = vst [vmem:[#allocation2] sm:$0x3] %v552_v2  ;;  %v554_v3 = vpack.c.bf16 %v552_v2, %v552_v2 }
 0x154   : > { %555 = vst [vmem:[%s6234_s12] sm:$0x1] %v554_v3  ;;  %v1236_v3 = vld [vmem:[%s6230_s19 + $0x20] sm:$0xff] }
 0x159   : > { %v6413_v4 = vld [vmem:[#allocation2] sm:$0x3] }
 0x15a   : > { %673 = vmatmul.mubr.f32.vlgmr.msra.gmra.mrb[2].mxu0 %v6413_v4  ;;  %4504 = vmatmul.mubr.f32.vlgmr.msra.gmra.mrb[2].mxu1 %v6413_v4 }
 0x15b   : > { %5111 = vmatpush1.bf16.msra.mxu0 %v6247_v19  ;;  %5142 = vmatpush3.bf16.msra.mxu1 %v6280_v39 }
 0x15c   : > { %5113 = vmatprep.subr.bf16.mxu0 %v6249_v20  ;;  %5143 = vmatprep.subr.bf16.mxu1 %v6143_v17 }
 0x15d   : > { %896 = vmatprep.mubr.f32.mxu0 %v6144_v18  ;;  %4538 = vmatprep.mubr.msk.f32.mxu1 %vm6145_vm0, %v6144_v18 }
 0x15f   : > { %5115 = vmatpush1.bf16.msra.mxu0 %v6259_v25  ;;  %5145 = vmatpush3.bf16.msra.mxu1 %v6289_v44 }
 0x160   : > { %5117 = vmatprep.subr.bf16.mxu0 %v6262_v26  ;;  %5146 = vmatprep.subr.bf16.mxu1 %v6143_v17 }
 0x163   : > { %5119 = vmatpush1.bf16.msra.mxu0 %v6269_v31  ;;  %5148 = vmatpush3.bf16.msra.mxu1 %v6305_v53 }
 0x164   : > { %5121 = vmatprep.subr.bf16.mxu0 %v6273_v33  ;;  %5149 = vmatprep.subr.bf16.mxu1 %v6143_v17 }
 0x167   : > { %5123 = vmatpush1.bf16.msra.mxu0 %v6285_v42  ;;  %5151 = vmatpush3.bf16.msra.mxu1 %v6321_v62 }
 0x168   : > { %5125 = vmatprep.subr.bf16.mxu0 %v6292_v45  ;;  %5152 = vmatprep.subr.bf16.mxu1 %v6143_v17 }
 0x16b   : > { %5127 = vmatpush1.bf16.msra.mxu0 %v6301_v51  ;;  %5154 = vmatpush3.bf16.msra.mxu1 %v6337_v7 }
 0x16c   : > { %5129 = vmatprep.subr.bf16.mxu0 %v6308_v54  ;;  %5155 = vmatprep.subr.bf16.mxu1 %v6143_v17 }
 0x16f   : > { %5131 = vmatpush1.bf16.msra.mxu0 %v6317_v60  ;;  %5157 = vmatpush3.bf16.msra.mxu1 %v6350_v15 }
 0x170   : > { %5133 = vmatprep.subr.bf16.mxu0 %v6324_v63  ;;  %5158 = vmatprep.subr.bf16.mxu1 %v6143_v17 }
 0x173   : > { %5135 = vmatpush1.bf16.msra.mxu0 %v6333_v5  ;;  %5160 = vmatpush3.bf16.msra.mxu1 %v6360_v23 }
 0x174   : > { %5137 = vmatprep.subr.bf16.mxu0 %v6340_v8  ;;  %5161 = vmatprep.subr.bf16.mxu1 %v6143_v17 }
 0x177   : > { %5139 = vmatpush1.bf16.msra.mxu0 %v6347_v14  ;;  %5163 = vmatpush3.bf16.msra.mxu1 %v6368_v28 }
 0x178   : > { %5165 = vmatprep.subr.bf16.mxu0 %v6240_v13  ;;  %5196 = vmatprep.subr.bf16.mxu1 %v6143_v17 }
 0x22d   : > { %v674_v11 = vpop.f32.mrb[2].mxu0  ;;  %v745_v12 = vpop.f32.mrb[2].mxu1 }
 0x22e   : > { %v749_v21 = vadd.f32 %v674_v11, %v559_v10  ;;  %v676_v22 = vpop.f32.mrb[3].mxu0  ;;  %v4505_v24 = vpop.f32.mrb[3].mxu1  ;;  %v766_v36 = vadd.f32 %v6225_v9, %v745_v12  ;;  %v1235_v10 = vld [vmem:[%s6230_s19 + $0x18] sm:$0xff] }
 0x22f   : > { %v759_v29 = vadd.f32 %v757_v16, %v676_v22  ;;  %v6517_v11 = vpack.c.bf16 %v1235_v10, %v1232_v6  ;;  %v1238_v16 = vld [vmem:[%s6230_s19 + $0x30] sm:$0xff]  ;;  %v1245_v24 = vld [vmem:[%s6230_s19 + $0x68] sm:$0xff] }
 0x230   : > { %v4103_v27 = vmul.f32 -1.442695, %v749_v21  ;;  %v1241_v21 = vld [vmem:[%s6230_s19 + $0x48] sm:$0xff] }
 0x231   : > { %v4104_v30 = vmul.f32 -1.442695, %v759_v29  ;;  %v6527_v22 = vpack.c.bf16 %v1241_v21, %v1238_v16  ;;  %v4110_v10 = vld [vmem:[%s6232_s20 + $0x9] sm:$0x7] }
 0x232   : > { %5952 = vpow2.f32 %v4103_v27  ;;  %v1248_v27 = vld [vmem:[%s6230_s19 + $0x80] sm:$0xff] }
 0x233   : > { %5954 = vpow2.f32 %v4104_v30  ;;  %v6533_v29 = vpack.c.bf16 %v1248_v27, %v1245_v24  ;;  %v1244_v30 = vld [vmem:[%s6230_s19 + $0x60] sm:$0xff] }
 0x23c   : > { %v5953_v32 = vpop.eup %5952 }
 0x23d   : > { %v753_v34 = vadd.f32 1.0, %v5953_v32  ;;  %v5955_v35 = vpop.eup %5954  ;;  %v1247_v32 = vld [vmem:[%s6230_s19 + $0x78] sm:$0xff] }
 0x23e   : > { %v763_v13 = vadd.f32 1.0, %v5955_v35  ;;  %v1251_v35 = vld [vmem:[%s6230_s19 + $0x98] sm:$0xff] }
 0x23f   : > { %5956 = vrcp.f32 %v753_v34  ;;  %v6537_v34 = vpack.c.bf16 %v1247_v32, %v1244_v30 }
 0x240   : > { %5958 = vrcp.f32 %v763_v13  ;;  %v1254_v13 = vld [vmem:[%s6230_s19 + $0xb0] sm:$0xff] }
 0x249   : > { %v5957_v38 = vpop.eup %5956 }
 0x24a   : > { %v767_v40 = vmul.f32 %v5957_v38, %v766_v36  ;;  %v5959_v43 = vpop.eup %5958  ;;  %v6543_v36 = vpack.c.bf16 %v1254_v13, %v1251_v35  ;;  %v1253_v38 = vld [vmem:[%s6230_s19 + $0xa8] sm:$0xff] }
 0x24b   : > { %v772_v46 = vsub.f32 1.0, %v5959_v43  ;;  %v774_v49 = vmul.f32 %v5959_v43, %v6413_v4  ;;  %v1255_v43 = vld [vmem:[%s6230_s19 + $0xb8] sm:$0xff] }
 0x24c   : > { %v770_v41 = vadd.f32 %v768_v37, %v767_v40  ;;  %v1250_v37 = vld [vmem:[%s6230_s19 + $0x90] sm:$0xff]  ;;  %v1252_v40 = vld [vmem:[%s6230_s19 + $0xa0] sm:$0xff] }
 0x24e   : > { %5960 = vtanh.f32 %v770_v41  ;;  %v6548_v41 = vpack.c.bf16 %v1253_v38, %v1250_v37 }
 0x258   : > { %v5961_v47 = vpop.eup %5960 }
 0x259   : > { %v773_v48 = vmul.f32 %v5961_v47, %v772_v46  ;;  %v6552_v46 = vpack.c.bf16 %v1255_v43, %v1252_v40  ;;  %v1257_v47 = vld [vmem:[%s6230_s19 + $0xc8] sm:$0xff] }
 0x25b   : > { %v775_v50 = vadd.f32 %v774_v49, %v773_v48  ;;  %v1260_v48 = vld [vmem:[%s6230_s19 + $0xe0] sm:$0xff] }
 0x25c   : > { %v6558_v49 = vpack.c.bf16 %v1260_v48, %v1257_v47 }
 0x25d   : > { %776 = vst [vmem:[#allocation2] sm:$0x3] %v775_v50  ;;  %v777_v52 = vpack.c.bf16 %v775_v50, %v775_v50  ;;  %v1256_v50 = vld [vmem:[%s6230_s19 + $0xc0] sm:$0xff] }
 0x25f   : > { %4105 = vst [vmem:[%s6234_s12 + $0x1] sm:$0x1] %v777_v52  ;;  %v1259_v52 = vld [vmem:[%s6230_s19 + $0xd8] sm:$0xff] }
 0x264   : > { %v6456_v55 = vld [vmem:[#allocation2] sm:$0x3] }
 0x265   : > { %897 = vmatmul.mubr.f32.vlgmr.msra.gmra.mrb[4].mxu0 %v6456_v55  ;;  %4539 = vmatmul.mubr.f32.vlgmr.msra.gmra.mrb[4].mxu1 %v6456_v55 }
 0x266   : > { %5167 = vmatpush1.bf16.msra.mxu0 %v6247_v19  ;;  %5198 = vmatpush3.bf16.msra.mxu1 %v6280_v39  ;;  %v4106_v19 = vld [vmem:[%s6232_s20 + $0x6] sm:$0x7] }
 0x267   : > { %5169 = vmatprep.subr.bf16.mxu0 %v6249_v20  ;;  %5199 = vmatprep.subr.bf16.mxu1 %v6143_v17  ;;  %v783_v20 = vunpack.c.l.bf16 %v4106_v19  ;;  %v6564_v19 = vpack.c.bf16 %v1259_v52, %v1256_v50 }
 0x268   : > { %1120 = vmatprep.mubr.f32.mxu0 %v6144_v18  ;;  %4573 = vmatprep.mubr.msk.f32.mxu1 %vm6145_vm0, %v6144_v18 }
 0x26a   : > { %5171 = vmatpush1.bf16.msra.mxu0 %v6259_v25  ;;  %5201 = vmatpush3.bf16.msra.mxu1 %v6289_v44 }
 0x26b   : > { %5173 = vmatprep.subr.bf16.mxu0 %v6262_v26  ;;  %5202 = vmatprep.subr.bf16.mxu1 %v6143_v17 }
 0x26e   : > { %5175 = vmatpush1.bf16.msra.mxu0 %v6269_v31  ;;  %5204 = vmatpush3.bf16.msra.mxu1 %v6305_v53  ;;  %v981_v31 = vrot.slane %v783_v20, 2 }
 0x26f   : > { %5177 = vmatprep.subr.bf16.mxu0 %v6273_v33  ;;  %5205 = vmatprep.subr.bf16.mxu1 %v6143_v17 }
 0x272   : > { %5179 = vmatpush1.bf16.msra.mxu0 %v6285_v42  ;;  %5207 = vmatpush3.bf16.msra.mxu1 %v6321_v62 }
 0x273   : > { %5181 = vmatprep.subr.bf16.mxu0 %v6292_v45  ;;  %5208 = vmatprep.subr.bf16.mxu1 %v6143_v17 }
 0x276   : > { %5183 = vmatpush1.bf16.msra.mxu0 %v6301_v51  ;;  %5210 = vmatpush3.bf16.msra.mxu1 %v6337_v7 }
 0x277   : > { %5185 = vmatprep.subr.bf16.mxu0 %v6308_v54  ;;  %5211 = vmatprep.subr.bf16.mxu1 %v6143_v17 }
 0x27a   : > { %5187 = vmatpush1.bf16.msra.mxu0 %v6317_v60  ;;  %5213 = vmatpush3.bf16.msra.mxu1 %v6350_v15 }
 0x27b   : > { %5189 = vmatprep.subr.bf16.mxu0 %v6324_v63  ;;  %5214 = vmatprep.subr.bf16.mxu1 %v6143_v17 }
 0x27e   : > { %5191 = vmatpush1.bf16.msra.mxu0 %v6333_v5  ;;  %5216 = vmatpush3.bf16.msra.mxu1 %v6360_v23 }
 0x27f   : > { %5193 = vmatprep.subr.bf16.mxu0 %v6340_v8  ;;  %5217 = vmatprep.subr.bf16.mxu1 %v6143_v17 }
 0x282   : > { %5195 = vmatpush1.bf16.msra.mxu0 %v6347_v14  ;;  %5219 = vmatpush3.bf16.msra.mxu1 %v6368_v28  ;;  %v992_v14 = vrot.slane %v783_v20, 4 }
 0x283   : > { %5252 = vmatprep.subr.bf16.mxu1 %v6143_v17 }
 0x338   : > { %v898_v25 = vpop.f32.mrb[4].mxu0  ;;  %v969_v26 = vpop.f32.mrb[4].mxu1 }
 0x339   : > { %v973_v33 = vadd.f32 %v898_v25, %v783_v20  ;;  %v900_v42 = vpop.f32.mrb[5].mxu0  ;;  %v4540_v45 = vpop.f32.mrb[5].mxu1  ;;  %v990_v8 = vadd.f32 %v6225_v9, %v969_v26  ;;  %v1261_v20 = vld [vmem:[%s6230_s19 + $0xe8] sm:$0xff]  ;;  %v1263_v26 = vld [vmem:[%s6230_s19 + $0xf8] sm:$0xff] }
 0x33a   : > { %v983_v54 = vadd.f32 %v981_v31, %v900_v42  ;;  %v1266_v31 = vld [vmem:[%s6230_s19 + $0x110] sm:$0xff]  ;;  %v1265_v45 = vld [vmem:[%s6230_s19 + $0x108] sm:$0xff] }
 0x33b   : > { %v4107_v51 = vmul.f32 -1.442695, %v973_v33  ;;  %v6574_v33 = vpack.c.bf16 %v1266_v31, %v1263_v26  ;;  %v1262_v42 = vld [vmem:[%s6230_s19 + $0xf0] sm:$0xff] }
 0x33c   : > { %v4108_v60 = vmul.f32 -1.442695, %v983_v54  ;;  %v6580_v54 = vpack.c.bf16 %v1265_v45, %v1262_v42 }
 0x33d   : > { %5962 = vpow2.f32 %v4107_v51  ;;  %v1264_v51 = vld [vmem:[%s6230_s19 + $0x100] sm:$0xff] }
 0x33e   : > { %5964 = vpow2.f32 %v4108_v60  ;;  %v1267_v60 = vld [vmem:[%s6230_s19 + $0x118] sm:$0xff] }
 0x347   : > { %v5963_v62 = vpop.eup %5962 }
 0x348   : > { %v977_v63 = vadd.f32 1.0, %v5963_v62  ;;  %v5965_v5 = vpop.eup %5964  ;;  %v6584_v62 = vpack.c.bf16 %v1267_v60, %v1264_v51 }
 0x349   : > { %v987_v7 = vadd.f32 1.0, %v5965_v5  ;;  %v1272_v5 = vld [vmem:[%s6230_s19 + $0x140] sm:$0xff] }
 0x34a   : > { %5966 = vrcp.f32 %v977_v63  ;;  %v1269_v63 = vld [vmem:[%s6230_s19 + $0x128] sm:$0xff] }
 0x34b   : > { %5968 = vrcp.f32 %v987_v7  ;;  %v6590_v7 = vpack.c.bf16 %v1272_v5, %v1269_v63  ;;  %v1461_v5 = vld [vmem:[%s6230_s19 + $0x28] sm:$0xff] }
 0x354   : > { %v5967_v15 = vpop.eup %5966 }
 0x355   : > { %v991_v23 = vmul.f32 %v5967_v15, %v990_v8  ;;  %v5969_v56 = vpop.eup %5968  ;;  %v1268_v8 = vld [vmem:[%s6230_s19 + $0x120] sm:$0xff]  ;;  %v1270_v15 = vld [vmem:[%s6230_s19 + $0x130] sm:$0xff] }
 0x356   : > { %v996_v57 = vsub.f32 1.0, %v5969_v56  ;;  %v998_v61 = vmul.f32 %v5969_v56, %v6456_v55  ;;  %v1258_v55 = vld [vmem:[%s6230_s19 + $0xd0] sm:$0xff] }
 0x357   : > { %v994_v28 = vadd.f32 %v992_v14, %v991_v23  ;;  %v6568_v25 = vpack.c.bf16 %v1261_v20, %v1258_v55  ;;  %v1271_v14 = vld [vmem:[%s6230_s19 + $0x138] sm:$0xff] }
 0x358   : > { %v6596_v23 = vpack.c.bf16 %v1271_v14, %v1268_v8  ;;  %v1464_v14 = vld [vmem:[%s6230_s19 + $0x40] sm:$0xff] }
 0x359   : > { %5970 = vtanh.f32 %v994_v28  ;;  %v1273_v28 = vld [vmem:[%s6230_s19 + $0x148] sm:$0xff] }
 0x35a   : > { %v6600_v56 = vpack.c.bf16 %v1273_v28, %v1270_v15  ;;  %v1467_v15 = vld [vmem:[%s6230_s19 + $0x58] sm:$0xff] }
 0x35b   : > { %v6657_v28 = vpack.c.bf16 %v1467_v15, %v1464_v14 }
 0x363   : > { %v5971_v58 = vpop.eup %5970 }
 0x364   : > { %v997_v59 = vmul.f32 %v5971_v58, %v996_v57  ;;  %v1275_v57 = vld [vmem:[%s6230_s19 + $0x158] sm:$0xff]  ;;  %v1278_v58 = vld [vmem:[%s6230_s19 + $0x170] sm:$0xff] }
 0x366   : > { %v999_v0 = vadd.f32 %v998_v61, %v997_v59  ;;  %v6606_v59 = vpack.c.bf16 %v1278_v58, %v1275_v57  ;;  %v1274_v61 = vld [vmem:[%s6230_s19 + $0x150] sm:$0xff]  ;;  %v1473_v58 = vld [vmem:[%s6230_s19 + $0x88] sm:$0xff] }
 0x367   : > { %v1470_v57 = vld [vmem:[%s6230_s19 + $0x70] sm:$0xff] }
 0x368   : > { %1000 = vst [vmem:[#allocation2] sm:$0x3] %v999_v0  ;;  %v1001_v1 = vpack.c.bf16 %v999_v0, %v999_v0  ;;  %v1277_v0 = vld [vmem:[%s6230_s19 + $0x168] sm:$0xff] }
 0x36a   : > { %4109 = vst [vmem:[%s6234_s12 + $0x2] sm:$0x1] %v1001_v1  ;;  %v1276_v1 = vld [vmem:[%s6230_s19 + $0x160] sm:$0xff] }
 0x36f   : > { %v6498_v2 = vld [vmem:[#allocation2] sm:$0x3] }
 0x370   : > { %1121 = vmatmul.mubr.f32.vlgmr.msra.gmra.mrb[6].mxu0 %v6498_v2  ;;  %4574 = vmatmul.mubr.f32.vlgmr.msra.gmra.mrb[6].mxu1 %v6498_v2 }
 0x371   : > { %5254 = vmatpush3.bf16.msra.mxu1 %v6280_v39  ;;  %1344 = vmatprep.mubr.f32.mxu0 %v6144_v18  ;;  %v1233_v39 = vld [vmem:[%s6230_s19 + $0x8] sm:$0xff] }
 0x372   : > { %5255 = vmatprep.subr.bf16.mxu1 %v6143_v17  ;;  %4608 = vmatprep.mubr.msk.f32.mxu1 %vm6145_vm0, %v6144_v18  ;;  %v6513_v4 = vpack.c.bf16 %v1236_v3, %v1233_v39  ;;  %v6612_v39 = vpack.c.bf16 %v1277_v0, %v1274_v61  ;;  %v1279_v3 = vld [vmem:[%s6230_s19 + $0x178] sm:$0xff]  ;;  %v6663_v61 = vpack.c.bf16 %v1473_v58, %v1470_v57  ;;  %v4114_v0 = vld [vmem:[%s6232_s20 + $0xc] sm:$0x7] }
 0x373   : > { %v6616_v6 = vpack.c.bf16 %v1279_v3, %v1276_v1  ;;  %v1231_v1 = vunpack.c.l.bf16 %v4114_v0 }
 0x374   : > { %5221 = vmatprep.subr.bf16.mxu0 %v6513_v4 }
 0x375   : > { %5257 = vmatpush3.bf16.msra.mxu1 %v6289_v44  ;;  %5223 = vmatpush1.bf16.msra.mxu0 %v6517_v11  ;;  %v1239_v44 = vld [vmem:[%s6230_s19 + $0x38] sm:$0xff] }
 0x376   : > { %5258 = vmatprep.subr.bf16.mxu1 %v6143_v17 }
 0x379   : > { %5260 = vmatpush3.bf16.msra.mxu1 %v6305_v53  ;;  %v1242_v53 = vld [vmem:[%s6230_s19 + $0x50] sm:$0xff] }
 0x37a   : > { %5261 = vmatprep.subr.bf16.mxu1 %v6143_v17  ;;  %v6523_v12 = vpack.c.bf16 %v1242_v53, %v1239_v44  ;;  %v1007_v44 = vunpack.c.l.bf16 %v4110_v10 }
 0x37c   : > { %5225 = vmatprep.subr.bf16.mxu0 %v6523_v12  ;;  %v1205_v21 = vrot.slane %v1007_v44, 2  ;;  %v1216_v48 = vrot.slane %v1007_v44, 4 }
 0x37d   : > { %5227 = vmatpush1.bf16.msra.mxu0 %v6527_v22  ;;  %5263 = vmatpush3.bf16.msra.mxu1 %v6552_v46 }
 0x37e   : > { %5229 = vmatprep.subr.bf16.mxu0 %v6533_v29  ;;  %5264 = vmatprep.subr.bf16.mxu1 %v6143_v17 }
 0x381   : > { %5231 = vmatpush1.bf16.msra.mxu0 %v6537_v34  ;;  %5266 = vmatpush3.bf16.msra.mxu1 %v6568_v25 }
 0x382   : > { %5233 = vmatprep.subr.bf16.mxu0 %v6543_v36  ;;  %5267 = vmatprep.subr.bf16.mxu1 %v6143_v17 }
 0x385   : > { %5235 = vmatpush1.bf16.msra.mxu0 %v6548_v41  ;;  %5269 = vmatpush3.bf16.msra.mxu1 %v6584_v62 }
 0x386   : > { %5237 = vmatprep.subr.bf16.mxu0 %v6558_v49  ;;  %5270 = vmatprep.subr.bf16.mxu1 %v6143_v17 }
 0x389   : > { %5239 = vmatpush1.bf16.msra.mxu0 %v6564_v19  ;;  %5272 = vmatpush3.bf16.msra.mxu1 %v6600_v56 }
 0x38a   : > { %5241 = vmatprep.subr.bf16.mxu0 %v6574_v33  ;;  %5273 = vmatprep.subr.bf16.mxu1 %v6143_v17 }
 0x38d   : > { %5243 = vmatpush1.bf16.msra.mxu0 %v6580_v54  ;;  %5275 = vmatpush3.bf16.msra.mxu1 %v6616_v6 }
 0x38e   : > { %5245 = vmatprep.subr.bf16.mxu0 %v6590_v7  ;;  %5308 = vmatprep.subr.bf16.mxu1 %v6143_v17 }
 0x391   : > { %5247 = vmatpush1.bf16.msra.mxu0 %v6596_v23 }
 0x392   : > { %5249 = vmatprep.subr.bf16.mxu0 %v6606_v59 }
 0x395   : > { %5251 = vmatpush1.bf16.msra.mxu0 %v6612_v39 }
 0x396   : > { %5277 = vmatprep.subr.bf16.mxu0 %v6513_v4 }
 0x443   : > { %v1122_v53 = vpop.f32.mrb[6].mxu0  ;;  %v1193_v16 = vpop.f32.mrb[6].mxu1 }
 0x444   : > { %v1197_v24 = vadd.f32 %v1122_v53, %v1007_v44  ;;  %v1124_v27 = vpop.f32.mrb[7].mxu0  ;;  %v4575_v30 = vpop.f32.mrb[7].mxu1  ;;  %v1214_v47 = vadd.f32 %v6225_v9, %v1193_v16  ;;  %v1429_v44 = vrot.slane %v1231_v1, 2 }
 0x445   : > { %v1207_v35 = vadd.f32 %v1205_v21, %v1124_v27 }
 0x446   : > { %v4111_v32 = vmul.f32 -1.442695, %v1197_v24 }
 0x447   : > { %v4112_v13 = vmul.f32 -1.442695, %v1207_v35 }
 0x448   : > { %5972 = vpow2.f32 %v4111_v32 }
 0x449   : > { %5974 = vpow2.f32 %v4112_v13 }
 0x452   : > { %v5973_v37 = vpop.eup %5972 }
 0x453   : > { %v1201_v38 = vadd.f32 1.0, %v5973_v37  ;;  %v5975_v40 = vpop.eup %5974 }
 0x454   : > { %v1211_v43 = vadd.f32 1.0, %v5975_v40  ;;  %v1440_v40 = vrot.slane %v1231_v1, 4 }
 0x455   : > { %5976 = vrcp.f32 %v1201_v38 }
 0x456   : > { %5978 = vrcp.f32 %v1211_v43 }
 0x45f   : > { %v5977_v50 = vpop.eup %5976 }
 0x460   : > { %v1215_v52 = vmul.f32 %v5977_v50, %v1214_v47  ;;  %v5979_v20 = vpop.eup %5978 }
 0x461   : > { %v1220_v26 = vsub.f32 1.0, %v5979_v20  ;;  %v1222_v45 = vmul.f32 %v5979_v20, %v6498_v2  ;;  %v1458_v2 = vld [vmem:[%s6230_s19 + $0x10] sm:$0xff] }
 0x462   : > { %v1218_v55 = vadd.f32 %v1216_v48, %v1215_v52  ;;  %v6651_v8 = vpack.c.bf16 %v1461_v5, %v1458_v2 }
 0x464   : > { %5980 = vtanh.f32 %v1218_v55 }
 0x46e   : > { %v5981_v31 = vpop.eup %5980 }
 0x46f   : > { %v1221_v42 = vmul.f32 %v5981_v31, %v1220_v26 }
 0x471   : > { %v1223_v51 = vadd.f32 %v1222_v45, %v1221_v42 }
 0x473   : > { %1224 = vst [vmem:[#allocation2] sm:$0x3] %v1223_v51  ;;  %v1225_v60 = vpack.c.bf16 %v1223_v51, %v1223_v51  ;;  %v4118_v51 = vld [vmem:[%s6232_s20 + $0xf] sm:$0x7] }
 0x475   : > { %4113 = vst [vmem:[%s6234_s12 + $0x3] sm:$0x1] %v1225_v60  ;;  %v1455_v60 = vunpack.c.l.bf16 %v4118_v51 }
 0x477   : > { %v1653_v5 = vrot.slane %v1455_v60, 2 }
 0x47a   : > { %v6626_v63 = vld [vmem:[#allocation2] sm:$0x3] }
 0x47b   : > { %1345 = vmatmul.mubr.f32.vlgmr.msra.gmra.mrb[8].mxu0 %v6626_v63  ;;  %4609 = vmatmul.mubr.f32.vlgmr.msra.gmra.mrb[8].mxu1 %v6626_v63 }
 0x47c   : > { %5279 = vmatpush1.bf16.msra.mxu0 %v6517_v11  ;;  %1568 = vmatprep.mubr.f32.mxu0 %v6144_v18 }
 0x47d   : > { %5281 = vmatprep.subr.bf16.mxu0 %v6523_v12  ;;  %4643 = vmatprep.mubr.msk.f32.mxu1 %vm6145_vm0, %v6144_v18 }
 0x47e   : > { %5310 = vmatpush3.bf16.msra.mxu1 %v6651_v8 }
 0x47f   : > { %5311 = vmatprep.subr.bf16.mxu1 %v6143_v17 }
 0x480   : > { %5283 = vmatpush1.bf16.msra.mxu0 %v6527_v22 }
 0x481   : > { %5285 = vmatprep.subr.bf16.mxu0 %v6533_v29 }
 0x482   : > { %5313 = vmatpush3.bf16.msra.mxu1 %v6657_v28 }
 0x483   : > { %5314 = vmatprep.subr.bf16.mxu1 %v6143_v17 }
 0x484   : > { %5287 = vmatpush1.bf16.msra.mxu0 %v6537_v34 }
 0x485   : > { %5289 = vmatprep.subr.bf16.mxu0 %v6543_v36 }
 0x486   : > { %5316 = vmatpush3.bf16.msra.mxu1 %v6663_v61 }
 0x487   : > { %5317 = vmatprep.subr.bf16.mxu1 %v6143_v17 }
 0x488   : > { %5291 = vmatpush1.bf16.msra.mxu0 %v6548_v41 }
 0x489   : > { %5293 = vmatprep.subr.bf16.mxu0 %v6558_v49 }
 0x48a   : > { %5319 = vmatpush3.bf16.msra.mxu1 %v6552_v46 }
 0x48b   : > { %5320 = vmatprep.subr.bf16.mxu1 %v6143_v17 }
 0x48c   : > { %5295 = vmatpush1.bf16.msra.mxu0 %v6564_v19 }
 0x48d   : > { %5297 = vmatprep.subr.bf16.mxu0 %v6574_v33 }
 0x48e   : > { %5322 = vmatpush3.bf16.msra.mxu1 %v6568_v25 }
 0x48f   : > { %5323 = vmatprep.subr.bf16.mxu1 %v6143_v17 }
 0x490   : > { %5299 = vmatpush1.bf16.msra.mxu0 %v6580_v54 }
 0x491   : > { %5301 = vmatprep.subr.bf16.mxu0 %v6590_v7 }
 0x492   : > { %5325 = vmatpush3.bf16.msra.mxu1 %v6584_v62 }
 0x493   : > { %5326 = vmatprep.subr.bf16.mxu1 %v6143_v17 }
 0x494   : > { %5303 = vmatpush1.bf16.msra.mxu0 %v6596_v23 }
 0x495   : > { %5305 = vmatprep.subr.bf16.mxu0 %v6606_v59 }
 0x496   : > { %5328 = vmatpush3.bf16.msra.mxu1 %v6600_v56 }
 0x497   : > { %5329 = vmatprep.subr.bf16.mxu1 %v6143_v17 }
 0x498   : > { %5307 = vmatpush1.bf16.msra.mxu0 %v6612_v39 }
 0x499   : > { %5333 = vmatprep.subr.bf16.mxu0 %v6513_v4 }
 0x49a   : > { %5331 = vmatpush3.bf16.msra.mxu1 %v6616_v6 }
 0x49b   : > { %5364 = vmatprep.subr.bf16.mxu1 %v6143_v17 }
 0x54e   : > { %v1346_v3 = vpop.f32.mrb[8].mxu0  ;;  %v1417_v10 = vpop.f32.mrb[8].mxu1 }
 0x54f   : > { %v1421_v53 = vadd.f32 %v1346_v3, %v1231_v1  ;;  %v1348_v16 = vpop.f32.mrb[9].mxu0  ;;  %v4610_v21 = vpop.f32.mrb[9].mxu1  ;;  %v1438_v38 = vadd.f32 %v6225_v9, %v1417_v10 }
 0x550   : > { %v1431_v27 = vadd.f32 %v1429_v44, %v1348_v16  ;;  %v1664_v16 = vrot.slane %v1455_v60, 4 }
 0x551   : > { %v4115_v24 = vmul.f32 -1.442695, %v1421_v53 }
 0x552   : > { %v4116_v30 = vmul.f32 -1.442695, %v1431_v27 }
 0x553   : > { %5982 = vpow2.f32 %v4115_v24 }
 0x554   : > { %5984 = vpow2.f32 %v4116_v30 }
 0x55d   : > { %v5983_v32 = vpop.eup %5982 }
 0x55e   : > { %v1425_v35 = vadd.f32 1.0, %v5983_v32  ;;  %v5985_v13 = vpop.eup %5984 }
 0x55f   : > { %v1435_v37 = vadd.f32 1.0, %v5985_v13 }
 0x560   : > { %5986 = vrcp.f32 %v1425_v35 }
 0x561   : > { %5988 = vrcp.f32 %v1435_v37 }
 0x56a   : > { %v5987_v43 = vpop.eup %5986 }
 0x56b   : > { %v1439_v47 = vmul.f32 %v5987_v43, %v1438_v38  ;;  %v5989_v50 = vpop.eup %5988 }
 0x56c   : > { %v1444_v52 = vsub.f32 1.0, %v5989_v50  ;;  %v1446_v26 = vmul.f32 %v5989_v50, %v6626_v63 }
 0x56d   : > { %v1442_v48 = vadd.f32 %v1440_v40, %v1439_v47 }
 0x56f   : > { %5990 = vtanh.f32 %v1442_v48 }
 0x579   : > { %v5991_v55 = vpop.eup %5990 }
 0x57a   : > { %v1445_v20 = vmul.f32 %v5991_v55, %v1444_v52  ;;  %v4126_v52 = vld [vmem:[%s6232_s20 + $0x15] sm:$0x7] }
 0x57b   : > { %v1903_v55 = vunpack.c.l.bf16 %v4126_v52 }
 0x57c   : > { %v1447_v31 = vadd.f32 %v1446_v26, %v1445_v20 }
 0x57e   : > { %v1449_v42 = vpack.c.bf16 %v1447_v31, %v1447_v31  ;;  %1448 = vst [vmem:[#allocation2] sm:$0x3] %v1447_v31  ;;  %v2101_v31 = vrot.slane %v1903_v55, 2 }
 0x580   : > { %4117 = vst [vmem:[%s6234_s12 + $0x4] sm:$0x1] %v1449_v42 }
 0x585   : > { %v6681_v45 = vld [vmem:[#allocation2] sm:$0x3] }
 0x586   : > { %1569 = vmatmul.mubr.f32.vlgmr.msra.gmra.mrb[10].mxu0 %v6681_v45  ;;  %4644 = vmatmul.mubr.f32.vlgmr.msra.gmra.mrb[10].mxu1 %v6681_v45 }
 0x587   : > { %5335 = vmatpush1.bf16.msra.mxu0 %v6517_v11  ;;  %5366 = vmatpush3.bf16.msra.mxu1 %v6651_v8 }
 0x588   : > { %5337 = vmatprep.subr.bf16.mxu0 %v6523_v12  ;;  %5367 = vmatprep.subr.bf16.mxu1 %v6143_v17 }
 0x589   : > { %1792 = vmatprep.mubr.f32.mxu0 %v6144_v18  ;;  %4678 = vmatprep.mubr.msk.f32.mxu1 %vm6145_vm0, %v6144_v18 }
 0x58b   : > { %5339 = vmatpush1.bf16.msra.mxu0 %v6527_v22  ;;  %5369 = vmatpush3.bf16.msra.mxu1 %v6657_v28 }
 0x58c   : > { %5341 = vmatprep.subr.bf16.mxu0 %v6533_v29  ;;  %5370 = vmatprep.subr.bf16.mxu1 %v6143_v17 }
 0x58f   : > { %5343 = vmatpush1.bf16.msra.mxu0 %v6537_v34  ;;  %5372 = vmatpush3.bf16.msra.mxu1 %v6663_v61 }
 0x590   : > { %5345 = vmatprep.subr.bf16.mxu0 %v6543_v36  ;;  %5373 = vmatprep.subr.bf16.mxu1 %v6143_v17 }
 0x593   : > { %5347 = vmatpush1.bf16.msra.mxu0 %v6548_v41  ;;  %5375 = vmatpush3.bf16.msra.mxu1 %v6552_v46 }
 0x594   : > { %5349 = vmatprep.subr.bf16.mxu0 %v6558_v49  ;;  %5376 = vmatprep.subr.bf16.mxu1 %v6143_v17 }
 0x597   : > { %5351 = vmatpush1.bf16.msra.mxu0 %v6564_v19  ;;  %5378 = vmatpush3.bf16.msra.mxu1 %v6568_v25 }
 0x598   : > { %5353 = vmatprep.subr.bf16.mxu0 %v6574_v33  ;;  %5379 = vmatprep.subr.bf16.mxu1 %v6143_v17 }
 0x59b   : > { %5355 = vmatpush1.bf16.msra.mxu0 %v6580_v54  ;;  %5381 = vmatpush3.bf16.msra.mxu1 %v6584_v62 }
 0x59c   : > { %5357 = vmatprep.subr.bf16.mxu0 %v6590_v7  ;;  %5382 = vmatprep.subr.bf16.mxu1 %v6143_v17 }
 0x59f   : > { %5359 = vmatpush1.bf16.msra.mxu0 %v6596_v23  ;;  %5384 = vmatpush3.bf16.msra.mxu1 %v6600_v56 }
 0x5a0   : > { %5361 = vmatprep.subr.bf16.mxu0 %v6606_v59  ;;  %5385 = vmatprep.subr.bf16.mxu1 %v6143_v17 }
 0x5a3   : > { %5363 = vmatpush1.bf16.msra.mxu0 %v6612_v39  ;;  %5387 = vmatpush3.bf16.msra.mxu1 %v6616_v6 }
 0x5a4   : > { %5389 = vmatprep.subr.bf16.mxu0 %v6513_v4  ;;  %5420 = vmatprep.subr.bf16.mxu1 %v6143_v17 }
 0x659   : > { %v1570_v63 = vpop.f32.mrb[10].mxu0  ;;  %v1641_v2 = vpop.f32.mrb[10].mxu1 }
 0x65a   : > { %v1645_v14 = vadd.f32 %v1570_v63, %v1455_v60  ;;  %v1572_v15 = vpop.f32.mrb[11].mxu0  ;;  %v4645_v57 = vpop.f32.mrb[11].mxu1  ;;  %v1662_v53 = vadd.f32 %v6225_v9, %v1641_v2 }
 0x65b   : > { %v1655_v0 = vadd.f32 %v1653_v5, %v1572_v15 }
 0x65c   : > { %v4119_v58 = vmul.f32 -1.442695, %v1645_v14 }
 0x65d   : > { %v4120_v1 = vmul.f32 -1.442695, %v1655_v0  ;;  %v2112_v0 = vrot.slane %v1903_v55, 4 }
 0x65e   : > { %5992 = vpow2.f32 %v4119_v58 }
 0x65f   : > { %5994 = vpow2.f32 %v4120_v1 }
 0x668   : > { %v5993_v3 = vpop.eup %5992 }
 0x669   : > { %v1649_v10 = vadd.f32 1.0, %v5993_v3  ;;  %v5995_v44 = vpop.eup %5994 }
 0x66a   : > { %v1659_v4 = vadd.f32 1.0, %v5995_v44 }
 0x66b   : > { %5996 = vrcp.f32 %v1649_v10 }
 0x66c   : > { %5998 = vrcp.f32 %v1659_v4 }
 0x675   : > { %v5997_v21 = vpop.eup %5996 }
 0x676   : > { %v1663_v24 = vmul.f32 %v5997_v21, %v1662_v53  ;;  %v5999_v30 = vpop.eup %5998 }
 0x677   : > { %v1668_v32 = vsub.f32 1.0, %v5999_v30  ;;  %v1670_v37 = vmul.f32 %v5999_v30, %v6681_v45 }
 0x678   : > { %v1666_v27 = vadd.f32 %v1664_v16, %v1663_v24 }
 0x67a   : > { %6000 = vtanh.f32 %v1666_v27 }
 0x684   : > { %v6001_v35 = vpop.eup %6000 }
 0x685   : > { %v1669_v13 = vmul.f32 %v6001_v35, %v1668_v32 }
 0x687   : > { %v1671_v38 = vadd.f32 %v1670_v37, %v1669_v13 }
 0x689   : > { %v1673_v40 = vpack.c.bf16 %v1671_v38, %v1671_v38  ;;  %1672 = vst [vmem:[#allocation2] sm:$0x3] %v1671_v38 }
 0x68b   : > { %4121 = vst [vmem:[%s6234_s12 + $0x5] sm:$0x1] %v1673_v40 }
 0x690   : > { %v6724_v43 = vld [vmem:[#allocation2] sm:$0x3] }
 0x691   : > { %1793 = vmatmul.mubr.f32.vlgmr.msra.gmra.mrb[12].mxu0 %v6724_v43  ;;  %4679 = vmatmul.mubr.f32.vlgmr.msra.gmra.mrb[12].mxu1 %v6724_v43 }
 0x692   : > { %5391 = vmatpush1.bf16.msra.mxu0 %v6517_v11  ;;  %5422 = vmatpush3.bf16.msra.mxu1 %v6651_v8 }
 0x693   : > { %5393 = vmatprep.subr.bf16.mxu0 %v6523_v12  ;;  %5423 = vmatprep.subr.bf16.mxu1 %v6143_v17 }
 0x694   : > { %2016 = vmatprep.mubr.f32.mxu0 %v6144_v18  ;;  %4713 = vmatprep.mubr.msk.f32.mxu1 %vm6145_vm0, %v6144_v18  ;;  %v4122_v18 = vld [vmem:[%s6232_s20 + $0x12] sm:$0x7] }
 0x695   : > { %v1679_v11 = vunpack.c.l.bf16 %v4122_v18 }
 0x696   : > { %5395 = vmatpush1.bf16.msra.mxu0 %v6527_v22  ;;  %5425 = vmatpush3.bf16.msra.mxu1 %v6657_v28 }
 0x697   : > { %5397 = vmatprep.subr.bf16.mxu0 %v6533_v29  ;;  %5426 = vmatprep.subr.bf16.mxu1 %v6143_v17  ;;  %v1877_v29 = vrot.slane %v1679_v11, 2 }
 0x69a   : > { %5399 = vmatpush1.bf16.msra.mxu0 %v6537_v34  ;;  %5428 = vmatpush3.bf16.msra.mxu1 %v6663_v61 }
 0x69b   : > { %5401 = vmatprep.subr.bf16.mxu0 %v6543_v36  ;;  %5429 = vmatprep.subr.bf16.mxu1 %v6143_v17 }
 0x69e   : > { %5403 = vmatpush1.bf16.msra.mxu0 %v6548_v41  ;;  %5431 = vmatpush3.bf16.msra.mxu1 %v6552_v46 }
 0x69f   : > { %5405 = vmatprep.subr.bf16.mxu0 %v6558_v49  ;;  %5432 = vmatprep.subr.bf16.mxu1 %v6143_v17 }
 0x6a2   : > { %5407 = vmatpush1.bf16.msra.mxu0 %v6564_v19  ;;  %5434 = vmatpush3.bf16.msra.mxu1 %v6568_v25 }
 0x6a3   : > { %5409 = vmatprep.subr.bf16.mxu0 %v6574_v33  ;;  %5435 = vmatprep.subr.bf16.mxu1 %v6143_v17 }
 0x6a6   : > { %5411 = vmatpush1.bf16.msra.mxu0 %v6580_v54  ;;  %5437 = vmatpush3.bf16.msra.mxu1 %v6584_v62 }
 0x6a7   : > { %5413 = vmatprep.subr.bf16.mxu0 %v6590_v7  ;;  %5438 = vmatprep.subr.bf16.mxu1 %v6143_v17  ;;  %v1888_v7 = vrot.slane %v1679_v11, 4 }
 0x6aa   : > { %5415 = vmatpush1.bf16.msra.mxu0 %v6596_v23  ;;  %5440 = vmatpush3.bf16.msra.mxu1 %v6600_v56 }
 0x6ab   : > { %5417 = vmatprep.subr.bf16.mxu0 %v6606_v59  ;;  %5441 = vmatprep.subr.bf16.mxu1 %v6143_v17 }
 0x6ae   : > { %5419 = vmatpush1.bf16.msra.mxu0 %v6612_v39  ;;  %5443 = vmatpush3.bf16.msra.mxu1 %v6616_v6 }
 0x764   : > { %v1794_v12 = vpop.f32.mrb[12].mxu0  ;;  %v1865_v22 = vpop.f32.mrb[12].mxu1 }
 0x765   : > { %v1869_v34 = vadd.f32 %v1794_v12, %v1679_v11  ;;  %v1796_v36 = vpop.f32.mrb[13].mxu0  ;;  %v4680_v41 = vpop.f32.mrb[13].mxu1  ;;  %v1886_v62 = vadd.f32 %v6225_v9, %v1865_v22 }
 0x766   : > { %v1879_v49 = vadd.f32 %v1877_v29, %v1796_v36 }
 0x767   : > { %v4123_v46 = vmul.f32 -1.442695, %v1869_v34 }
 0x768   : > { %v4124_v19 = vmul.f32 -1.442695, %v1879_v49 }
 0x769   : > { %6002 = vpow2.f32 %v4123_v46 }
 0x76a   : > { %6004 = vpow2.f32 %v4124_v19 }
 0x773   : > { %v6003_v25 = vpop.eup %6002 }
 0x774   : > { %v1873_v33 = vadd.f32 1.0, %v6003_v25  ;;  %v6005_v17 = vpop.eup %6004 }
 0x775   : > { %v1883_v54 = vadd.f32 1.0, %v6005_v17 }
 0x776   : > { %6006 = vrcp.f32 %v1873_v33 }
 0x777   : > { %6008 = vrcp.f32 %v1883_v54 }
 0x780   : > { %v6007_v23 = vpop.eup %6006 }
 0x781   : > { %v1887_v56 = vmul.f32 %v6007_v23, %v1886_v62  ;;  %v6009_v39 = vpop.eup %6008 }
 0x782   : > { %v1892_v6 = vsub.f32 1.0, %v6009_v39  ;;  %v1894_v61 = vmul.f32 %v6009_v39, %v6724_v43 }
 0x783   : > { %v1890_v59 = vadd.f32 %v1888_v7, %v1887_v56 }
 0x785   : > { %6010 = vtanh.f32 %v1890_v59 }
 0x78f   : > { %v6011_v8 = vpop.eup %6010 }
 0x790   : > { %v1893_v28 = vmul.f32 %v6011_v8, %v1892_v6 }
 0x792   : > { %v1895_v47 = vadd.f32 %v1894_v61, %v1893_v28 }
 0x794   : > { %v1897_v48 = vpack.c.bf16 %v1895_v47, %v1895_v47  ;;  %1896 = vst [vmem:[#allocation2] sm:$0x3] %v1895_v47 }
 0x796   : > { %4125 = vst [vmem:[%s6234_s12 + $0x6] sm:$0x1] %v1897_v48 }
 0x79b   : > { %v1900_v50 = vld [vmem:[#allocation2] sm:$0x3] }
 0x79c   : > { %2017 = vmatmul.mubr.f32.vlgmr.msra.gmra.mrb[14].mxu0 %v1900_v50  ;;  %4714 = vmatmul.mubr.f32.vlgmr.msra.gmra.mrb[14].mxu1 %v1900_v50 }
 0x86f   : > { %v2018_v20 = vpop.f32.mrb[14].mxu0  ;;  %v2089_v26 = vpop.f32.mrb[14].mxu1 }
 0x870   : > { %v2093_v42 = vadd.f32 %v2018_v20, %v1903_v55  ;;  %v2020_v45 = vpop.f32.mrb[15].mxu0  ;;  %v4715_v51 = vpop.f32.mrb[15].mxu1  ;;  %v2110_v58 = vadd.f32 %v6225_v9, %v2089_v26 }
 0x871   : > { %v2103_v63 = vadd.f32 %v2101_v31, %v2020_v45 }
 0x872   : > { %v4127_v60 = vmul.f32 -1.442695, %v2093_v42 }
 0x873   : > { %v4128_v2 = vmul.f32 -1.442695, %v2103_v63 }
 0x874   : > { %6012 = vpow2.f32 %v4127_v60 }
 0x875   : > { %6014 = vpow2.f32 %v4128_v2 }
 0x87e   : > { %v6013_v5 = vpop.eup %6012 }
 0x87f   : > { %v2097_v14 = vadd.f32 1.0, %v6013_v5  ;;  %v6015_v15 = vpop.eup %6014 }
 0x880   : > { %v2107_v57 = vadd.f32 1.0, %v6015_v15 }
 0x881   : > { %6016 = vrcp.f32 %v2097_v14 }
 0x882   : > { %6018 = vrcp.f32 %v2107_v57 }
 0x88b   : > { %v6017_v1 = vpop.eup %6016 }
 0x88c   : > { %v2111_v3 = vmul.f32 %v6017_v1, %v2110_v58  ;;  %v6019_v44 = vpop.eup %6018 }
 0x88d   : > { %v2116_v4 = vsub.f32 1.0, %v6019_v44  ;;  %v2118_v21 = vmul.f32 %v6019_v44, %v1900_v50 }
 0x88e   : > { %v2114_v10 = vadd.f32 %v2112_v0, %v2111_v3 }
 0x890   : > { %6020 = vtanh.f32 %v2114_v10 }
 0x89a   : > { %v6021_v53 = vpop.eup %6020 }
 0x89b   : > { %v2117_v16 = vmul.f32 %v6021_v53, %v2116_v4 }
 0x89d   : > { %v2119_v24 = vadd.f32 %v2118_v21, %v2117_v16 }
 0x89f   : > { %2120 = vst [vmem:[#allocation2] sm:$0x3] %v2119_v24  ;;  %v2121_v27 = vpack.c.bf16 %v2119_v24, %v2119_v24 }
 0x8a1   : > { %4129 = vst [vmem:[%s6234_s12 + $0x7] sm:$0x1] %v2121_v27 }
 0x8a2 PF: > { %p4130_p13 = scmp.ne.s32.totalorder %s6132_s14, 1 }
 0x8a3   : > { %v2133_v30 = vld [vmem:[%s6230_s19 + $0x8] sm:$0xff] (!%p4130_p13)  ;;  %v2136_v32 = vld [vmem:[%s6230_s19 + $0x20] sm:$0xff] (!%p4130_p13)  ;;  %v2135_v37 = vld [vmem:[%s6230_s19 + $0x18] sm:$0xff] (!%p4130_p13)  ;;  %v6146_v43 = vmov (!%p4130_p13), 0.0|0.0   ;;  %v6147_v18 = vmov (!%p4130_p13), 0.0   ;;  %vm6148_vm1 = vmmov (!%p4130_p13), 0  }
 0x8a4   : > { %2127 = sbr.rel (%p4130_p13) target bundleno = 4377 (0x1119), region = 85  ;;  %v2132_v35 = vld [vmem:[%s6230_s19] sm:$0xff] (!%p4130_p13)  ;;  %v6772_v13 = vpack.c.bf16 (!%p4130_p13), %v2136_v32, %v2133_v30  ;;  %v2139_v38 = vld [vmem:[%s6230_s19 + $0x38] sm:$0xff] (!%p4130_p13)  ;;  %v2142_v40 = vld [vmem:[%s6230_s19 + $0x50] sm:$0xff] (!%p4130_p13)  ;;  %5476 = vmatprep.subr.bf16.mxu1 (!%p4130_p13), %v6146_v43  ;;  %2244 = vmatprep.mubr.f32.mxu0 (!%p4130_p13), %v6147_v18 }
 0x8a5   : > { %v6779_v11 = vpack.c.bf16 (!%p4130_p13), %v2135_v37, %v2132_v35  ;;  %v6781_v12 = vpack.c.bf16 (!%p4130_p13), %v2142_v40, %v2139_v38  ;;  %v2138_v22 = vld [vmem:[%s6230_s19 + $0x30] sm:$0xff] (!%p4130_p13)  ;;  %v2141_v29 = vld [vmem:[%s6230_s19 + $0x48] sm:$0xff] (!%p4130_p13)  ;;  %4748 = vmatprep.mubr.msk.f32.mxu1 (!%p4130_p13), %vm6148_vm1, %v6147_v18  ;;  %v2148_v36 = vld [vmem:[%s6230_s19 + $0x80] sm:$0xff] (!%p4130_p13) }
 0x8a6   : > { %v2145_v34 = vld [vmem:[%s6230_s19 + $0x68] sm:$0xff] (!%p4130_p13)  ;;  %5445 = vmatprep.subr.bf16.mxu0 (!%p4130_p13), %v6772_v13  ;;  %v6791_v41 = vpack.c.bf16 (!%p4130_p13), %v2141_v29, %v2138_v22  ;;  %v2144_v49 = vld [vmem:[%s6230_s19 + $0x60] sm:$0xff] (!%p4130_p13)  ;;  %v2147_v19 = vld [vmem:[%s6230_s19 + $0x78] sm:$0xff] (!%p4130_p13) }
 0x8a7   : > { %5447 = vmatpush1.bf16.msra.mxu0 (!%p4130_p13), %v6779_v11  ;;  %v6794_v46 = vpack.c.bf16 (!%p4130_p13), %v2148_v36, %v2145_v34  ;;  %v2151_v25 = vld [vmem:[%s6230_s19 + $0x98] sm:$0xff] (!%p4130_p13)  ;;  %v2154_v33 = vld [vmem:[%s6230_s19 + $0xb0] sm:$0xff] (!%p4130_p13)  ;;  %v6801_v17 = vpack.c.bf16 (!%p4130_p13), %v2147_v19, %v2144_v49  ;;  %v2153_v7 = vld [vmem:[%s6230_s19 + $0xa8] sm:$0xff] (!%p4130_p13) }
 0x8a8   : > { %5449 = vmatprep.subr.bf16.mxu0 (!%p4130_p13), %v6781_v12  ;;  %v2150_v54 = vld [vmem:[%s6230_s19 + $0x90] sm:$0xff] (!%p4130_p13)  ;;  %v6805_v62 = vpack.c.bf16 (!%p4130_p13), %v2154_v33, %v2151_v25  ;;  %v2137_v56 = vld [vmem:[%s6230_s19 + $0x28] sm:$0xff] (!%p4130_p13)  ;;  %v2160_v39 = vld [vmem:[%s6230_s19 + $0xe0] sm:$0xff] (!%p4130_p13) }
 0x8a9   : > { %v2134_v23 = vld [vmem:[%s6230_s19 + $0x10] sm:$0xff] (!%p4130_p13)  ;;  %v2157_v59 = vld [vmem:[%s6230_s19 + $0xc8] sm:$0xff] (!%p4130_p13)  ;;  %v2140_v8 = vld [vmem:[%s6230_s19 + $0x40] sm:$0xff] (!%p4130_p13)  ;;  %v6817_v61 = vpack.c.bf16 (!%p4130_p13), %v2153_v7, %v2150_v54 }
 0x8aa   : > { %v6812_v6 = vpack.c.bf16 (!%p4130_p13), %v2137_v56, %v2134_v23  ;;  %v2143_v28 = vld [vmem:[%s6230_s19 + $0x58] sm:$0xff] (!%p4130_p13)  ;;  %v2156_v47 = vld [vmem:[%s6230_s19 + $0xc0] sm:$0xff] (!%p4130_p13)  ;;  %v6824_v50 = vpack.c.bf16 (!%p4130_p13), %v2160_v39, %v2157_v59  ;;  %v2146_v55 = vld [vmem:[%s6230_s19 + $0x70] sm:$0xff] (!%p4130_p13) }
 0x8ab   : > { %5451 = vmatpush1.bf16.msra.mxu0 %v6791_v41  ;;  %v6821_v48 = vpack.c.bf16 %v2143_v28, %v2140_v8  ;;  %v2159_v52 = vld [vmem:[%s6230_s19 + $0xd8] sm:$0xff]  ;;  %v2149_v20 = vld [vmem:[%s6230_s19 + $0x88] sm:$0xff]  ;;  %v2166_v31 = vld [vmem:[%s6230_s19 + $0x110] sm:$0xff] }
 0x8ac   : > { %5453 = vmatprep.subr.bf16.mxu0 %v6794_v46  ;;  %5478 = vmatpush3.bf16.msra.mxu1 %v6812_v6  ;;  %v2163_v26 = vld [vmem:[%s6230_s19 + $0xf8] sm:$0xff]  ;;  %v6833_v42 = vpack.c.bf16 %v2159_v52, %v2156_v47  ;;  %v2162_v45 = vld [vmem:[%s6230_s19 + $0xf0] sm:$0xff]  ;;  %v6837_v51 = vpack.c.bf16 %v2149_v20, %v2146_v55  ;;  %v2165_v63 = vld [vmem:[%s6230_s19 + $0x108] sm:$0xff] }
 0x8ad   : > { %5479 = vmatprep.subr.bf16.mxu1 %v6146_v43  ;;  %v6840_v60 = vpack.c.bf16 %v2166_v31, %v2163_v26  ;;  %v2152_v2 = vld [vmem:[%s6230_s19 + $0xa0] sm:$0xff]  ;;  %v2155_v5 = vld [vmem:[%s6230_s19 + $0xb8] sm:$0xff]  ;;  %v2169_v14 = vld [vmem:[%s6230_s19 + $0x128] sm:$0xff]  ;;  %v6849_v57 = vpack.c.bf16 %v2165_v63, %v2162_v45 }
 0x8ae   : > { %v2172_v15 = vld [vmem:[%s6230_s19 + $0x140] sm:$0xff]  ;;  %v6853_v0 = vpack.c.bf16 %v2155_v5, %v2152_v2  ;;  %v2171_v3 = vld [vmem:[%s6230_s19 + $0x138] sm:$0xff]  ;;  %v2158_v10 = vld [vmem:[%s6230_s19 + $0xd0] sm:$0xff] }
 0x8af   : > { %5455 = vmatpush1.bf16.msra.mxu0 %v6801_v17  ;;  %v2168_v58 = vld [vmem:[%s6230_s19 + $0x120] sm:$0xff]  ;;  %v6856_v1 = vpack.c.bf16 %v2172_v15, %v2169_v14  ;;  %v2161_v44 = vld [vmem:[%s6230_s19 + $0xe8] sm:$0xff]  ;;  %v2175_v4 = vld [vmem:[%s6230_s19 + $0x158] sm:$0xff] }
 0x8b0   : > { %5457 = vmatprep.subr.bf16.mxu0 %v6805_v62  ;;  %5481 = vmatpush3.bf16.msra.mxu1 %v6821_v48  ;;  %v2178_v53 = vld [vmem:[%s6230_s19 + $0x170] sm:$0xff]  ;;  %v6865_v16 = vpack.c.bf16 %v2171_v3, %v2168_v58  ;;  %v6869_v24 = vpack.c.bf16 %v2161_v44, %v2158_v10  ;;  %v2177_v30 = vld [vmem:[%s6230_s19 + $0x168] sm:$0xff]  ;;  %v2164_v32 = vld [vmem:[%s6230_s19 + $0x100] sm:$0xff] }
 0x8b1   : > { %5482 = vmatprep.subr.bf16.mxu1 %v6146_v43  ;;  %v2174_v21 = vld [vmem:[%s6230_s19 + $0x150] sm:$0xff]  ;;  %v6872_v27 = vpack.c.bf16 %v2178_v53, %v2175_v4  ;;  %v2167_v35 = vld [vmem:[%s6230_s19 + $0x118] sm:$0xff]  ;;  %v2173_v22 = vld [vmem:[%s6230_s19 + $0x148] sm:$0xff] }
 0x8b2   : > { %v6879_v37 = vpack.c.bf16 %v2177_v30, %v2174_v21  ;;  %v6882_v38 = vpack.c.bf16 %v2167_v35, %v2164_v32  ;;  %v2170_v40 = vld [vmem:[%s6230_s19 + $0x130] sm:$0xff]  ;;  %v6889_v29 = vld [vmem:[#allocation2] sm:$0x3]  ;;  %v2179_v49 = vld [vmem:[%s6230_s19 + $0x178] sm:$0xff] }
 0x8b3   : > { %5459 = vmatpush1.bf16.msra.mxu0 %v6817_v61  ;;  %v6892_v34 = vpack.c.bf16 %v2173_v22, %v2170_v40  ;;  %v2176_v36 = vld [vmem:[%s6230_s19 + $0x160] sm:$0xff]  ;;  %v4131_v25 = vld [vmem:[%s6232_s20 + $0x15] sm:$0x7]  ;;  %v4135_v21 = vld [vmem:[%s6232_s20 + $0x12] sm:$0x7] }
 0x8b4   : > { %5461 = vmatprep.subr.bf16.mxu0 %v6824_v50  ;;  %5484 = vmatpush3.bf16.msra.mxu1 %v6837_v51  ;;  %v6900_v19 = vpack.c.bf16 %v2179_v49, %v2176_v36  ;;  %v2131_v33 = vunpack.c.l.bf16 %v4131_v25  ;;  %v2355_v30 = vunpack.c.l.bf16 %v4135_v21  ;;  %v3028_v21 = vld [vmem:[%s6230_s19] sm:$0xff] }
 0x8b5   : > { %5485 = vmatprep.subr.bf16.mxu1 %v6146_v43 }
 0x8b6   : > { %v2329_v7 = vrot.slane %v2131_v33, 2  ;;  %v2340_v45 = vrot.slane %v2131_v33, 4  ;;  %v2553_v40 = vrot.slane %v2355_v30, 2 }
 0x8b7   : > { %5463 = vmatpush1.bf16.msra.mxu0 %v6833_v42 }
 0x8b8   : > { %5465 = vmatprep.subr.bf16.mxu0 %v6840_v60  ;;  %5487 = vmatpush3.bf16.msra.mxu1 %v6853_v0 }
 0x8b9   : > { %5488 = vmatprep.subr.bf16.mxu1 %v6146_v43 }
 0x8bb   : > { %5467 = vmatpush1.bf16.msra.mxu0 %v6849_v57 }
 0x8bc   : > { %5469 = vmatprep.subr.bf16.mxu0 %v6856_v1  ;;  %5490 = vmatpush3.bf16.msra.mxu1 %v6869_v24 }
 0x8bd   : > { %5491 = vmatprep.subr.bf16.mxu1 %v6146_v43 }
 0x8bf   : > { %5471 = vmatpush1.bf16.msra.mxu0 %v6865_v16 }
 0x8c0   : > { %5473 = vmatprep.subr.bf16.mxu0 %v6872_v27  ;;  %5493 = vmatpush3.bf16.msra.mxu1 %v6882_v38 }
 0x8c1   : > { %5494 = vmatprep.subr.bf16.mxu1 %v6146_v43 }
 0x8c3   : > { %5475 = vmatpush1.bf16.msra.mxu0 %v6879_v37 }
 0x8c4   : > { %5501 = vmatprep.subr.bf16.mxu0 %v6772_v13  ;;  %5496 = vmatpush3.bf16.msra.mxu1 %v6892_v34 }
 0x8c5   : > { %5497 = vmatprep.subr.bf16.mxu1 %v6146_v43 }
 0x8c6   : > { %2245 = vmatmul.mubr.f32.vlgmr.msra.gmra.mrb[0].mxu0 %v6889_v29 }
 0x8c7   : > { %5503 = vmatpush1.bf16.msra.mxu0 %v6779_v11  ;;  %2468 = vmatprep.mubr.f32.mxu0 %v6147_v18 }
 0x8c8   : > { %5505 = vmatprep.subr.bf16.mxu0 %v6781_v12  ;;  %5499 = vmatpush3.bf16.msra.mxu1 %v6900_v19 }
 0x8c9   : > { %5532 = vmatprep.subr.bf16.mxu1 %v6146_v43 }
 0x8cb   : > { %5507 = vmatpush1.bf16.msra.mxu0 %v6791_v41  ;;  %4749 = vmatmul.mubr.f32.vlgmr.msra.gmra.mrb[0].mxu1 %v6889_v29 }
 0x8cc   : > { %5509 = vmatprep.subr.bf16.mxu0 %v6794_v46  ;;  %5534 = vmatpush3.bf16.msra.mxu1 %v6812_v6 }
 0x8cd   : > { %5535 = vmatprep.subr.bf16.mxu1 %v6146_v43  ;;  %4783 = vmatprep.mubr.msk.f32.mxu1 %vm6148_vm1, %v6147_v18 }
 0x8cf   : > { %5511 = vmatpush1.bf16.msra.mxu0 %v6801_v17 }
 0x8d0   : > { %5513 = vmatprep.subr.bf16.mxu0 %v6805_v62  ;;  %5537 = vmatpush3.bf16.msra.mxu1 %v6821_v48 }
 0x8d1   : > { %5538 = vmatprep.subr.bf16.mxu1 %v6146_v43 }
 0x8d3   : > { %5515 = vmatpush1.bf16.msra.mxu0 %v6817_v61 }
 0x8d4   : > { %5517 = vmatprep.subr.bf16.mxu0 %v6824_v50  ;;  %5540 = vmatpush3.bf16.msra.mxu1 %v6837_v51 }
 0x8d5   : > { %5541 = vmatprep.subr.bf16.mxu1 %v6146_v43 }
 0x8d7   : > { %5519 = vmatpush1.bf16.msra.mxu0 %v6833_v42 }
 0x8d8   : > { %5521 = vmatprep.subr.bf16.mxu0 %v6840_v60  ;;  %5543 = vmatpush3.bf16.msra.mxu1 %v6853_v0 }
 0x8d9   : > { %5544 = vmatprep.subr.bf16.mxu1 %v6146_v43 }
 0x8db   : > { %5523 = vmatpush1.bf16.msra.mxu0 %v6849_v57 }
 0x8dc   : > { %5525 = vmatprep.subr.bf16.mxu0 %v6856_v1  ;;  %5546 = vmatpush3.bf16.msra.mxu1 %v6869_v24 }
 0x8dd   : > { %5547 = vmatprep.subr.bf16.mxu1 %v6146_v43 }
 0x8df   : > { %5527 = vmatpush1.bf16.msra.mxu0 %v6865_v16 }
 0x8e0   : > { %5529 = vmatprep.subr.bf16.mxu0 %v6872_v27  ;;  %5549 = vmatpush3.bf16.msra.mxu1 %v6882_v38 }
 0x8e1   : > { %5550 = vmatprep.subr.bf16.mxu1 %v6146_v43 }
 0x8e3   : > { %5531 = vmatpush1.bf16.msra.mxu0 %v6879_v37 }
 0x8e4   : > { %5557 = vmatprep.subr.bf16.mxu0 %v6772_v13  ;;  %5552 = vmatpush3.bf16.msra.mxu1 %v6892_v34 }
 0x8e5   : > { %5553 = vmatprep.subr.bf16.mxu1 %v6146_v43 }
 0x8e8   : > { %5555 = vmatpush3.bf16.msra.mxu1 %v6900_v19 }
 0x8e9   : > { %5588 = vmatprep.subr.bf16.mxu1 %v6146_v43 }
 0x999   : > { %v2246_v54 = vpop.f32.mrb[0].mxu0 }
 0x99a   : > { %v2321_v23 = vadd.f32 %v2246_v54, %v2131_v33  ;;  %v2248_v56 = vpop.f32.mrb[1].mxu0 }
 0x99b   : > { %v2331_v39 = vadd.f32 %v2329_v7, %v2248_v56 }
 0x99c   : > { %v4132_v59 = vmul.f32 -1.442695, %v2321_v23 }
 0x99d   : > { %v4133_v8 = vmul.f32 -1.442695, %v2331_v39 }
 0x99e   : > { %6022 = vpow2.f32 %v4132_v59  ;;  %v2317_v28 = vpop.f32.mrb[0].mxu1  ;;  %v2564_v59 = vrot.slane %v2355_v30, 4 }
 0x99f   : > { %v4750_v47 = vpop.f32.mrb[1].mxu1  ;;  %6024 = vpow2.f32 %v4133_v8  ;;  %v2338_v31 = vadd.f32 %v6225_v9, %v2317_v28 }
 0x9a8   : > { %v6023_v52 = vpop.eup %6022 }
 0x9a9   : > { %v2325_v55 = vadd.f32 1.0, %v6023_v52  ;;  %v6025_v20 = vpop.eup %6024 }
 0x9aa   : > { %v2335_v26 = vadd.f32 1.0, %v6025_v20 }
 0x9ab   : > { %6026 = vrcp.f32 %v2325_v55 }
 0x9ac   : > { %6028 = vrcp.f32 %v2335_v26 }
 0x9b5   : > { %v6027_v63 = vpop.eup %6026 }
 0x9b6   : > { %v2339_v2 = vmul.f32 %v6027_v63, %v2338_v31  ;;  %v6029_v14 = vpop.eup %6028 }
 0x9b7   : > { %v2344_v15 = vsub.f32 1.0, %v6029_v14  ;;  %v2346_v3 = vmul.f32 %v6029_v14, %v6889_v29 }
 0x9b8   : > { %v2342_v5 = vadd.f32 %v2340_v45, %v2339_v2 }
 0x9ba   : > { %6030 = vtanh.f32 %v2342_v5 }
 0x9c4   : > { %v6031_v58 = vpop.eup %6030 }
 0x9c5   : > { %v2345_v10 = vmul.f32 %v6031_v58, %v2344_v15 }
 0x9c7   : > { %v2347_v44 = vadd.f32 %v2346_v3, %v2345_v10 }
 0x9c9   : > { %2348 = vst [vmem:[#allocation2] sm:$0x3] %v2347_v44  ;;  %v2349_v4 = vpack.c.bf16 %v2347_v44, %v2347_v44 }
 0x9cb   : > { %4134 = vst [vmem:[%s6234_s12 + $0x7] sm:$0x1] %v2349_v4  ;;  %v3032_v4 = vld [vmem:[%s6230_s19 + $0x20] sm:$0xff] }
 0x9d0   : > { %v6945_v53 = vld [vmem:[#allocation2] sm:$0x3] }
 0x9d1   : > { %2469 = vmatmul.mubr.f32.vlgmr.msra.gmra.mrb[2].mxu0 %v6945_v53  ;;  %4784 = vmatmul.mubr.f32.vlgmr.msra.gmra.mrb[2].mxu1 %v6945_v53 }
 0x9d2   : > { %5559 = vmatpush1.bf16.msra.mxu0 %v6779_v11  ;;  %5590 = vmatpush3.bf16.msra.mxu1 %v6812_v6 }
 0x9d3   : > { %5561 = vmatprep.subr.bf16.mxu0 %v6781_v12  ;;  %5591 = vmatprep.subr.bf16.mxu1 %v6146_v43 }
 0x9d4   : > { %2692 = vmatprep.mubr.f32.mxu0 %v6147_v18  ;;  %4818 = vmatprep.mubr.msk.f32.mxu1 %vm6148_vm1, %v6147_v18 }
 0x9d6   : > { %5563 = vmatpush1.bf16.msra.mxu0 %v6791_v41  ;;  %5593 = vmatpush3.bf16.msra.mxu1 %v6821_v48 }
 0x9d7   : > { %5565 = vmatprep.subr.bf16.mxu0 %v6794_v46  ;;  %5594 = vmatprep.subr.bf16.mxu1 %v6146_v43 }
 0x9da   : > { %5567 = vmatpush1.bf16.msra.mxu0 %v6801_v17  ;;  %5596 = vmatpush3.bf16.msra.mxu1 %v6837_v51 }
 0x9db   : > { %5569 = vmatprep.subr.bf16.mxu0 %v6805_v62  ;;  %5597 = vmatprep.subr.bf16.mxu1 %v6146_v43 }
 0x9de   : > { %5571 = vmatpush1.bf16.msra.mxu0 %v6817_v61  ;;  %5599 = vmatpush3.bf16.msra.mxu1 %v6853_v0 }
 0x9df   : > { %5573 = vmatprep.subr.bf16.mxu0 %v6824_v50  ;;  %5600 = vmatprep.subr.bf16.mxu1 %v6146_v43 }
 0x9e2   : > { %5575 = vmatpush1.bf16.msra.mxu0 %v6833_v42  ;;  %5602 = vmatpush3.bf16.msra.mxu1 %v6869_v24 }
 0x9e3   : > { %5577 = vmatprep.subr.bf16.mxu0 %v6840_v60  ;;  %5603 = vmatprep.subr.bf16.mxu1 %v6146_v43 }
 0x9e6   : > { %5579 = vmatpush1.bf16.msra.mxu0 %v6849_v57  ;;  %5605 = vmatpush3.bf16.msra.mxu1 %v6882_v38 }
 0x9e7   : > { %5581 = vmatprep.subr.bf16.mxu0 %v6856_v1  ;;  %5606 = vmatprep.subr.bf16.mxu1 %v6146_v43 }
 0x9ea   : > { %5583 = vmatpush1.bf16.msra.mxu0 %v6865_v16  ;;  %5608 = vmatpush3.bf16.msra.mxu1 %v6892_v34 }
 0x9eb   : > { %5585 = vmatprep.subr.bf16.mxu0 %v6872_v27  ;;  %5609 = vmatprep.subr.bf16.mxu1 %v6146_v43 }
 0x9ee   : > { %5587 = vmatpush1.bf16.msra.mxu0 %v6879_v37  ;;  %5611 = vmatpush3.bf16.msra.mxu1 %v6900_v19 }
 0x9ef   : > { %5613 = vmatprep.subr.bf16.mxu0 %v6772_v13  ;;  %5644 = vmatprep.subr.bf16.mxu1 %v6146_v43 }
 0xaa4   : > { %v2470_v32 = vpop.f32.mrb[2].mxu0  ;;  %v2541_v35 = vpop.f32.mrb[2].mxu1 }
 0xaa5   : > { %v2545_v22 = vadd.f32 %v2470_v32, %v2355_v30  ;;  %v2472_v29 = vpop.f32.mrb[3].mxu0  ;;  %v4785_v36 = vpop.f32.mrb[3].mxu1  ;;  %v2562_v56 = vadd.f32 %v6225_v9, %v2541_v35  ;;  %v3031_v30 = vld [vmem:[%s6230_s19 + $0x18] sm:$0xff] }
 0xaa6   : > { %v2555_v25 = vadd.f32 %v2553_v40, %v2472_v29  ;;  %v7049_v32 = vpack.c.bf16 %v3031_v30, %v3028_v21  ;;  %v3034_v40 = vld [vmem:[%s6230_s19 + $0x30] sm:$0xff]  ;;  %v3041_v36 = vld [vmem:[%s6230_s19 + $0x68] sm:$0xff] }
 0xaa7   : > { %v4136_v49 = vmul.f32 -1.442695, %v2545_v22  ;;  %v3037_v22 = vld [vmem:[%s6230_s19 + $0x48] sm:$0xff] }
 0xaa8   : > { %v4137_v33 = vmul.f32 -1.442695, %v2555_v25  ;;  %v7059_v29 = vpack.c.bf16 %v3037_v22, %v3034_v40  ;;  %v4143_v30 = vld [vmem:[%s6232_s20 + $0xc] sm:$0x7] }
 0xaa9   : > { %6032 = vpow2.f32 %v4136_v49  ;;  %v3044_v49 = vld [vmem:[%s6230_s19 + $0x80] sm:$0xff] }
 0xaaa   : > { %6034 = vpow2.f32 %v4137_v33  ;;  %v7065_v25 = vpack.c.bf16 %v3044_v49, %v3041_v36  ;;  %v3040_v33 = vld [vmem:[%s6230_s19 + $0x60] sm:$0xff] }
 0xab3   : > { %v6033_v54 = vpop.eup %6032 }
 0xab4   : > { %v2549_v7 = vadd.f32 1.0, %v6033_v54  ;;  %v6035_v23 = vpop.eup %6034  ;;  %v3043_v54 = vld [vmem:[%s6230_s19 + $0x78] sm:$0xff] }
 0xab5   : > { %v2559_v13 = vadd.f32 1.0, %v6035_v23  ;;  %v3047_v23 = vld [vmem:[%s6230_s19 + $0x98] sm:$0xff] }
 0xab6   : > { %6036 = vrcp.f32 %v2549_v7  ;;  %v7069_v7 = vpack.c.bf16 %v3043_v54, %v3040_v33 }
 0xab7   : > { %6038 = vrcp.f32 %v2559_v13  ;;  %v3050_v13 = vld [vmem:[%s6230_s19 + $0xb0] sm:$0xff] }
 0xac0   : > { %v6037_v39 = vpop.eup %6036 }
 0xac1   : > { %v2563_v8 = vmul.f32 %v6037_v39, %v2562_v56  ;;  %v6039_v47 = vpop.eup %6038  ;;  %v7075_v56 = vpack.c.bf16 %v3050_v13, %v3047_v23  ;;  %v3049_v39 = vld [vmem:[%s6230_s19 + $0xa8] sm:$0xff] }
 0xac2   : > { %v2568_v52 = vsub.f32 1.0, %v6039_v47  ;;  %v2570_v26 = vmul.f32 %v6039_v47, %v6945_v53  ;;  %v3051_v47 = vld [vmem:[%s6230_s19 + $0xb8] sm:$0xff] }
 0xac3   : > { %v2566_v28 = vadd.f32 %v2564_v59, %v2563_v8  ;;  %v3046_v59 = vld [vmem:[%s6230_s19 + $0x90] sm:$0xff]  ;;  %v3048_v8 = vld [vmem:[%s6230_s19 + $0xa0] sm:$0xff] }
 0xac5   : > { %6040 = vtanh.f32 %v2566_v28  ;;  %v7080_v28 = vpack.c.bf16 %v3049_v39, %v3046_v59 }
 0xacf   : > { %v6041_v55 = vpop.eup %6040 }
 0xad0   : > { %v2569_v20 = vmul.f32 %v6041_v55, %v2568_v52  ;;  %v7084_v52 = vpack.c.bf16 %v3051_v47, %v3048_v8  ;;  %v3053_v55 = vld [vmem:[%s6230_s19 + $0xc8] sm:$0xff] }
 0xad2   : > { %v2571_v31 = vadd.f32 %v2570_v26, %v2569_v20  ;;  %v3056_v20 = vld [vmem:[%s6230_s19 + $0xe0] sm:$0xff] }
 0xad3   : > { %v7090_v26 = vpack.c.bf16 %v3056_v20, %v3053_v55 }
 0xad4   : > { %2572 = vst [vmem:[#allocation2] sm:$0x3] %v2571_v31  ;;  %v2573_v45 = vpack.c.bf16 %v2571_v31, %v2571_v31  ;;  %v3052_v31 = vld [vmem:[%s6230_s19 + $0xc0] sm:$0xff] }
 0xad6   : > { %4138 = vst [vmem:[%s6234_s12 + $0x6] sm:$0x1] %v2573_v45  ;;  %v3055_v45 = vld [vmem:[%s6230_s19 + $0xd8] sm:$0xff] }
 0xadb   : > { %v6988_v63 = vld [vmem:[#allocation2] sm:$0x3] }
 0xadc   : > { %2693 = vmatmul.mubr.f32.vlgmr.msra.gmra.mrb[4].mxu0 %v6988_v63  ;;  %4819 = vmatmul.mubr.f32.vlgmr.msra.gmra.mrb[4].mxu1 %v6988_v63 }
 0xadd   : > { %5615 = vmatpush1.bf16.msra.mxu0 %v6779_v11  ;;  %5646 = vmatpush3.bf16.msra.mxu1 %v6812_v6  ;;  %v4139_v11 = vld [vmem:[%s6232_s20 + $0xf] sm:$0x7] }
 0xade   : > { %5617 = vmatprep.subr.bf16.mxu0 %v6781_v12  ;;  %5647 = vmatprep.subr.bf16.mxu1 %v6146_v43  ;;  %v2579_v12 = vunpack.c.l.bf16 %v4139_v11  ;;  %v7096_v11 = vpack.c.bf16 %v3055_v45, %v3052_v31 }
 0xadf   : > { %2916 = vmatprep.mubr.f32.mxu0 %v6147_v18  ;;  %4853 = vmatprep.mubr.msk.f32.mxu1 %vm6148_vm1, %v6147_v18 }
 0xae1   : > { %5619 = vmatpush1.bf16.msra.mxu0 %v6791_v41  ;;  %5649 = vmatpush3.bf16.msra.mxu1 %v6821_v48 }
 0xae2   : > { %5621 = vmatprep.subr.bf16.mxu0 %v6794_v46  ;;  %5650 = vmatprep.subr.bf16.mxu1 %v6146_v43 }
 0xae5   : > { %5623 = vmatpush1.bf16.msra.mxu0 %v6801_v17  ;;  %5652 = vmatpush3.bf16.msra.mxu1 %v6837_v51  ;;  %v2777_v17 = vrot.slane %v2579_v12, 2 }
 0xae6   : > { %5625 = vmatprep.subr.bf16.mxu0 %v6805_v62  ;;  %5653 = vmatprep.subr.bf16.mxu1 %v6146_v43 }
 0xae9   : > { %5627 = vmatpush1.bf16.msra.mxu0 %v6817_v61  ;;  %5655 = vmatpush3.bf16.msra.mxu1 %v6853_v0 }
 0xaea   : > { %5629 = vmatprep.subr.bf16.mxu0 %v6824_v50  ;;  %5656 = vmatprep.subr.bf16.mxu1 %v6146_v43 }
 0xaed   : > { %5631 = vmatpush1.bf16.msra.mxu0 %v6833_v42  ;;  %5658 = vmatpush3.bf16.msra.mxu1 %v6869_v24 }
 0xaee   : > { %5633 = vmatprep.subr.bf16.mxu0 %v6840_v60  ;;  %5659 = vmatprep.subr.bf16.mxu1 %v6146_v43 }
 0xaf1   : > { %5635 = vmatpush1.bf16.msra.mxu0 %v6849_v57  ;;  %5661 = vmatpush3.bf16.msra.mxu1 %v6882_v38 }
 0xaf2   : > { %5637 = vmatprep.subr.bf16.mxu0 %v6856_v1  ;;  %5662 = vmatprep.subr.bf16.mxu1 %v6146_v43 }
 0xaf5   : > { %5639 = vmatpush1.bf16.msra.mxu0 %v6865_v16  ;;  %5664 = vmatpush3.bf16.msra.mxu1 %v6892_v34 }
 0xaf6   : > { %5641 = vmatprep.subr.bf16.mxu0 %v6872_v27  ;;  %5665 = vmatprep.subr.bf16.mxu1 %v6146_v43 }
 0xaf9   : > { %5643 = vmatpush1.bf16.msra.mxu0 %v6879_v37  ;;  %5667 = vmatpush3.bf16.msra.mxu1 %v6900_v19  ;;  %v2788_v37 = vrot.slane %v2579_v12, 4 }
 0xafa   : > { %5700 = vmatprep.subr.bf16.mxu1 %v6146_v43 }
 0xbaf   : > { %v2694_v41 = vpop.f32.mrb[4].mxu0  ;;  %v2765_v46 = vpop.f32.mrb[4].mxu1 }
 0xbb0   : > { %v2769_v62 = vadd.f32 %v2694_v41, %v2579_v12  ;;  %v2696_v61 = vpop.f32.mrb[5].mxu0  ;;  %v4820_v50 = vpop.f32.mrb[5].mxu1  ;;  %v2786_v27 = vadd.f32 %v6225_v9, %v2765_v46  ;;  %v3057_v12 = vld [vmem:[%s6230_s19 + $0xe8] sm:$0xff]  ;;  %v3059_v46 = vld [vmem:[%s6230_s19 + $0xf8] sm:$0xff] }
 0xbb1   : > { %v2779_v60 = vadd.f32 %v2777_v17, %v2696_v61  ;;  %v3062_v17 = vld [vmem:[%s6230_s19 + $0x110] sm:$0xff]  ;;  %v3061_v50 = vld [vmem:[%s6230_s19 + $0x108] sm:$0xff] }
 0xbb2   : > { %v4140_v42 = vmul.f32 -1.442695, %v2769_v62  ;;  %v7106_v62 = vpack.c.bf16 %v3062_v17, %v3059_v46  ;;  %v3058_v61 = vld [vmem:[%s6230_s19 + $0xf0] sm:$0xff] }
 0xbb3   : > { %v4141_v57 = vmul.f32 -1.442695, %v2779_v60  ;;  %v7112_v60 = vpack.c.bf16 %v3061_v50, %v3058_v61 }
 0xbb4   : > { %6042 = vpow2.f32 %v4140_v42  ;;  %v3060_v42 = vld [vmem:[%s6230_s19 + $0x100] sm:$0xff] }
 0xbb5   : > { %6044 = vpow2.f32 %v4141_v57  ;;  %v3063_v57 = vld [vmem:[%s6230_s19 + $0x118] sm:$0xff] }
 0xbbe   : > { %v6043_v0 = vpop.eup %6042 }
 0xbbf   : > { %v2773_v1 = vadd.f32 1.0, %v6043_v0  ;;  %v6045_v16 = vpop.eup %6044  ;;  %v7116_v0 = vpack.c.bf16 %v3063_v57, %v3060_v42 }
 0xbc0   : > { %v2783_v24 = vadd.f32 1.0, %v6045_v16  ;;  %v3068_v16 = vld [vmem:[%s6230_s19 + $0x140] sm:$0xff] }
 0xbc1   : > { %6046 = vrcp.f32 %v2773_v1  ;;  %v3065_v1 = vld [vmem:[%s6230_s19 + $0x128] sm:$0xff] }
 0xbc2   : > { %6048 = vrcp.f32 %v2783_v24  ;;  %v7122_v24 = vpack.c.bf16 %v3068_v16, %v3065_v1  ;;  %v3257_v16 = vld [vmem:[%s6230_s19 + $0x28] sm:$0xff] }
 0xbcb   : > { %v6047_v38 = vpop.eup %6046 }
 0xbcc   : > { %v2787_v34 = vmul.f32 %v6047_v38, %v2786_v27  ;;  %v6049_v2 = vpop.eup %6048  ;;  %v3064_v27 = vld [vmem:[%s6230_s19 + $0x120] sm:$0xff]  ;;  %v3066_v38 = vld [vmem:[%s6230_s19 + $0x130] sm:$0xff] }
 0xbcd   : > { %v2792_v5 = vsub.f32 1.0, %v6049_v2  ;;  %v2794_v58 = vmul.f32 %v6049_v2, %v6988_v63  ;;  %v3054_v63 = vld [vmem:[%s6230_s19 + $0xd0] sm:$0xff] }
 0xbce   : > { %v2790_v19 = vadd.f32 %v2788_v37, %v2787_v34  ;;  %v7100_v41 = vpack.c.bf16 %v3057_v12, %v3054_v63  ;;  %v3067_v37 = vld [vmem:[%s6230_s19 + $0x138] sm:$0xff] }
 0xbcf   : > { %v7128_v34 = vpack.c.bf16 %v3067_v37, %v3064_v27  ;;  %v3260_v37 = vld [vmem:[%s6230_s19 + $0x40] sm:$0xff] }
 0xbd0   : > { %6050 = vtanh.f32 %v2790_v19  ;;  %v3069_v19 = vld [vmem:[%s6230_s19 + $0x148] sm:$0xff] }
 0xbd1   : > { %v7132_v2 = vpack.c.bf16 %v3069_v19, %v3066_v38  ;;  %v3263_v38 = vld [vmem:[%s6230_s19 + $0x58] sm:$0xff] }
 0xbd2   : > { %v7189_v19 = vpack.c.bf16 %v3263_v38, %v3260_v37 }
 0xbda   : > { %v6051_v14 = vpop.eup %6050 }
 0xbdb   : > { %v2793_v15 = vmul.f32 %v6051_v14, %v2792_v5  ;;  %v3071_v5 = vld [vmem:[%s6230_s19 + $0x158] sm:$0xff]  ;;  %v3074_v14 = vld [vmem:[%s6230_s19 + $0x170] sm:$0xff] }
 0xbdd   : > { %v2795_v3 = vadd.f32 %v2794_v58, %v2793_v15  ;;  %v7138_v15 = vpack.c.bf16 %v3074_v14, %v3071_v5  ;;  %v3070_v58 = vld [vmem:[%s6230_s19 + $0x150] sm:$0xff]  ;;  %v3269_v14 = vld [vmem:[%s6230_s19 + $0x88] sm:$0xff] }
 0xbde   : > { %v3266_v5 = vld [vmem:[%s6230_s19 + $0x70] sm:$0xff] }
 0xbdf   : > { %2796 = vst [vmem:[#allocation2] sm:$0x3] %v2795_v3  ;;  %v2797_v10 = vpack.c.bf16 %v2795_v3, %v2795_v3  ;;  %v3073_v3 = vld [vmem:[%s6230_s19 + $0x168] sm:$0xff] }
 0xbe1   : > { %4142 = vst [vmem:[%s6234_s12 + $0x5] sm:$0x1] %v2797_v10  ;;  %v3072_v10 = vld [vmem:[%s6230_s19 + $0x160] sm:$0xff] }
 0xbe6   : > { %v7030_v44 = vld [vmem:[#allocation2] sm:$0x3] }
 0xbe7   : > { %2917 = vmatmul.mubr.f32.vlgmr.msra.gmra.mrb[6].mxu0 %v7030_v44  ;;  %4854 = vmatmul.mubr.f32.vlgmr.msra.gmra.mrb[6].mxu1 %v7030_v44 }
 0xbe8   : > { %5702 = vmatpush3.bf16.msra.mxu1 %v6812_v6  ;;  %3140 = vmatprep.mubr.f32.mxu0 %v6147_v18  ;;  %v3029_v6 = vld [vmem:[%s6230_s19 + $0x8] sm:$0xff] }
 0xbe9   : > { %5703 = vmatprep.subr.bf16.mxu1 %v6146_v43  ;;  %4888 = vmatprep.mubr.msk.f32.mxu1 %vm6148_vm1, %v6147_v18  ;;  %v7045_v53 = vpack.c.bf16 %v3032_v4, %v3029_v6  ;;  %v7144_v6 = vpack.c.bf16 %v3073_v3, %v3070_v58  ;;  %v3075_v4 = vld [vmem:[%s6230_s19 + $0x178] sm:$0xff]  ;;  %v7195_v58 = vpack.c.bf16 %v3269_v14, %v3266_v5  ;;  %v4147_v3 = vld [vmem:[%s6232_s20 + $0x9] sm:$0x7] }
 0xbea   : > { %v7148_v21 = vpack.c.bf16 %v3075_v4, %v3072_v10  ;;  %v3027_v10 = vunpack.c.l.bf16 %v4147_v3 }
 0xbeb   : > { %5669 = vmatprep.subr.bf16.mxu0 %v7045_v53 }
 0xbec   : > { %5705 = vmatpush3.bf16.msra.mxu1 %v6821_v48  ;;  %5671 = vmatpush1.bf16.msra.mxu0 %v7049_v32  ;;  %v3035_v48 = vld [vmem:[%s6230_s19 + $0x38] sm:$0xff] }
 0xbed   : > { %5706 = vmatprep.subr.bf16.mxu1 %v6146_v43 }
 0xbf0   : > { %5708 = vmatpush3.bf16.msra.mxu1 %v6837_v51  ;;  %v3038_v51 = vld [vmem:[%s6230_s19 + $0x50] sm:$0xff] }
 0xbf1   : > { %5709 = vmatprep.subr.bf16.mxu1 %v6146_v43  ;;  %v7055_v35 = vpack.c.bf16 %v3038_v51, %v3035_v48  ;;  %v2803_v48 = vunpack.c.l.bf16 %v4143_v30 }
 0xbf3   : > { %5673 = vmatprep.subr.bf16.mxu0 %v7055_v35  ;;  %v3001_v22 = vrot.slane %v2803_v48, 2  ;;  %v3012_v20 = vrot.slane %v2803_v48, 4 }
 0xbf4   : > { %5675 = vmatpush1.bf16.msra.mxu0 %v7059_v29  ;;  %5711 = vmatpush3.bf16.msra.mxu1 %v7084_v52 }
 0xbf5   : > { %5677 = vmatprep.subr.bf16.mxu0 %v7065_v25  ;;  %5712 = vmatprep.subr.bf16.mxu1 %v6146_v43 }
 0xbf8   : > { %5679 = vmatpush1.bf16.msra.mxu0 %v7069_v7  ;;  %5714 = vmatpush3.bf16.msra.mxu1 %v7100_v41 }
 0xbf9   : > { %5681 = vmatprep.subr.bf16.mxu0 %v7075_v56  ;;  %5715 = vmatprep.subr.bf16.mxu1 %v6146_v43 }
 0xbfc   : > { %5683 = vmatpush1.bf16.msra.mxu0 %v7080_v28  ;;  %5717 = vmatpush3.bf16.msra.mxu1 %v7116_v0 }
 0xbfd   : > { %5685 = vmatprep.subr.bf16.mxu0 %v7090_v26  ;;  %5718 = vmatprep.subr.bf16.mxu1 %v6146_v43 }
 0xc00   : > { %5687 = vmatpush1.bf16.msra.mxu0 %v7096_v11  ;;  %5720 = vmatpush3.bf16.msra.mxu1 %v7132_v2 }
 0xc01   : > { %5689 = vmatprep.subr.bf16.mxu0 %v7106_v62  ;;  %5721 = vmatprep.subr.bf16.mxu1 %v6146_v43 }
 0xc04   : > { %5691 = vmatpush1.bf16.msra.mxu0 %v7112_v60  ;;  %5723 = vmatpush3.bf16.msra.mxu1 %v7148_v21 }
 0xc05   : > { %5693 = vmatprep.subr.bf16.mxu0 %v7122_v24  ;;  %5756 = vmatprep.subr.bf16.mxu1 %v6146_v43 }
 0xc08   : > { %5695 = vmatpush1.bf16.msra.mxu0 %v7128_v34 }
 0xc09   : > { %5697 = vmatprep.subr.bf16.mxu0 %v7138_v15 }
 0xc0c   : > { %5699 = vmatpush1.bf16.msra.mxu0 %v7144_v6 }
 0xc0d   : > { %5725 = vmatprep.subr.bf16.mxu0 %v7045_v53 }
 0xcba   : > { %v2918_v51 = vpop.f32.mrb[6].mxu0  ;;  %v2989_v40 = vpop.f32.mrb[6].mxu1 }
 0xcbb   : > { %v2993_v36 = vadd.f32 %v2918_v51, %v2803_v48  ;;  %v2920_v49 = vpop.f32.mrb[7].mxu0  ;;  %v4855_v33 = vpop.f32.mrb[7].mxu1  ;;  %v3010_v55 = vadd.f32 %v6225_v9, %v2989_v40  ;;  %v3225_v48 = vrot.slane %v3027_v10, 2 }
 0xcbc   : > { %v3003_v23 = vadd.f32 %v3001_v22, %v2920_v49 }
 0xcbd   : > { %v4144_v54 = vmul.f32 -1.442695, %v2993_v36 }
 0xcbe   : > { %v4145_v13 = vmul.f32 -1.442695, %v3003_v23 }
 0xcbf   : > { %6052 = vpow2.f32 %v4144_v54 }
 0xcc0   : > { %6054 = vpow2.f32 %v4145_v13 }
 0xcc9   : > { %v6053_v59 = vpop.eup %6052 }
 0xcca   : > { %v2997_v39 = vadd.f32 1.0, %v6053_v59  ;;  %v6055_v8 = vpop.eup %6054 }
 0xccb   : > { %v3007_v47 = vadd.f32 1.0, %v6055_v8  ;;  %v3236_v8 = vrot.slane %v3027_v10, 4 }
 0xccc   : > { %6056 = vrcp.f32 %v2997_v39 }
 0xccd   : > { %6058 = vrcp.f32 %v3007_v47 }
 0xcd6   : > { %v6057_v31 = vpop.eup %6056 }
 0xcd7   : > { %v3011_v45 = vmul.f32 %v6057_v31, %v3010_v55  ;;  %v6059_v12 = vpop.eup %6058 }
 0xcd8   : > { %v3016_v46 = vsub.f32 1.0, %v6059_v12  ;;  %v3018_v50 = vmul.f32 %v6059_v12, %v7030_v44  ;;  %v3254_v44 = vld [vmem:[%s6230_s19 + $0x10] sm:$0xff] }
 0xcd9   : > { %v3014_v63 = vadd.f32 %v3012_v20, %v3011_v45  ;;  %v7183_v27 = vpack.c.bf16 %v3257_v16, %v3254_v44 }
 0xcdb   : > { %6060 = vtanh.f32 %v3014_v63 }
 0xce5   : > { %v6061_v17 = vpop.eup %6060 }
 0xce6   : > { %v3017_v61 = vmul.f32 %v6061_v17, %v3016_v46 }
 0xce8   : > { %v3019_v42 = vadd.f32 %v3018_v50, %v3017_v61 }
 0xcea   : > { %3020 = vst [vmem:[#allocation2] sm:$0x3] %v3019_v42  ;;  %v3021_v57 = vpack.c.bf16 %v3019_v42, %v3019_v42  ;;  %v4151_v42 = vld [vmem:[%s6232_s20 + $0x6] sm:$0x7] }
 0xcec   : > { %4146 = vst [vmem:[%s6234_s12 + $0x4] sm:$0x1] %v3021_v57  ;;  %v3251_v57 = vunpack.c.l.bf16 %v4151_v42 }
 0xcee   : > { %v3449_v16 = vrot.slane %v3251_v57, 2 }
 0xcf1   : > { %v7158_v1 = vld [vmem:[#allocation2] sm:$0x3] }
 0xcf2   : > { %3141 = vmatmul.mubr.f32.vlgmr.msra.gmra.mrb[8].mxu0 %v7158_v1  ;;  %4889 = vmatmul.mubr.f32.vlgmr.msra.gmra.mrb[8].mxu1 %v7158_v1 }
 0xcf3   : > { %5727 = vmatpush1.bf16.msra.mxu0 %v7049_v32  ;;  %3364 = vmatprep.mubr.f32.mxu0 %v6147_v18 }
 0xcf4   : > { %5729 = vmatprep.subr.bf16.mxu0 %v7055_v35  ;;  %4923 = vmatprep.mubr.msk.f32.mxu1 %vm6148_vm1, %v6147_v18 }
 0xcf5   : > { %5758 = vmatpush3.bf16.msra.mxu1 %v7183_v27 }
 0xcf6   : > { %5759 = vmatprep.subr.bf16.mxu1 %v6146_v43 }
 0xcf7   : > { %5731 = vmatpush1.bf16.msra.mxu0 %v7059_v29 }
 0xcf8   : > { %5733 = vmatprep.subr.bf16.mxu0 %v7065_v25 }
 0xcf9   : > { %5761 = vmatpush3.bf16.msra.mxu1 %v7189_v19 }
 0xcfa   : > { %5762 = vmatprep.subr.bf16.mxu1 %v6146_v43 }
 0xcfb   : > { %5735 = vmatpush1.bf16.msra.mxu0 %v7069_v7 }
 0xcfc   : > { %5737 = vmatprep.subr.bf16.mxu0 %v7075_v56 }
 0xcfd   : > { %5764 = vmatpush3.bf16.msra.mxu1 %v7195_v58 }
 0xcfe   : > { %5765 = vmatprep.subr.bf16.mxu1 %v6146_v43 }
 0xcff   : > { %5739 = vmatpush1.bf16.msra.mxu0 %v7080_v28 }
 0xd00   : > { %5741 = vmatprep.subr.bf16.mxu0 %v7090_v26 }
 0xd01   : > { %5767 = vmatpush3.bf16.msra.mxu1 %v7084_v52 }
 0xd02   : > { %5768 = vmatprep.subr.bf16.mxu1 %v6146_v43 }
 0xd03   : > { %5743 = vmatpush1.bf16.msra.mxu0 %v7096_v11 }
 0xd04   : > { %5745 = vmatprep.subr.bf16.mxu0 %v7106_v62 }
 0xd05   : > { %5770 = vmatpush3.bf16.msra.mxu1 %v7100_v41 }
 0xd06   : > { %5771 = vmatprep.subr.bf16.mxu1 %v6146_v43 }
 0xd07   : > { %5747 = vmatpush1.bf16.msra.mxu0 %v7112_v60 }
 0xd08   : > { %5749 = vmatprep.subr.bf16.mxu0 %v7122_v24 }
 0xd09   : > { %5773 = vmatpush3.bf16.msra.mxu1 %v7116_v0 }
 0xd0a   : > { %5774 = vmatprep.subr.bf16.mxu1 %v6146_v43 }
 0xd0b   : > { %5751 = vmatpush1.bf16.msra.mxu0 %v7128_v34 }
 0xd0c   : > { %5753 = vmatprep.subr.bf16.mxu0 %v7138_v15 }
 0xd0d   : > { %5776 = vmatpush3.bf16.msra.mxu1 %v7132_v2 }
 0xd0e   : > { %5777 = vmatprep.subr.bf16.mxu1 %v6146_v43 }
 0xd0f   : > { %5755 = vmatpush1.bf16.msra.mxu0 %v7144_v6 }
 0xd10   : > { %5781 = vmatprep.subr.bf16.mxu0 %v7045_v53 }
 0xd11   : > { %5779 = vmatpush3.bf16.msra.mxu1 %v7148_v21 }
 0xd12   : > { %5812 = vmatprep.subr.bf16.mxu1 %v6146_v43 }
 0xdc5   : > { %v3142_v4 = vpop.f32.mrb[8].mxu0  ;;  %v3213_v30 = vpop.f32.mrb[8].mxu1 }
 0xdc6   : > { %v3217_v51 = vadd.f32 %v3142_v4, %v3027_v10  ;;  %v3144_v40 = vpop.f32.mrb[9].mxu0  ;;  %v4890_v22 = vpop.f32.mrb[9].mxu1  ;;  %v3234_v39 = vadd.f32 %v6225_v9, %v3213_v30 }
 0xdc7   : > { %v3227_v49 = vadd.f32 %v3225_v48, %v3144_v40  ;;  %v3460_v40 = vrot.slane %v3251_v57, 4 }
 0xdc8   : > { %v4148_v36 = vmul.f32 -1.442695, %v3217_v51 }
 0xdc9   : > { %v4149_v33 = vmul.f32 -1.442695, %v3227_v49 }
 0xdca   : > { %6062 = vpow2.f32 %v4148_v36 }
 0xdcb   : > { %6064 = vpow2.f32 %v4149_v33 }
 0xdd4   : > { %v6063_v54 = vpop.eup %6062 }
 0xdd5   : > { %v3221_v23 = vadd.f32 1.0, %v6063_v54  ;;  %v6065_v13 = vpop.eup %6064 }
 0xdd6   : > { %v3231_v59 = vadd.f32 1.0, %v6065_v13 }
 0xdd7   : > { %6066 = vrcp.f32 %v3221_v23 }
 0xdd8   : > { %6068 = vrcp.f32 %v3231_v59 }
 0xde1   : > { %v6067_v47 = vpop.eup %6066 }
 0xde2   : > { %v3235_v55 = vmul.f32 %v6067_v47, %v3234_v39  ;;  %v6069_v31 = vpop.eup %6068 }
 0xde3   : > { %v3240_v45 = vsub.f32 1.0, %v6069_v31  ;;  %v3242_v46 = vmul.f32 %v6069_v31, %v7158_v1 }
 0xde4   : > { %v3238_v20 = vadd.f32 %v3236_v8, %v3235_v55 }
 0xde6   : > { %6070 = vtanh.f32 %v3238_v20 }
 0xdf0   : > { %v6071_v63 = vpop.eup %6070 }
 0xdf1   : > { %v3241_v12 = vmul.f32 %v6071_v63, %v3240_v45  ;;  %v3697_v45 = vld [vmem:[%s6232_s20] sm:$0x7] }
 0xdf2   : > { %v3698_v63 = vunpack.c.l.bf16 %v3697_v45 }
 0xdf3   : > { %v3243_v17 = vadd.f32 %v3242_v46, %v3241_v12 }
 0xdf5   : > { %v3245_v61 = vpack.c.bf16 %v3243_v17, %v3243_v17  ;;  %3244 = vst [vmem:[#allocation2] sm:$0x3] %v3243_v17  ;;  %v3896_v17 = vrot.slane %v3698_v63, 2 }
 0xdf7   : > { %4150 = vst [vmem:[%s6234_s12 + $0x3] sm:$0x1] %v3245_v61 }
 0xdfc   : > { %v7213_v50 = vld [vmem:[#allocation2] sm:$0x3] }
 0xdfd   : > { %3365 = vmatmul.mubr.f32.vlgmr.msra.gmra.mrb[10].mxu0 %v7213_v50  ;;  %4924 = vmatmul.mubr.f32.vlgmr.msra.gmra.mrb[10].mxu1 %v7213_v50 }
 0xdfe   : > { %5783 = vmatpush1.bf16.msra.mxu0 %v7049_v32  ;;  %5814 = vmatpush3.bf16.msra.mxu1 %v7183_v27 }
 0xdff   : > { %5785 = vmatprep.subr.bf16.mxu0 %v7055_v35  ;;  %5815 = vmatprep.subr.bf16.mxu1 %v6146_v43 }
 0xe00   : > { %3588 = vmatprep.mubr.f32.mxu0 %v6147_v18  ;;  %4958 = vmatprep.mubr.msk.f32.mxu1 %vm6148_vm1, %v6147_v18 }
 0xe02   : > { %5787 = vmatpush1.bf16.msra.mxu0 %v7059_v29  ;;  %5817 = vmatpush3.bf16.msra.mxu1 %v7189_v19 }
 0xe03   : > { %5789 = vmatprep.subr.bf16.mxu0 %v7065_v25  ;;  %5818 = vmatprep.subr.bf16.mxu1 %v6146_v43 }
 0xe06   : > { %5791 = vmatpush1.bf16.msra.mxu0 %v7069_v7  ;;  %5820 = vmatpush3.bf16.msra.mxu1 %v7195_v58 }
 0xe07   : > { %5793 = vmatprep.subr.bf16.mxu0 %v7075_v56  ;;  %5821 = vmatprep.subr.bf16.mxu1 %v6146_v43 }
 0xe0a   : > { %5795 = vmatpush1.bf16.msra.mxu0 %v7080_v28  ;;  %5823 = vmatpush3.bf16.msra.mxu1 %v7084_v52 }
 0xe0b   : > { %5797 = vmatprep.subr.bf16.mxu0 %v7090_v26  ;;  %5824 = vmatprep.subr.bf16.mxu1 %v6146_v43 }
 0xe0e   : > { %5799 = vmatpush1.bf16.msra.mxu0 %v7096_v11  ;;  %5826 = vmatpush3.bf16.msra.mxu1 %v7100_v41 }
 0xe0f   : > { %5801 = vmatprep.subr.bf16.mxu0 %v7106_v62  ;;  %5827 = vmatprep.subr.bf16.mxu1 %v6146_v43 }
 0xe12   : > { %5803 = vmatpush1.bf16.msra.mxu0 %v7112_v60  ;;  %5829 = vmatpush3.bf16.msra.mxu1 %v7116_v0 }
 0xe13   : > { %5805 = vmatprep.subr.bf16.mxu0 %v7122_v24  ;;  %5830 = vmatprep.subr.bf16.mxu1 %v6146_v43 }
 0xe16   : > { %5807 = vmatpush1.bf16.msra.mxu0 %v7128_v34  ;;  %5832 = vmatpush3.bf16.msra.mxu1 %v7132_v2 }
 0xe17   : > { %5809 = vmatprep.subr.bf16.mxu0 %v7138_v15  ;;  %5833 = vmatprep.subr.bf16.mxu1 %v6146_v43 }
 0xe1a   : > { %5811 = vmatpush1.bf16.msra.mxu0 %v7144_v6  ;;  %5835 = vmatpush3.bf16.msra.mxu1 %v7148_v21 }
 0xe1b   : > { %5837 = vmatprep.subr.bf16.mxu0 %v7045_v53  ;;  %5868 = vmatprep.subr.bf16.mxu1 %v6146_v43 }
 0xed0   : > { %v3366_v1 = vpop.f32.mrb[10].mxu0  ;;  %v3437_v44 = vpop.f32.mrb[10].mxu1 }
 0xed1   : > { %v3441_v37 = vadd.f32 %v3366_v1, %v3251_v57  ;;  %v3368_v38 = vpop.f32.mrb[11].mxu0  ;;  %v4925_v5 = vpop.f32.mrb[11].mxu1  ;;  %v3458_v51 = vadd.f32 %v6225_v9, %v3437_v44 }
 0xed2   : > { %v3451_v3 = vadd.f32 %v3449_v16, %v3368_v38 }
 0xed3   : > { %v4152_v14 = vmul.f32 -1.442695, %v3441_v37 }
 0xed4   : > { %v4153_v10 = vmul.f32 -1.442695, %v3451_v3  ;;  %v3907_v3 = vrot.slane %v3698_v63, 4 }
 0xed5   : > { %6072 = vpow2.f32 %v4152_v14 }
 0xed6   : > { %6074 = vpow2.f32 %v4153_v10 }
 0xedf   : > { %v6073_v4 = vpop.eup %6072 }
 0xee0   : > { %v3445_v30 = vadd.f32 1.0, %v6073_v4  ;;  %v6075_v48 = vpop.eup %6074 }
 0xee1   : > { %v3455_v53 = vadd.f32 1.0, %v6075_v48 }
 0xee2   : > { %6076 = vrcp.f32 %v3445_v30 }
 0xee3   : > { %6078 = vrcp.f32 %v3455_v53 }
 0xeec   : > { %v6077_v22 = vpop.eup %6076 }
 0xeed   : > { %v3459_v36 = vmul.f32 %v6077_v22, %v3458_v51  ;;  %v6079_v33 = vpop.eup %6078 }
 0xeee   : > { %v3464_v54 = vsub.f32 1.0, %v6079_v33  ;;  %v3466_v59 = vmul.f32 %v6079_v33, %v7213_v50 }
 0xeef   : > { %v3462_v49 = vadd.f32 %v3460_v40, %v3459_v36 }
 0xef1   : > { %6080 = vtanh.f32 %v3462_v49 }
 0xefb   : > { %v6081_v23 = vpop.eup %6080 }
 0xefc   : > { %v3465_v13 = vmul.f32 %v6081_v23, %v3464_v54 }
 0xefe   : > { %v3467_v39 = vadd.f32 %v3466_v59, %v3465_v13 }
 0xf00   : > { %v3469_v8 = vpack.c.bf16 %v3467_v39, %v3467_v39  ;;  %3468 = vst [vmem:[#allocation2] sm:$0x3] %v3467_v39 }
 0xf02   : > { %4154 = vst [vmem:[%s6234_s12 + $0x2] sm:$0x1] %v3469_v8 }
 0xf07   : > { %v7256_v47 = vld [vmem:[#allocation2] sm:$0x3] }
 0xf08   : > { %3589 = vmatmul.mubr.f32.vlgmr.msra.gmra.mrb[12].mxu0 %v7256_v47  ;;  %4959 = vmatmul.mubr.f32.vlgmr.msra.gmra.mrb[12].mxu1 %v7256_v47 }
 0xf09   : > { %5839 = vmatpush1.bf16.msra.mxu0 %v7049_v32  ;;  %5870 = vmatpush3.bf16.msra.mxu1 %v7183_v27 }
 0xf0a   : > { %5841 = vmatprep.subr.bf16.mxu0 %v7055_v35  ;;  %5871 = vmatprep.subr.bf16.mxu1 %v6146_v43 }
 0xf0b   : > { %3811 = vmatprep.mubr.f32.mxu0 %v6147_v18  ;;  %4993 = vmatprep.mubr.msk.f32.mxu1 %vm6148_vm1, %v6147_v18  ;;  %v4155_v18 = vld [vmem:[%s6232_s20 + $0x3] sm:$0x7] }
 0xf0c   : > { %v3475_v32 = vunpack.c.l.bf16 %v4155_v18 }
 0xf0d   : > { %5843 = vmatpush1.bf16.msra.mxu0 %v7059_v29  ;;  %5873 = vmatpush3.bf16.msra.mxu1 %v7189_v19 }
 0xf0e   : > { %5845 = vmatprep.subr.bf16.mxu0 %v7065_v25  ;;  %5874 = vmatprep.subr.bf16.mxu1 %v6146_v43  ;;  %v3673_v25 = vrot.slane %v3475_v32, 2 }
 0xf11   : > { %5847 = vmatpush1.bf16.msra.mxu0 %v7069_v7  ;;  %5876 = vmatpush3.bf16.msra.mxu1 %v7195_v58 }
 0xf12   : > { %5849 = vmatprep.subr.bf16.mxu0 %v7075_v56  ;;  %5877 = vmatprep.subr.bf16.mxu1 %v6146_v43 }
 0xf15   : > { %5851 = vmatpush1.bf16.msra.mxu0 %v7080_v28  ;;  %5879 = vmatpush3.bf16.msra.mxu1 %v7084_v52 }
 0xf16   : > { %5853 = vmatprep.subr.bf16.mxu0 %v7090_v26  ;;  %5880 = vmatprep.subr.bf16.mxu1 %v6146_v43 }
 0xf19   : > { %5855 = vmatpush1.bf16.msra.mxu0 %v7096_v11  ;;  %5882 = vmatpush3.bf16.msra.mxu1 %v7100_v41 }
 0xf1a   : > { %5857 = vmatprep.subr.bf16.mxu0 %v7106_v62  ;;  %5883 = vmatprep.subr.bf16.mxu1 %v6146_v43 }
 0xf1d   : > { %5859 = vmatpush1.bf16.msra.mxu0 %v7112_v60  ;;  %5885 = vmatpush3.bf16.msra.mxu1 %v7116_v0 }
 0xf1e   : > { %5861 = vmatprep.subr.bf16.mxu0 %v7122_v24  ;;  %5886 = vmatprep.subr.bf16.mxu1 %v6146_v43  ;;  %v3684_v24 = vrot.slane %v3475_v32, 4 }
 0xf21   : > { %5863 = vmatpush1.bf16.msra.mxu0 %v7128_v34  ;;  %5888 = vmatpush3.bf16.msra.mxu1 %v7132_v2 }
 0xf22   : > { %5865 = vmatprep.subr.bf16.mxu0 %v7138_v15  ;;  %5889 = vmatprep.subr.bf16.mxu1 %v6146_v43 }
 0xf25   : > { %5867 = vmatpush1.bf16.msra.mxu0 %v7144_v6  ;;  %5891 = vmatpush3.bf16.msra.mxu1 %v7148_v21 }
 0xfdb   : > { %v3590_v35 = vpop.f32.mrb[12].mxu0  ;;  %v3661_v29 = vpop.f32.mrb[12].mxu1 }
 0xfdc   : > { %v3665_v7 = vadd.f32 %v3590_v35, %v3475_v32  ;;  %v3592_v56 = vpop.f32.mrb[13].mxu0  ;;  %v4960_v28 = vpop.f32.mrb[13].mxu1  ;;  %v3682_v0 = vadd.f32 %v6225_v9, %v3661_v29 }
 0xfdd   : > { %v3675_v26 = vadd.f32 %v3673_v25, %v3592_v56 }
 0xfde   : > { %v4156_v52 = vmul.f32 -1.442695, %v3665_v7 }
 0xfdf   : > { %v4157_v11 = vmul.f32 -1.442695, %v3675_v26 }
 0xfe0   : > { %6082 = vpow2.f32 %v4156_v52 }
 0xfe1   : > { %6084 = vpow2.f32 %v4157_v11 }
 0xfea   : > { %v6083_v41 = vpop.eup %6082 }
 0xfeb   : > { %v3669_v62 = vadd.f32 1.0, %v6083_v41  ;;  %v6085_v43 = vpop.eup %6084 }
 0xfec   : > { %v3679_v60 = vadd.f32 1.0, %v6085_v43 }
 0xfed   : > { %6086 = vrcp.f32 %v3669_v62 }
 0xfee   : > { %6088 = vrcp.f32 %v3679_v60 }
 0xff7   : > { %v6087_v34 = vpop.eup %6086 }
 0xff8   : > { %v3683_v2 = vmul.f32 %v6087_v34, %v3682_v0  ;;  %v6089_v6 = vpop.eup %6088 }
 0xff9   : > { %v3688_v21 = vsub.f32 1.0, %v6089_v6  ;;  %v3690_v58 = vmul.f32 %v6089_v6, %v7256_v47 }
 0xffa   : > { %v3686_v15 = vadd.f32 %v3684_v24, %v3683_v2 }
 0xffc   : > { %6090 = vtanh.f32 %v3686_v15 }
0x1006   : > { %v6091_v27 = vpop.eup %6090 }
0x1007   : > { %v3689_v19 = vmul.f32 %v6091_v27, %v3688_v21 }
0x1009   : > { %v3691_v55 = vadd.f32 %v3690_v58, %v3689_v19 }
0x100b   : > { %v3693_v20 = vpack.c.bf16 %v3691_v55, %v3691_v55  ;;  %3692 = vst [vmem:[#allocation2] sm:$0x3] %v3691_v55 }
0x100d   : > { %4158 = vst [vmem:[%s6234_s12 + $0x1] sm:$0x1] %v3693_v20 }
0x1012   : > { %v3696_v31 = vld [vmem:[#allocation2] sm:$0x3] }
0x1013   : > { %3812 = vmatmul.mubr.f32.vlgmr.msra.gmra.mrb[14].mxu0 %v3696_v31  ;;  %4994 = vmatmul.mubr.f32.vlgmr.msra.gmra.mrb[14].mxu1 %v3696_v31 }
0x10e6   : > { %v3813_v12 = vpop.f32.mrb[14].mxu0  ;;  %v3884_v46 = vpop.f32.mrb[14].mxu1 }
0x10e7   : > { %v3888_v61 = vadd.f32 %v3813_v12, %v3698_v63  ;;  %v3815_v50 = vpop.f32.mrb[15].mxu0  ;;  %v4995_v42 = vpop.f32.mrb[15].mxu1  ;;  %v3905_v14 = vadd.f32 %v6225_v9, %v3884_v46 }
0x10e8   : > { %v3898_v1 = vadd.f32 %v3896_v17, %v3815_v50 }
0x10e9   : > { %v4159_v57 = vmul.f32 -1.442695, %v3888_v61 }
0x10ea   : > { %v4160_v44 = vmul.f32 -1.442695, %v3898_v1 }
0x10eb   : > { %6092 = vpow2.f32 %v4159_v57 }
0x10ec   : > { %6094 = vpow2.f32 %v4160_v44 }
0x10f5   : > { %v6093_v16 = vpop.eup %6092 }
0x10f6   : > { %v3892_v37 = vadd.f32 1.0, %v6093_v16  ;;  %v6095_v38 = vpop.eup %6094 }
0x10f7   : > { %v3902_v5 = vadd.f32 1.0, %v6095_v38 }
0x10f8   : > { %6096 = vrcp.f32 %v3892_v37 }
0x10f9   : > { %6098 = vrcp.f32 %v3902_v5 }
0x1102   : > { %v6097_v10 = vpop.eup %6096 }
0x1103   : > { %v3906_v4 = vmul.f32 %v6097_v10, %v3905_v14  ;;  %v6099_v48 = vpop.eup %6098 }
0x1104   : > { %v3911_v53 = vsub.f32 1.0, %v6099_v48  ;;  %v3913_v22 = vmul.f32 %v6099_v48, %v3696_v31 }
0x1105   : > { %v3909_v30 = vadd.f32 %v3907_v3, %v3906_v4 }
0x1107   : > { %6100 = vtanh.f32 %v3909_v30 }
0x1111   : > { %v6101_v51 = vpop.eup %6100 }
0x1112   : > { %v3912_v40 = vmul.f32 %v6101_v51, %v3911_v53 }
0x1114   : > { %v3914_v36 = vadd.f32 %v3913_v22, %v3912_v40 }
0x1116   : > { %3915 = vst [vmem:[#allocation2] sm:$0x3] %v3914_v36  ;;  %v3916_v49 = vpack.c.bf16 %v3914_v36, %v3914_v36 }
0x1118   : > { %3917 = vst [vmem:[%s6234_s12] sm:$0x1] %v3916_v49 }
0x1119 PF: > { %3924 = sbr.rel (!%p6204_p6) target bundleno = 4385 (0x1121), region = 89  ;;  %s3932_s25 = scalar_lea.vmem (%p6204_p6), %s7332_s3, %s6132_s14  ;;  %v3950_v33 = vld [vmem:[%s6234_s12 + $0x1] sm:$0x1] (%p6204_p6)  ;;  %v3952_v54 = vld [vmem:[%s6234_s12 + $0x2] sm:$0x1] (%p6204_p6) }
0x111a   : > { %3951 = vst [vmem:[%s3932_s25 + $0x2] sm:$0x1] (%p6204_p6), %v3950_v33  ;;  %3953 = vst [vmem:[%s3932_s25 + $0x4] sm:$0x1] (%p6204_p6), %v3952_v54  ;;  %v3954_v23 = vld [vmem:[%s6234_s12 + $0x3] sm:$0x1] (%p6204_p6) }
0x111b   : > { %v3956_v13 = vld [vmem:[%s6234_s12 + $0x4] sm:$0x1] (%p6204_p6)  ;;  %v3958_v59 = vld [vmem:[%s6234_s12 + $0x5] sm:$0x1] (%p6204_p6)  ;;  %3955 = vst [vmem:[%s3932_s25 + $0x6] sm:$0x1] (%p6204_p6), %v3954_v23 }
0x111c   : > { %3957 = vst [vmem:[%s3932_s25 + $0x8] sm:$0x1] (%p6204_p6), %v3956_v13  ;;  %3959 = vst [vmem:[%s3932_s25 + $0xa] sm:$0x1] (%p6204_p6), %v3958_v59  ;;  %v3960_v39 = vld [vmem:[%s6234_s12 + $0x6] sm:$0x1] (%p6204_p6) }
0x111d   : > { %v3962_v8 = vld [vmem:[%s6234_s12 + $0x7] sm:$0x1] (%p6204_p6)  ;;  %3961 = vst [vmem:[%s3932_s25 + $0xc] sm:$0x1] (%p6204_p6), %v3960_v39 }
0x111e   : > { %3963 = vst [vmem:[%s3932_s25 + $0xe] sm:$0x1] (%p6204_p6), %v3962_v8 }
0x111f   : > { %v3948_v9 = vld [vmem:[%s6234_s12] sm:$0x1] (%p6204_p6) }
0x1120   : > { %3949 = vst [vmem:[%s3932_s25] sm:$0x1] %v3948_v9 }
0x1121 PF: > { %s13_s16 = sadd.s32 1, %s6140_s16   ;;  %s7334_s12 = smov %s6128_s13 }
0x1122   : > { %p10_p0 = scmp.ge.s32.totalorder %s13_s16, 4   ;;  %s7335_s13 = smov %s6209_s22 }
0x1123   : > { %s7336_s14 = smov %s6136_s15  ;;  %s7337_s15 = smov %s7339_s17 }
0x1124   :  { %12 = sbr.rel (!%p10_p0) target bundleno = 3 (0x3), region = 195 }

</bundles_post_ra>
